<compile_context>
chip_gen: v7x
topology: tpu7x:2x2x1
jax: 0.10.0
libtpu: 0.0.40
codegen_flags: <defaults>
</compile_context>

<pallas_src>
import jax
import jax.numpy as jnp
from jax import lax
from jax.experimental import pallas as pl
from jax.experimental.pallas import tpu as pltpu


# Left column pad inside the pooling scratch.  8 keeps the interior store
# sublane-aligned (f32 sublane tile = 8); only 2 of those columns are ever read.
_LP = 8


def _pool5_same(pad_ref, v, H, W):
    """Stride-1, kernel-5, 'same' max pool (separable rows then cols), -inf padding.

    `pad_ref` is a (H+4, W+_LP+2, C) VMEM scratch whose border strips are already
    -inf; only the interior [2:2+H, _LP:_LP+W] is written here, so every shifted
    read below is a static slice (no padded copies / concatenates materialized).
    """
    # --- pool along H (rows) ---
    pad_ref[2:2 + H, _LP:_LP + W, :] = v
    r = pad_ref[0:H, _LP:_LP + W, :]
    for d in range(1, 5):
        r = jnp.maximum(r, pad_ref[d:d + H, _LP:_LP + W, :])
    # --- pool along W (cols) ---
    pad_ref[2:2 + H, _LP:_LP + W, :] = r
    out = pad_ref[2:2 + H, _LP - 2:_LP - 2 + W, :]
    for d in range(1, 5):
        out = jnp.maximum(out, pad_ref[2:2 + H, _LP - 2 + d:_LP - 2 + d + W, :])
    return out


def spp_kernel(x_ref, w1_ref, w2_ref, o_ref, pad_ref):
    # x_ref : (1, H, W, Cin)        one batch element (VMEM tile)
    # w1_ref: (Cin, Cmid)           conv1x1 #1 weight
    # w2_ref: (4, Cmid, Cout)       conv1x1 #2 weight, pre-split per pyramid level
    # o_ref : (1, H, W, Cout)
    # pad_ref: (H+4, W+_LP+2, Cmid) reusable -inf-bordered pooling scratch
    _, H, W, Cin = x_ref.shape
    Cmid = w1_ref.shape[1]
    Cout = w2_ref.shape[2]
    Wp = W + _LP + 2

    # -inf border strips; interior writes in _pool5_same never touch them.
    pad_ref[0:2, :, :] = jnp.full((2, Wp, Cmid), -jnp.inf, pad_ref.dtype)
    pad_ref[H + 2:H + 4, :, :] = jnp.full((2, Wp, Cmid), -jnp.inf, pad_ref.dtype)
    pad_ref[:, _LP - 2:_LP, :] = jnp.full((H + 4, 2, Cmid), -jnp.inf, pad_ref.dtype)
    pad_ref[:, _LP + W:_LP + W + 2, :] = jnp.full((H + 4, 2, Cmid), -jnp.inf,
                                                  pad_ref.dtype)

    x = x_ref[0]                                             # (H, W, Cin)

    # conv1x1 #1 == per-pixel matmul over channels (MXU).
    y = jnp.dot(x.reshape(H * W, Cin), w1_ref[...],
                preferred_element_type=jnp.float32)          # (H*W, Cmid)
    y3 = y.reshape(H, W, Cmid)

    # proj(concat([y, p5, p9, p13])) == sum_k part_k @ w2[k]
    # -> the (H, W, 4*Cmid) concat buffer never exists; each level is consumed
    #    by its partial matmul as soon as it is produced.
    acc = jnp.dot(y, w2_ref[0], preferred_element_type=jnp.float32)

    p5 = _pool5_same(pad_ref, y3, H, W)                      # 5x5
    acc += jnp.dot(p5.reshape(H * W, Cmid), w2_ref[1],
                   preferred_element_type=jnp.float32)

    p9 = _pool5_same(pad_ref, p5, H, W)                      # 5∘5  == 9x9
    acc += jnp.dot(p9.reshape(H * W, Cmid), w2_ref[2],
                   preferred_element_type=jnp.float32)

    p13 = _pool5_same(pad_ref, p9, H, W)                     # 5∘5∘5 == 13x13
    acc += jnp.dot(p13.reshape(H * W, Cmid), w2_ref[3],
                   preferred_element_type=jnp.float32)

    # Note: for real SPP channel counts keep Cout a multiple of 128 so this store
    # is lane-dense (unmasked vst); the tiny demo Cout=8 is inherently masked.
    o_ref[0] = acc.reshape(H, W, Cout).astype(o_ref.dtype)


def spp_forward_nhwc(x_nhwc, w1, w2):
    """Native channels-last entry point. x: (N,H,W,Cin); w1: (Cin,Cmid); w2: (4*Cmid,Cout)."""
    N, H, W, Cin = x_nhwc.shape
    Cmid = w1.shape[1]
    Cout = w2.shape[1]
    w2_split = w2.reshape(4, Cmid, Cout)

    flops = 2 * N * H * W * (Cin * Cmid + 4 * Cmid * Cout)
    bytes_accessed = 4 * (x_nhwc.size + N * H * W * Cout + w1.size + w2.size)

    # Per-step VMEM budget (double-buffered tiles + weights + pooling scratch +
    # live y/pool/acc values), with 2x headroom, floored at the 32 MiB scoped
    # default and capped at v7x's 64 MiB physical VMEM.
    step_bytes = 4 * (2 * H * W * Cin                         # input tile (x2 buf)
                      + 2 * H * W * Cout                      # output tile (x2 buf)
                      + 2 * (w1.size + w2.size)               # weights (x2 buf)
                      + (H + 4) * (W + _LP + 2) * Cmid        # pooling scratch
                      + 4 * H * W * Cmid                      # y + pool levels live
                      + H * W * Cout)                         # accumulator
    vmem_limit = int(min(max(2 * step_bytes, 32 * 1024 * 1024), 64 * 1024 * 1024))

    return pl.pallas_call(
        spp_kernel,
        out_shape=jax.ShapeDtypeStruct((N, H, W, Cout), jnp.float32),
        grid=(N,),
        in_specs=[
            pl.BlockSpec((1, H, W, Cin), lambda n: (n, 0, 0, 0)),
            pl.BlockSpec((Cin, Cmid), lambda n: (0, 0)),
            pl.BlockSpec((4, Cmid, Cout), lambda n: (0, 0, 0)),
        ],
        out_specs=pl.BlockSpec((1, H, W, Cout), lambda n: (n, 0, 0, 0)),
        scratch_shapes=[pltpu.VMEM((H + 4, W + _LP + 2, Cmid), jnp.float32)],
        compiler_params=pltpu.CompilerParams(
            dimension_semantics=("parallel",),
            vmem_limit_bytes=vmem_limit),
        cost_estimate=pl.CostEstimate(
            flops=flops, transcendentals=0, bytes_accessed=bytes_accessed),
    )(x_nhwc, w1, w2_split)


def spp_forward(x_nchw, w1, w2):
    """PyTorch-style NCHW boundary. Prefer spp_forward_nhwc when the surrounding
    model is channels-last (each transpose is a full extra HBM round trip)."""
    x_nhwc = jnp.transpose(x_nchw, (0, 2, 3, 1))             # NCHW -> NHWC
    out_nhwc = spp_forward_nhwc(x_nhwc, w1, w2)
    return jnp.transpose(out_nhwc, (0, 3, 1, 2))             # NHWC -> NCHW


def spp_reference(x_nchw, w1, w2):
    """Pure-JAX reference (lax.reduce_window) for verification."""
    x = jnp.transpose(x_nchw, (0, 2, 3, 1))
    y = jnp.einsum('nhwc,cd->nhwd', x, w1)

    def mp(v, k):
        r = k // 2
        return lax.reduce_window(v, -jnp.inf, lax.max,
                                 (1, k, k, 1), (1, 1, 1, 1),
                                 [(0, 0), (r, r), (r, r), (0, 0)])

    cat = jnp.concatenate([y, mp(y, 5), mp(y, 9), mp(y, 13)], axis=-1)
    out = jnp.einsum('nhwc,cd->nhwd', cat, w2)
    return jnp.transpose(out, (0, 3, 1, 2))


if __name__ == "__main__":
    # Small shapes consistent with the module: in_channels must be even.
    N, Cin, H, W = 2, 8, 16, 16
    Cmid = Cin // 2          # num_channels
    Cout = 8                 # out_channels

    key = jax.random.PRNGKey(0)
    kx, k1, k2 = jax.random.split(key, 3)
    x = jax.random.normal(kx, (N, Cin, H, W), dtype=jnp.float32)
    # Bias-free conv1x1 weights stored as (in_channels, out_channels) for
    # channels-last matmul.
    w1 = jax.random.normal(k1, (Cin, Cmid), dtype=jnp.float32) * 0.1
    w2 = jax.random.normal(k2, (4 * Cmid, Cout), dtype=jnp.float32) * 0.1

    out = jax.block_until_ready(spp_forward(x, w1, w2))
    ref = jax.block_until_ready(spp_reference(x, w1, w2))

    assert out.shape == (N, Cout, H, W), out.shape
    assert jnp.allclose(out, ref, rtol=1e-5, atol=1e-5), \
        float(jnp.max(jnp.abs(out - ref)))
    print("KERNEL_OK")
</pallas_src>

<mosaic_0001>
module attributes {stable_mosaic.version = 11 : i64} {
  func.func @spp_kernel(%arg0: i32, %arg1: memref<1x16x16x8xf32, #tpu.memory_space<vmem>>, %arg2: memref<8x4xf32, #tpu.memory_space<vmem>>, %arg3: memref<4x4x8xf32, #tpu.memory_space<vmem>>, %arg4: memref<1x16x16x8xf32, #tpu.memory_space<vmem>>, %arg5: memref<20x26x4xf32, #tpu.memory_space<vmem>>) attributes {dimension_semantics = [#tpu.dimension_semantics<parallel>], iteration_bounds = array<i64: 2>, scalar_prefetch = 0 : i64, scratch_operands = 1 : i64, tpu.core_type = #tpu.core_type<tc>, window_params = [{transform_indices = @transform_0, window_bounds = array<i64: 1, 16, 16, 8>}, {pipeline_mode = #tpu.pipeline_mode<synchronous>, transform_indices = @transform_1, window_bounds = array<i64: 8, 4>}, {pipeline_mode = #tpu.pipeline_mode<synchronous>, transform_indices = @transform_2, window_bounds = array<i64: 4, 4, 8>}, {transform_indices = @transform_3, window_bounds = array<i64: 1, 16, 16, 8>}]} {
    %cst = arith.constant 0xFF800000 : f32
    %0 = vector.broadcast %cst : f32 to vector<2x26x4xf32>
    %c0 = arith.constant 0 : index
    %c0_0 = arith.constant 0 : index
    %c0_1 = arith.constant 0 : index
    %1 = vector.load %arg5[%c0, %c0_0, %c0_1] : memref<20x26x4xf32, #tpu.memory_space<vmem>>, vector<2x26x4xf32>
    tpu.vector_store %arg5[%c0, %c0_0, %c0_1], %0 {strides = array<i32>} : memref<20x26x4xf32, #tpu.memory_space<vmem>>, vector<2x26x4xf32>,
    %cst_2 = arith.constant 0xFF800000 : f32
    %2 = vector.broadcast %cst_2 : f32 to vector<2x26x4xf32>
    %c18 = arith.constant 18 : index
    %c0_3 = arith.constant 0 : index
    %c0_4 = arith.constant 0 : index
    %3 = vector.load %arg5[%c18, %c0_3, %c0_4] : memref<20x26x4xf32, #tpu.memory_space<vmem>>, vector<2x26x4xf32>
    tpu.vector_store %arg5[%c18, %c0_3, %c0_4], %2 {strides = array<i32>} : memref<20x26x4xf32, #tpu.memory_space<vmem>>, vector<2x26x4xf32>,
    %cst_5 = arith.constant 0xFF800000 : f32
    %4 = vector.broadcast %cst_5 : f32 to vector<20x2x4xf32>
    %c0_6 = arith.constant 0 : index
    %c6 = arith.constant 6 : index
    %c0_7 = arith.constant 0 : index
    %5 = vector.load %arg5[%c0_6, %c6, %c0_7] : memref<20x26x4xf32, #tpu.memory_space<vmem>>, vector<20x2x4xf32>
    tpu.vector_store %arg5[%c0_6, %c6, %c0_7], %4 {strides = array<i32>} : memref<20x26x4xf32, #tpu.memory_space<vmem>>, vector<20x2x4xf32>,
    %cst_8 = arith.constant 0xFF800000 : f32
    %6 = vector.broadcast %cst_8 : f32 to vector<20x2x4xf32>
    %c0_9 = arith.constant 0 : index
    %c24 = arith.constant 24 : index
    %c0_10 = arith.constant 0 : index
    %7 = vector.load %arg5[%c0_9, %c24, %c0_10] : memref<20x26x4xf32, #tpu.memory_space<vmem>>, vector<20x2x4xf32>
    tpu.vector_store %arg5[%c0_9, %c24, %c0_10], %6 {strides = array<i32>} : memref<20x26x4xf32, #tpu.memory_space<vmem>>, vector<20x2x4xf32>,
    %c0_11 = arith.constant 0 : index
    %c0_12 = arith.constant 0 : index
    %c0_13 = arith.constant 0 : index
    %c0_14 = arith.constant 0 : index
    %8 = vector.load %arg1[%c0_11, %c0_12, %c0_13, %c0_14] : memref<1x16x16x8xf32, #tpu.memory_space<vmem>>, vector<1x16x16x8xf32>
    %9 = vector.shape_cast %8 : vector<1x16x16x8xf32> to vector<16x16x8xf32>
    %10 = vector.shape_cast %9 : vector<16x16x8xf32> to vector<256x8xf32>
    %c0_15 = arith.constant 0 : index
    %c0_16 = arith.constant 0 : index
    %11 = vector.load %arg2[%c0_15, %c0_16] : memref<8x4xf32, #tpu.memory_space<vmem>>, vector<8x4xf32>
    %cst_17 = arith.constant dense<0.000000e+00> : vector<256x4xf32>
    %12 = tpu.matmul %10, %11, %cst_17 {dimension_numbers = #tpu.dot_dimension_numbers<[1], [0], [0], [1], [0, 0, 1, 1], [], []>} : vector<256x8xf32>, vector<8x4xf32>, vector<256x4xf32> -> vector<256x4xf32>
    %13 = vector.shape_cast %12 : vector<256x4xf32> to vector<16x16x4xf32>
    %c0_18 = arith.constant 0 : index
    %c0_19 = arith.constant 0 : index
    %c0_20 = arith.constant 0 : index
    %14 = vector.load %arg3[%c0_18, %c0_19, %c0_20] : memref<4x4x8xf32, #tpu.memory_space<vmem>>, vector<1x4x8xf32>
    %15 = vector.shape_cast %14 : vector<1x4x8xf32> to vector<4x8xf32>
    %cst_21 = arith.constant dense<0.000000e+00> : vector<256x8xf32>
    %16 = tpu.matmul %12, %15, %cst_21 {dimension_numbers = #tpu.dot_dimension_numbers<[1], [0], [0], [1], [0, 0, 1, 1], [], []>} : vector<256x4xf32>, vector<4x8xf32>, vector<256x8xf32> -> vector<256x8xf32>
    %c2 = arith.constant 2 : index
    %c8 = arith.constant 8 : index
    %c0_22 = arith.constant 0 : index
    %17 = vector.load %arg5[%c2, %c8, %c0_22] : memref<20x26x4xf32, #tpu.memory_space<vmem>>, vector<16x16x4xf32>
    tpu.vector_store %arg5[%c2, %c8, %c0_22], %13 {strides = array<i32>} : memref<20x26x4xf32, #tpu.memory_space<vmem>>, vector<16x16x4xf32>,
    %c0_23 = arith.constant 0 : index
    %c8_24 = arith.constant 8 : index
    %c0_25 = arith.constant 0 : index
    %18 = vector.load %arg5[%c0_23, %c8_24, %c0_25] : memref<20x26x4xf32, #tpu.memory_space<vmem>>, vector<16x16x4xf32>
    %c1 = arith.constant 1 : index
    %c8_26 = arith.constant 8 : index
    %c0_27 = arith.constant 0 : index
    %19 = vector.load %arg5[%c1, %c8_26, %c0_27] : memref<20x26x4xf32, #tpu.memory_space<vmem>>, vector<16x16x4xf32>
    %20 = arith.maximumf %18, %19 : vector<16x16x4xf32>
    %c2_28 = arith.constant 2 : index
    %c8_29 = arith.constant 8 : index
    %c0_30 = arith.constant 0 : index
    %21 = vector.load %arg5[%c2_28, %c8_29, %c0_30] : memref<20x26x4xf32, #tpu.memory_space<vmem>>, vector<16x16x4xf32>
    %22 = arith.maximumf %20, %21 : vector<16x16x4xf32>
    %c3 = arith.constant 3 : index
    %c8_31 = arith.constant 8 : index
    %c0_32 = arith.constant 0 : index
    %23 = vector.load %arg5[%c3, %c8_31, %c0_32] : memref<20x26x4xf32, #tpu.memory_space<vmem>>, vector<16x16x4xf32>
    %24 = arith.maximumf %22, %23 : vector<16x16x4xf32>
    %c4 = arith.constant 4 : index
    %c8_33 = arith.constant 8 : index
    %c0_34 = arith.constant 0 : index
    %25 = vector.load %arg5[%c4, %c8_33, %c0_34] : memref<20x26x4xf32, #tpu.memory_space<vmem>>, vector<16x16x4xf32>
    %26 = arith.maximumf %24, %25 : vector<16x16x4xf32>
    %c2_35 = arith.constant 2 : index
    %c8_36 = arith.constant 8 : index
    %c0_37 = arith.constant 0 : index
    %27 = vector.load %arg5[%c2_35, %c8_36, %c0_37] : memref<20x26x4xf32, #tpu.memory_space<vmem>>, vector<16x16x4xf32>
    tpu.vector_store %arg5[%c2_35, %c8_36, %c0_37], %26 {strides = array<i32>} : memref<20x26x4xf32, #tpu.memory_space<vmem>>, vector<16x16x4xf32>,
    %c2_38 = arith.constant 2 : index
    %c6_39 = arith.constant 6 : index
    %c0_40 = arith.constant 0 : index
    %28 = vector.load %arg5[%c2_38, %c6_39, %c0_40] : memref<20x26x4xf32, #tpu.memory_space<vmem>>, vector<16x16x4xf32>
    %c2_41 = arith.constant 2 : index
    %c7 = arith.constant 7 : index
    %c0_42 = arith.constant 0 : index
    %29 = vector.load %arg5[%c2_41, %c7, %c0_42] : memref<20x26x4xf32, #tpu.memory_space<vmem>>, vector<16x16x4xf32>
    %30 = arith.maximumf %28, %29 : vector<16x16x4xf32>
    %c2_43 = arith.constant 2 : index
    %c8_44 = arith.constant 8 : index
    %c0_45 = arith.constant 0 : index
    %31 = vector.load %arg5[%c2_43, %c8_44, %c0_45] : memref<20x26x4xf32, #tpu.memory_space<vmem>>, vector<16x16x4xf32>
    %32 = arith.maximumf %30, %31 : vector<16x16x4xf32>
    %c2_46 = arith.constant 2 : index
    %c9 = arith.constant 9 : index
    %c0_47 = arith.constant 0 : index
    %33 = vector.load %arg5[%c2_46, %c9, %c0_47] : memref<20x26x4xf32, #tpu.memory_space<vmem>>, vector<16x16x4xf32>
    %34 = arith.maximumf %32, %33 : vector<16x16x4xf32>
    %c2_48 = arith.constant 2 : index
    %c10 = arith.constant 10 : index
    %c0_49 = arith.constant 0 : index
    %35 = vector.load %arg5[%c2_48, %c10, %c0_49] : memref<20x26x4xf32, #tpu.memory_space<vmem>>, vector<16x16x4xf32>
    %36 = arith.maximumf %34, %35 : vector<16x16x4xf32>
    %37 = vector.shape_cast %36 : vector<16x16x4xf32> to vector<256x4xf32>
    %c1_50 = arith.constant 1 : index
    %c0_51 = arith.constant 0 : index
    %c0_52 = arith.constant 0 : index
    %38 = vector.load %arg3[%c1_50, %c0_51, %c0_52] : memref<4x4x8xf32, #tpu.memory_space<vmem>>, vector<1x4x8xf32>
    %39 = vector.shape_cast %38 : vector<1x4x8xf32> to vector<4x8xf32>
    %cst_53 = arith.constant dense<0.000000e+00> : vector<256x8xf32>
    %40 = tpu.matmul %37, %39, %cst_53 {dimension_numbers = #tpu.dot_dimension_numbers<[1], [0], [0], [1], [0, 0, 1, 1], [], []>} : vector<256x4xf32>, vector<4x8xf32>, vector<256x8xf32> -> vector<256x8xf32>
    %41 = arith.addf %16, %40 : vector<256x8xf32>
    %c2_54 = arith.constant 2 : index
    %c8_55 = arith.constant 8 : index
    %c0_56 = arith.constant 0 : index
    %42 = vector.load %arg5[%c2_54, %c8_55, %c0_56] : memref<20x26x4xf32, #tpu.memory_space<vmem>>, vector<16x16x4xf32>
    tpu.vector_store %arg5[%c2_54, %c8_55, %c0_56], %36 {strides = array<i32>} : memref<20x26x4xf32, #tpu.memory_space<vmem>>, vector<16x16x4xf32>,
    %c0_57 = arith.constant 0 : index
    %c8_58 = arith.constant 8 : index
    %c0_59 = arith.constant 0 : index
    %43 = vector.load %arg5[%c0_57, %c8_58, %c0_59] : memref<20x26x4xf32, #tpu.memory_space<vmem>>, vector<16x16x4xf32>
    %c1_60 = arith.constant 1 : index
    %c8_61 = arith.constant 8 : index
    %c0_62 = arith.constant 0 : index
    %44 = vector.load %arg5[%c1_60, %c8_61, %c0_62] : memref<20x26x4xf32, #tpu.memory_space<vmem>>, vector<16x16x4xf32>
    %45 = arith.maximumf %43, %44 : vector<16x16x4xf32>
    %c2_63 = arith.constant 2 : index
    %c8_64 = arith.constant 8 : index
    %c0_65 = arith.constant 0 : index
    %46 = vector.load %arg5[%c2_63, %c8_64, %c0_65] : memref<20x26x4xf32, #tpu.memory_space<vmem>>, vector<16x16x4xf32>
    %47 = arith.maximumf %45, %46 : vector<16x16x4xf32>
    %c3_66 = arith.constant 3 : index
    %c8_67 = arith.constant 8 : index
    %c0_68 = arith.constant 0 : index
    %48 = vector.load %arg5[%c3_66, %c8_67, %c0_68] : memref<20x26x4xf32, #tpu.memory_space<vmem>>, vector<16x16x4xf32>
    %49 = arith.maximumf %47, %48 : vector<16x16x4xf32>
    %c4_69 = arith.constant 4 : index
    %c8_70 = arith.constant 8 : index
    %c0_71 = arith.constant 0 : index
    %50 = vector.load %arg5[%c4_69, %c8_70, %c0_71] : memref<20x26x4xf32, #tpu.memory_space<vmem>>, vector<16x16x4xf32>
    %51 = arith.maximumf %49, %50 : vector<16x16x4xf32>
    %c2_72 = arith.constant 2 : index
    %c8_73 = arith.constant 8 : index
    %c0_74 = arith.constant 0 : index
    %52 = vector.load %arg5[%c2_72, %c8_73, %c0_74] : memref<20x26x4xf32, #tpu.memory_space<vmem>>, vector<16x16x4xf32>
    tpu.vector_store %arg5[%c2_72, %c8_73, %c0_74], %51 {strides = array<i32>} : memref<20x26x4xf32, #tpu.memory_space<vmem>>, vector<16x16x4xf32>,
    %c2_75 = arith.constant 2 : index
    %c6_76 = arith.constant 6 : index
    %c0_77 = arith.constant 0 : index
    %53 = vector.load %arg5[%c2_75, %c6_76, %c0_77] : memref<20x26x4xf32, #tpu.memory_space<vmem>>, vector<16x16x4xf32>
    %c2_78 = arith.constant 2 : index
    %c7_79 = arith.constant 7 : index
    %c0_80 = arith.constant 0 : index
    %54 = vector.load %arg5[%c2_78, %c7_79, %c0_80] : memref<20x26x4xf32, #tpu.memory_space<vmem>>, vector<16x16x4xf32>
    %55 = arith.maximumf %53, %54 : vector<16x16x4xf32>
    %c2_81 = arith.constant 2 : index
    %c8_82 = arith.constant 8 : index
    %c0_83 = arith.constant 0 : index
    %56 = vector.load %arg5[%c2_81, %c8_82, %c0_83] : memref<20x26x4xf32, #tpu.memory_space<vmem>>, vector<16x16x4xf32>
    %57 = arith.maximumf %55, %56 : vector<16x16x4xf32>
    %c2_84 = arith.constant 2 : index
    %c9_85 = arith.constant 9 : index
    %c0_86 = arith.constant 0 : index
    %58 = vector.load %arg5[%c2_84, %c9_85, %c0_86] : memref<20x26x4xf32, #tpu.memory_space<vmem>>, vector<16x16x4xf32>
    %59 = arith.maximumf %57, %58 : vector<16x16x4xf32>
    %c2_87 = arith.constant 2 : index
    %c10_88 = arith.constant 10 : index
    %c0_89 = arith.constant 0 : index
    %60 = vector.load %arg5[%c2_87, %c10_88, %c0_89] : memref<20x26x4xf32, #tpu.memory_space<vmem>>, vector<16x16x4xf32>
    %61 = arith.maximumf %59, %60 : vector<16x16x4xf32>
    %62 = vector.shape_cast %61 : vector<16x16x4xf32> to vector<256x4xf32>
    %c2_90 = arith.constant 2 : index
    %c0_91 = arith.constant 0 : index
    %c0_92 = arith.constant 0 : index
    %63 = vector.load %arg3[%c2_90, %c0_91, %c0_92] : memref<4x4x8xf32, #tpu.memory_space<vmem>>, vector<1x4x8xf32>
    %64 = vector.shape_cast %63 : vector<1x4x8xf32> to vector<4x8xf32>
    %cst_93 = arith.constant dense<0.000000e+00> : vector<256x8xf32>
    %65 = tpu.matmul %62, %64, %cst_93 {dimension_numbers = #tpu.dot_dimension_numbers<[1], [0], [0], [1], [0, 0, 1, 1], [], []>} : vector<256x4xf32>, vector<4x8xf32>, vector<256x8xf32> -> vector<256x8xf32>
    %66 = arith.addf %41, %65 : vector<256x8xf32>
    %c2_94 = arith.constant 2 : index
    %c8_95 = arith.constant 8 : index
    %c0_96 = arith.constant 0 : index
    %67 = vector.load %arg5[%c2_94, %c8_95, %c0_96] : memref<20x26x4xf32, #tpu.memory_space<vmem>>, vector<16x16x4xf32>
    tpu.vector_store %arg5[%c2_94, %c8_95, %c0_96], %61 {strides = array<i32>} : memref<20x26x4xf32, #tpu.memory_space<vmem>>, vector<16x16x4xf32>,
    %c0_97 = arith.constant 0 : index
    %c8_98 = arith.constant 8 : index
    %c0_99 = arith.constant 0 : index
    %68 = vector.load %arg5[%c0_97, %c8_98, %c0_99] : memref<20x26x4xf32, #tpu.memory_space<vmem>>, vector<16x16x4xf32>
    %c1_100 = arith.constant 1 : index
    %c8_101 = arith.constant 8 : index
    %c0_102 = arith.constant 0 : index
    %69 = vector.load %arg5[%c1_100, %c8_101, %c0_102] : memref<20x26x4xf32, #tpu.memory_space<vmem>>, vector<16x16x4xf32>
    %70 = arith.maximumf %68, %69 : vector<16x16x4xf32>
    %c2_103 = arith.constant 2 : index
    %c8_104 = arith.constant 8 : index
    %c0_105 = arith.constant 0 : index
    %71 = vector.load %arg5[%c2_103, %c8_104, %c0_105] : memref<20x26x4xf32, #tpu.memory_space<vmem>>, vector<16x16x4xf32>
    %72 = arith.maximumf %70, %71 : vector<16x16x4xf32>
    %c3_106 = arith.constant 3 : index
    %c8_107 = arith.constant 8 : index
    %c0_108 = arith.constant 0 : index
    %73 = vector.load %arg5[%c3_106, %c8_107, %c0_108] : memref<20x26x4xf32, #tpu.memory_space<vmem>>, vector<16x16x4xf32>
    %74 = arith.maximumf %72, %73 : vector<16x16x4xf32>
    %c4_109 = arith.constant 4 : index
    %c8_110 = arith.constant 8 : index
    %c0_111 = arith.constant 0 : index
    %75 = vector.load %arg5[%c4_109, %c8_110, %c0_111] : memref<20x26x4xf32, #tpu.memory_space<vmem>>, vector<16x16x4xf32>
    %76 = arith.maximumf %74, %75 : vector<16x16x4xf32>
    %c2_112 = arith.constant 2 : index
    %c8_113 = arith.constant 8 : index
    %c0_114 = arith.constant 0 : index
    %77 = vector.load %arg5[%c2_112, %c8_113, %c0_114] : memref<20x26x4xf32, #tpu.memory_space<vmem>>, vector<16x16x4xf32>
    tpu.vector_store %arg5[%c2_112, %c8_113, %c0_114], %76 {strides = array<i32>} : memref<20x26x4xf32, #tpu.memory_space<vmem>>, vector<16x16x4xf32>,
    %c2_115 = arith.constant 2 : index
    %c6_116 = arith.constant 6 : index
    %c0_117 = arith.constant 0 : index
    %78 = vector.load %arg5[%c2_115, %c6_116, %c0_117] : memref<20x26x4xf32, #tpu.memory_space<vmem>>, vector<16x16x4xf32>
    %c2_118 = arith.constant 2 : index
    %c7_119 = arith.constant 7 : index
    %c0_120 = arith.constant 0 : index
    %79 = vector.load %arg5[%c2_118, %c7_119, %c0_120] : memref<20x26x4xf32, #tpu.memory_space<vmem>>, vector<16x16x4xf32>
    %80 = arith.maximumf %78, %79 : vector<16x16x4xf32>
    %c2_121 = arith.constant 2 : index
    %c8_122 = arith.constant 8 : index
    %c0_123 = arith.constant 0 : index
    %81 = vector.load %arg5[%c2_121, %c8_122, %c0_123] : memref<20x26x4xf32, #tpu.memory_space<vmem>>, vector<16x16x4xf32>
    %82 = arith.maximumf %80, %81 : vector<16x16x4xf32>
    %c2_124 = arith.constant 2 : index
    %c9_125 = arith.constant 9 : index
    %c0_126 = arith.constant 0 : index
    %83 = vector.load %arg5[%c2_124, %c9_125, %c0_126] : memref<20x26x4xf32, #tpu.memory_space<vmem>>, vector<16x16x4xf32>
    %84 = arith.maximumf %82, %83 : vector<16x16x4xf32>
    %c2_127 = arith.constant 2 : index
    %c10_128 = arith.constant 10 : index
    %c0_129 = arith.constant 0 : index
    %85 = vector.load %arg5[%c2_127, %c10_128, %c0_129] : memref<20x26x4xf32, #tpu.memory_space<vmem>>, vector<16x16x4xf32>
    %86 = arith.maximumf %84, %85 : vector<16x16x4xf32>
    %87 = vector.shape_cast %86 : vector<16x16x4xf32> to vector<256x4xf32>
    %c3_130 = arith.constant 3 : index
    %c0_131 = arith.constant 0 : index
    %c0_132 = arith.constant 0 : index
    %88 = vector.load %arg3[%c3_130, %c0_131, %c0_132] : memref<4x4x8xf32, #tpu.memory_space<vmem>>, vector<1x4x8xf32>
    %89 = vector.shape_cast %88 : vector<1x4x8xf32> to vector<4x8xf32>
    %cst_133 = arith.constant dense<0.000000e+00> : vector<256x8xf32>
    %90 = tpu.matmul %87, %89, %cst_133 {dimension_numbers = #tpu.dot_dimension_numbers<[1], [0], [0], [1], [0, 0, 1, 1], [], []>} : vector<256x4xf32>, vector<4x8xf32>, vector<256x8xf32> -> vector<256x8xf32>
    %91 = arith.addf %66, %90 : vector<256x8xf32>
    %92 = vector.shape_cast %91 : vector<256x8xf32> to vector<16x16x8xf32>
    %c0_134 = arith.constant 0 : index
    %c0_135 = arith.constant 0 : index
    %c0_136 = arith.constant 0 : index
    %c0_137 = arith.constant 0 : index
    %93 = vector.load %arg4[%c0_134, %c0_135, %c0_136, %c0_137] : memref<1x16x16x8xf32, #tpu.memory_space<vmem>>, vector<1x16x16x8xf32>
    %94 = vector.shape_cast %93 : vector<1x16x16x8xf32> to vector<16x16x8xf32>
    %95 = vector.shape_cast %92 : vector<16x16x8xf32> to vector<1x16x16x8xf32>
    tpu.vector_store %arg4[%c0_134, %c0_135, %c0_136, %c0_137], %95 {strides = array<i32>} : memref<1x16x16x8xf32, #tpu.memory_space<vmem>>, vector<1x16x16x8xf32>,
    return
  }
  func.func @transform_0(%arg0: i32) -> (i32, i32, i32, i32) {
    %c0_i32 = arith.constant 0 : i32
    %c0_i32_0 = arith.constant 0 : i32
    %c0_i32_1 = arith.constant 0 : i32
    %c0_i32_2 = arith.constant 0 : i32
    return %arg0, %c0_i32, %c0_i32_0, %c0_i32_1 : i32, i32, i32, i32
  }
  func.func @transform_1(%arg0: i32) -> (i32, i32) {
    %c0_i32 = arith.constant 0 : i32
    %c0_i32_0 = arith.constant 0 : i32
    %c0_i32_1 = arith.constant 0 : i32
    return %c0_i32, %c0_i32_0 : i32, i32
  }
  func.func @transform_2(%arg0: i32) -> (i32, i32, i32) {
    %c0_i32 = arith.constant 0 : i32
    %c0_i32_0 = arith.constant 0 : i32
    %c0_i32_1 = arith.constant 0 : i32
    %c0_i32_2 = arith.constant 0 : i32
    return %c0_i32, %c0_i32_0, %c0_i32_1 : i32, i32, i32
  }
  func.func @transform_3(%arg0: i32) -> (i32, i32, i32, i32) {
    %c0_i32 = arith.constant 0 : i32
    %c0_i32_0 = arith.constant 0 : i32
    %c0_i32_1 = arith.constant 0 : i32
    %c0_i32_2 = arith.constant 0 : i32
    return %arg0, %c0_i32, %c0_i32_0, %c0_i32_1 : i32, i32, i32, i32
  }
}

</mosaic_0001>

<bundles_post_ra>
// kernel: tpu_custom_call.1
= control target key start
LH: loop header
LB: loop body
LE: loop exit
PB: predicated region body
PF: predicated region fallthrough
CT: control target
= control target key end

     0   :  { %s4701_s12 = smov 0   ;;  %s6283_s0 = inlined_call_operand.vmem [shape: f32[2,16,16,8], index: 0, kind: input, shape index: {}]   ;;  %s6284_s1 = inlined_call_operand.vmem [shape: f32[8,4], index: 1, kind: input, shape index: {}]   ;;  %s6285_s2 = inlined_call_operand.vmem [shape: f32[4,4,8], index: 2, kind: input, shape index: {}]   ;;  %s6286_s3 = inlined_call_operand.vmem [shape: f32[2,16,16,8], index: 3, kind: output, shape index: {}]  }
   0x1 LB: > { %s3964_s13 = sadd.s32 4294967295, %s4678_s12   ;;  %p3968_p0 = scmp.ge.s32.totalorder %s4678_s12, 1  ;;  %s4678_s12 = sphi %s4701_s12, %s13_s12  }
   0x2   : > { %p137_p1 = scmp.lt.s32.totalorder %s4678_s12, 3 }
   0x4   : > { %p138_p2 = pnand %p3968_p0, %p137_p1 }
   0x6   : > { %141 = sbr.rel (%p138_p2) target bundleno = 788 (0x314), region = 32 }
   0xd   : > { %v262_v0 = vld [vmem:[%s6284_s1] sm:$0xff]  ;;  %p161_p3 = scmp.lt.s32.totalorder %s3964_s13, 1  ;;  %vm171_vm0 = vcmask 31744   ;;  %v4680_v1 = vmov -inf   ;;  %vm263_vm1 = vcmask 64512   ;;  %vm175_vm2 = vcmask 25600  }
   0xe   : > { %4309 = vmatprep.subr.mxu0 %v262_v0  ;;  %174 = vst.msk [vmem:[#allocation2 + $0x10] sm:$0xff] %vm171_vm0, %v4680_v1  ;;  %179 = vst.msk [vmem:[#allocation2 + $0x30] sm:$0xff] %vm171_vm0, %v4680_v1  ;;  %v4869_v34 = vld [vmem:[%s6285_s2] sm:$0xf]  ;;  %vm1328_vm3 = vcmask 1043456  }
   0xf   : > { %173 = vst.msk [vmem:[#allocation2 + $0x8] sm:$0xff] %vm171_vm0, %v4680_v1  ;;  %178 = vst.msk [vmem:[#allocation2 + $0x28] sm:$0xff] %vm171_vm0, %v4680_v1  ;;  %4310 = vmatpush3.msra.mxu0 %v262_v0  ;;  %s6325_s13 = smov (!%p161_p3, %s3964_s13), 1  ;;  %4559 = vmatprep.subr.msk.mxu1 %vm1328_vm3, %v4869_v34  ;;  %v4005_v35 = vld [vmem:[%s6285_s2 + $0x4] sm:$0xf] }
  0x10   : > { %183 = vst.msk [vmem:[#allocation2 + $0x248] sm:$0xff] %vm171_vm0, %v4680_v1  ;;  %184 = vst.msk [vmem:[#allocation2 + $0x250] sm:$0xff] %vm171_vm0, %v4680_v1  ;;  %s4142_s16 = sshll.u32 %s6325_s13, 8  ;;  %4560 = vmatpush3.msk.msra.mxu1 %vm1328_vm3, %v4869_v34  ;;  %4359 = vmatprep.subr.msk.mxu0 %vm1328_vm3, %v4005_v35  ;;  %v4885_v36 = vld [vmem:[%s6285_s2 + $0x8] sm:$0xf] }
  0x11   : > { %187 = vst.msk [vmem:[#allocation2 + $0x268] sm:$0xff] %vm171_vm0, %v4680_v1  ;;  %188 = vst.msk [vmem:[#allocation2 + $0x270] sm:$0xff] %vm171_vm0, %v4680_v1  ;;  %s4736_s19 = scalar_lea.vmem %s6283_s0, %s4142_s16  ;;  %4459 = vmatprep.subr.msk.mxu1 %vm1328_vm3, %v4885_v36  ;;  %s6198_s30 = scalar_lea.vmem %s6286_s3, %s4142_s16 }
  0x12   : > { %v230_v2 = vld [vmem:[%s4736_s19] sm:$0xff]  ;;  %v231_v3 = vld [vmem:[%s4736_s19 + $0x8] sm:$0xff]  ;;  %v232_v4 = vld [vmem:[%s4736_s19 + $0x10] sm:$0xff]  ;;  %192 = vst.msk [vmem:[#allocation2 + $0x46] sm:$0x3] %vm175_vm2, %v4680_v1 }
  0x13   : > { %4311 = vmatprep.mubr.msk.f32.mxu0 %vm263_vm1, %v230_v2  ;;  %v233_v5 = vld [vmem:[%s4736_s19 + $0x18] sm:$0xff]  ;;  %v234_v6 = vld [vmem:[%s4736_s19 + $0x20] sm:$0xff]  ;;  %v235_v7 = vld [vmem:[%s4736_s19 + $0x28] sm:$0xff]  ;;  %193 = vst.msk [vmem:[#allocation2 + $0x66] sm:$0x3] %vm175_vm2, %v4680_v1 }
  0x14   : > { %4312 = vmatmul.mubr.msk.f32.vlgmr.msra.gmra.mrb[0].mxu0 %vm263_vm1, %v231_v3  ;;  %v236_v8 = vld [vmem:[%s4736_s19 + $0x30] sm:$0xff]  ;;  %v237_v9 = vld [vmem:[%s4736_s19 + $0x38] sm:$0xff]  ;;  %v238_v10 = vld [vmem:[%s4736_s19 + $0x40] sm:$0xff]  ;;  %194 = vst.msk [vmem:[#allocation2 + $0x86] sm:$0x3] %vm175_vm2, %v4680_v1 }
  0x15   : > { %4314 = vmatprep.mubr.msk.f32.mxu0 %vm263_vm1, %v232_v4  ;;  %v239_v11 = vld [vmem:[%s4736_s19 + $0x48] sm:$0xff]  ;;  %v240_v12 = vld [vmem:[%s4736_s19 + $0x50] sm:$0xff]  ;;  %v241_v13 = vld [vmem:[%s4736_s19 + $0x58] sm:$0xff]  ;;  %195 = vst.msk [vmem:[#allocation2 + $0xa6] sm:$0x3] %vm175_vm2, %v4680_v1  ;;  %4360 = vmatpush3.msk.msra.mxu0 %vm1328_vm3, %v4005_v35 }
  0x16   : > { %v242_v14 = vld [vmem:[%s4736_s19 + $0x60] sm:$0xff]  ;;  %v243_v15 = vld [vmem:[%s4736_s19 + $0x68] sm:$0xff]  ;;  %v244_v16 = vld [vmem:[%s4736_s19 + $0x70] sm:$0xff]  ;;  %196 = vst.msk [vmem:[#allocation2 + $0xc6] sm:$0x3] %vm175_vm2, %v4680_v1  ;;  %4409 = vmatprep.subr.msk.mxu0 %vm1328_vm3, %v4869_v34 }
  0x17   : > { %v245_v17 = vld [vmem:[%s4736_s19 + $0x78] sm:$0xff]  ;;  %v246_v18 = vld [vmem:[%s4736_s19 + $0x80] sm:$0xff]  ;;  %v247_v19 = vld [vmem:[%s4736_s19 + $0x88] sm:$0xff]  ;;  %197 = vst.msk [vmem:[#allocation2 + $0xe6] sm:$0x3] %vm175_vm2, %v4680_v1 }
  0x18   : > { %4315 = vmatmul.mubr.msk.f32.gmra.mrb[2].mxu0 %vm263_vm1, %v233_v5  ;;  %v248_v20 = vld [vmem:[%s4736_s19 + $0x90] sm:$0xff]  ;;  %v249_v21 = vld [vmem:[%s4736_s19 + $0x98] sm:$0xff]  ;;  %v250_v22 = vld [vmem:[%s4736_s19 + $0xa0] sm:$0xff]  ;;  %198 = vst.msk [vmem:[#allocation2 + $0x106] sm:$0x3] %vm175_vm2, %v4680_v1 }
  0x19   : > { %4317 = vmatprep.mubr.msk.f32.mxu0 %vm263_vm1, %v234_v6  ;;  %v251_v23 = vld [vmem:[%s4736_s19 + $0xa8] sm:$0xff]  ;;  %v252_v24 = vld [vmem:[%s4736_s19 + $0xb0] sm:$0xff]  ;;  %v253_v25 = vld [vmem:[%s4736_s19 + $0xb8] sm:$0xff]  ;;  %199 = vst.msk [vmem:[#allocation2 + $0x126] sm:$0x3] %vm175_vm2, %v4680_v1 }
  0x1a   : > { %v254_v26 = vld [vmem:[%s4736_s19 + $0xc0] sm:$0xff]  ;;  %v255_v27 = vld [vmem:[%s4736_s19 + $0xc8] sm:$0xff]  ;;  %v256_v28 = vld [vmem:[%s4736_s19 + $0xd0] sm:$0xff]  ;;  %200 = vst.msk [vmem:[#allocation2 + $0x146] sm:$0x3] %vm175_vm2, %v4680_v1 }
  0x1b   : > { %v257_v29 = vld [vmem:[%s4736_s19 + $0xd8] sm:$0xff]  ;;  %v258_v30 = vld [vmem:[%s4736_s19 + $0xe0] sm:$0xff]  ;;  %v259_v31 = vld [vmem:[%s4736_s19 + $0xe8] sm:$0xff]  ;;  %201 = vst.msk [vmem:[#allocation2 + $0x166] sm:$0x3] %vm175_vm2, %v4680_v1 }
  0x1c   : > { %4318 = vmatmul.mubr.msk.f32.gmra.mrb[4].mxu0 %vm263_vm1, %v235_v7  ;;  %v260_v32 = vld [vmem:[%s4736_s19 + $0xf0] sm:$0xff]  ;;  %v261_v33 = vld [vmem:[%s4736_s19 + $0xf8] sm:$0xff]  ;;  %202 = vst.msk [vmem:[#allocation2 + $0x186] sm:$0x3] %vm175_vm2, %v4680_v1  ;;  %203 = vst.msk [vmem:[#allocation2 + $0x1a6] sm:$0x3] %vm175_vm2, %v4680_v1 }
  0x1d   : > { %4320 = vmatprep.mubr.msk.f32.mxu0 %vm263_vm1, %v236_v8  ;;  %204 = vst.msk [vmem:[#allocation2 + $0x1c6] sm:$0x3] %vm175_vm2, %v4680_v1  ;;  %205 = vst.msk [vmem:[#allocation2 + $0x1e6] sm:$0x3] %vm175_vm2, %v4680_v1  ;;  %v620_v41 = vld [vmem:[#allocation2 + $0x10] sm:$0xff]  ;;  %v619_v43 = vld [vmem:[#allocation2 + $0x8] sm:$0xff] }
  0x1e   : > { %206 = vst.msk [vmem:[#allocation2 + $0x206] sm:$0x3] %vm175_vm2, %v4680_v1  ;;  %207 = vst.msk [vmem:[#allocation2 + $0x226] sm:$0x3] %vm175_vm2, %v4680_v1  ;;  %v4903_v42 = vld [vmem:[#allocation2 + $0x30] sm:$0xff]  ;;  %v4907_v44 = vld [vmem:[#allocation2 + $0x28] sm:$0xff] }
  0x1f   : > { %212 = vst.msk [vmem:[#allocation2 + $0x58] sm:$0x3] %vm175_vm2, %v4680_v1  ;;  %213 = vst.msk [vmem:[#allocation2 + $0x78] sm:$0x3] %vm175_vm2, %v4680_v1  ;;  %v4912_v46 = vmax.f32 %v620_v41, %v4903_v42  ;;  %v4919_v49 = vmax.f32 %v619_v43, %v4907_v44 }
  0x20   : > { %4321 = vmatmul.mubr.msk.f32.gmra.mrb[6].mxu0 %vm263_vm1, %v237_v9  ;;  %214 = vst.msk [vmem:[#allocation2 + $0x98] sm:$0x3] %vm175_vm2, %v4680_v1  ;;  %215 = vst.msk [vmem:[#allocation2 + $0xb8] sm:$0x3] %vm175_vm2, %v4680_v1 }
  0x21   : > { %4323 = vmatprep.mubr.msk.f32.mxu0 %vm263_vm1, %v238_v10  ;;  %216 = vst.msk [vmem:[#allocation2 + $0xd8] sm:$0x3] %vm175_vm2, %v4680_v1  ;;  %217 = vst.msk [vmem:[#allocation2 + $0xf8] sm:$0x3] %vm175_vm2, %v4680_v1 }
  0x22   : > { %218 = vst.msk [vmem:[#allocation2 + $0x118] sm:$0x3] %vm175_vm2, %v4680_v1  ;;  %219 = vst.msk [vmem:[#allocation2 + $0x138] sm:$0x3] %vm175_vm2, %v4680_v1 }
  0x23   : > { %220 = vst.msk [vmem:[#allocation2 + $0x158] sm:$0x3] %vm175_vm2, %v4680_v1  ;;  %221 = vst.msk [vmem:[#allocation2 + $0x178] sm:$0x3] %vm175_vm2, %v4680_v1 }
  0x24   : > { %4324 = vmatmul.mubr.msk.f32.gmra.mrb[8].mxu0 %vm263_vm1, %v239_v11  ;;  %222 = vst.msk [vmem:[#allocation2 + $0x198] sm:$0x3] %vm175_vm2, %v4680_v1  ;;  %223 = vst.msk [vmem:[#allocation2 + $0x1b8] sm:$0x3] %vm175_vm2, %v4680_v1 }
  0x25   : > { %4326 = vmatprep.mubr.msk.f32.mxu0 %vm263_vm1, %v240_v12  ;;  %224 = vst.msk [vmem:[#allocation2 + $0x1d8] sm:$0x3] %vm175_vm2, %v4680_v1  ;;  %225 = vst.msk [vmem:[#allocation2 + $0x1f8] sm:$0x3] %vm175_vm2, %v4680_v1 }
  0x26   : > { %226 = vst.msk [vmem:[#allocation2 + $0x218] sm:$0x3] %vm175_vm2, %v4680_v1  ;;  %227 = vst.msk [vmem:[#allocation2 + $0x238] sm:$0x3] %vm175_vm2, %v4680_v1 }
  0x28   : > { %4327 = vmatmul.mubr.msk.f32.gmra.mrb[10].mxu0 %vm263_vm1, %v241_v13 }
  0x29   : > { %4329 = vmatprep.mubr.msk.f32.mxu0 %vm263_vm1, %v242_v14 }
  0x2c   : > { %4330 = vmatmul.mubr.msk.f32.gmra.mrb[12].mxu0 %vm263_vm1, %v243_v15 }
  0x2d   : > { %4332 = vmatprep.mubr.msk.f32.mxu0 %vm263_vm1, %v244_v16 }
  0x30   : > { %4333 = vmatmul.mubr.msk.f32.gmra.mrb[14].mxu0 %vm263_vm1, %v245_v17 }
  0x31   : > { %4335 = vmatprep.mubr.msk.f32.mxu0 %vm263_vm1, %v246_v18 }
  0x34   : > { %4336 = vmatmul.mubr.msk.f32.gmra.mrb[16].mxu0 %vm263_vm1, %v247_v19 }
  0x35   : > { %4338 = vmatprep.mubr.msk.f32.mxu0 %vm263_vm1, %v248_v20 }
  0x38   : > { %4339 = vmatmul.mubr.msk.f32.gmra.mrb[18].mxu0 %vm263_vm1, %v249_v21 }
  0x39   : > { %4341 = vmatprep.mubr.msk.f32.mxu0 %vm263_vm1, %v250_v22 }
  0x3c   : > { %4342 = vmatmul.mubr.msk.f32.gmra.mrb[20].mxu0 %vm263_vm1, %v251_v23 }
  0x3d   : > { %4344 = vmatprep.mubr.msk.f32.mxu0 %vm263_vm1, %v252_v24 }
  0x40   : > { %4345 = vmatmul.mubr.msk.f32.gmra.mrb[22].mxu0 %vm263_vm1, %v253_v25 }
  0x41   : > { %4347 = vmatprep.mubr.msk.f32.mxu0 %vm263_vm1, %v254_v26 }
  0x44   : > { %4348 = vmatmul.mubr.msk.f32.gmra.mrb[24].mxu0 %vm263_vm1, %v255_v27 }
  0x45   : > { %4350 = vmatprep.mubr.msk.f32.mxu0 %vm263_vm1, %v256_v28 }
  0x48   : > { %4351 = vmatmul.mubr.msk.f32.gmra.mrb[26].mxu0 %vm263_vm1, %v257_v29 }
  0x49   : > { %4353 = vmatprep.mubr.msk.f32.mxu0 %vm263_vm1, %v258_v30 }
  0x4c   : > { %4354 = vmatmul.mubr.msk.f32.gmra.mrb[28].mxu0 %vm263_vm1, %v259_v31 }
  0x4d   : > { %4356 = vmatprep.mubr.msk.f32.mxu0 %vm263_vm1, %v260_v32 }
  0x50   : > { %4357 = vmatmul.mubr.msk.f32.gmra.mrb[30].mxu0 %vm263_vm1, %v261_v33 }
  0xe7   : > { %v4889_v37 = vpop.f32.mrb[0].mxu0 }
  0xe8   : > { %588 = vst.msk [vmem:[#allocation2 + $0x50] sm:$0xff] %vm171_vm0, %v4889_v37  ;;  %v4893_v38 = vpop.f32.mrb[1].mxu0 }
  0xe9   : > { %587 = vst.msk [vmem:[#allocation2 + $0x48] sm:$0xff] %vm171_vm0, %v4893_v38 }
  0xeb   : > { %v4897_v39 = vpop.f32.mrb[2].mxu0 }
  0xec   : > { %590 = vst.msk [vmem:[#allocation2 + $0x70] sm:$0xff] %vm171_vm0, %v4897_v39  ;;  %v4901_v40 = vpop.f32.mrb[3].mxu0 }
  0xed   : > { %589 = vst.msk [vmem:[#allocation2 + $0x68] sm:$0xff] %vm171_vm0, %v4901_v40 }
  0xef   : > { %v4909_v45 = vpop.f32.mrb[4].mxu0  ;;  %v624_v48 = vld [vmem:[#allocation2 + $0x50] sm:$0xff] }
  0xf0   : > { %592 = vst.msk [vmem:[#allocation2 + $0x90] sm:$0xff] %vm171_vm0, %v4909_v45  ;;  %v4916_v47 = vpop.f32.mrb[5].mxu0  ;;  %v623_v50 = vld [vmem:[#allocation2 + $0x48] sm:$0xff]  ;;  %v749_v53 = vmax.f32 %v4912_v46, %v624_v48  ;;  %v687_v57 = vmax.f32 %v4903_v42, %v624_v48 }
  0xf1   : > { %591 = vst.msk [vmem:[#allocation2 + $0x88] sm:$0xff] %vm171_vm0, %v4916_v47  ;;  %v748_v56 = vmax.f32 %v4919_v49, %v623_v50  ;;  %v686_v59 = vmax.f32 %v4907_v44, %v623_v50 }
  0xf3   : > { %v626_v51 = vld [vmem:[#allocation2 + $0x70] sm:$0xff]  ;;  %v4923_v52 = vpop.f32.mrb[6].mxu0 }
  0xf4   : > { %v625_v54 = vld [vmem:[#allocation2 + $0x68] sm:$0xff]  ;;  %594 = vst.msk [vmem:[#allocation2 + $0xb0] sm:$0xff] %vm171_vm0, %v4923_v52  ;;  %v4928_v55 = vpop.f32.mrb[7].mxu0  ;;  %v814_v58 = vmax.f32 %v749_v53, %v626_v51  ;;  %v751_v63 = vmax.f32 %v687_v57, %v626_v51  ;;  %v689_v5 = vmax.f32 %v624_v48, %v626_v51 }
  0xf5   : > { %593 = vst.msk [vmem:[#allocation2 + $0xa8] sm:$0xff] %vm171_vm0, %v4928_v55  ;;  %v813_v60 = vmax.f32 %v748_v56, %v625_v54  ;;  %v750_v3 = vmax.f32 %v686_v59, %v625_v54  ;;  %v688_v7 = vmax.f32 %v623_v50, %v625_v54 }
  0xf7   : > { %v628_v61 = vld [vmem:[#allocation2 + $0x90] sm:$0xff]  ;;  %v4935_v62 = vpop.f32.mrb[8].mxu0 }
  0xf8   : > { %6294 = vst [vmem:[#allocation3_spill] sm:$0xff] %v4935_v62  ;;  %v879_v0 = vmax.f32 %v814_v58, %v628_v61  ;;  %v627_v1 = vld [vmem:[#allocation2 + $0x88] sm:$0xff]  ;;  %596 = vst.msk [vmem:[#allocation2 + $0xd0] sm:$0xff] %vm171_vm0, %v4935_v62  ;;  %v4939_v2 = vpop.f32.mrb[9].mxu0  ;;  %v816_v6 = vmax.f32 %v751_v63, %v628_v61  ;;  %v753_v11 = vmax.f32 %v689_v5, %v628_v61 }
  0xf9   : > { %v878_v4 = vmax.f32 %v813_v60, %v627_v1  ;;  %595 = vst.msk [vmem:[#allocation2 + $0xc8] sm:$0xff] %vm171_vm0, %v4939_v2  ;;  %v815_v8 = vmax.f32 %v750_v3, %v627_v1  ;;  %v752_v15 = vmax.f32 %v688_v7, %v627_v1  ;;  %v691_v17 = vmax.f32 %v626_v51, %v628_v61 }
  0xfa   : > { %911 = vst.msk [vmem:[#allocation2 + $0x50] sm:$0xff] %vm171_vm0, %v879_v0  ;;  %v690_v19 = vmax.f32 %v625_v54, %v627_v1 }
  0xfb   : > { %910 = vst.msk [vmem:[#allocation2 + $0x48] sm:$0xff] %vm171_vm0, %v878_v4  ;;  %v630_v9 = vld [vmem:[#allocation2 + $0xb0] sm:$0xff]  ;;  %v4945_v10 = vpop.f32.mrb[10].mxu0 }
  0xfc   : > { %6295 = vst [vmem:[#allocation4_spill] sm:$0xff] %v4945_v10  ;;  %v881_v12 = vmax.f32 %v816_v6, %v630_v9  ;;  %v4947_v13 = vld [vmem:[#allocation2 + $0xa8] sm:$0xff]  ;;  %598 = vst.msk [vmem:[#allocation2 + $0xf0] sm:$0xff] %vm171_vm0, %v4945_v10  ;;  %v4951_v14 = vpop.f32.mrb[11].mxu0  ;;  %v818_v18 = vmax.f32 %v753_v11, %v630_v9  ;;  %v755_v23 = vmax.f32 %v691_v17, %v630_v9 }
  0xfd   : > { %6296 = vst [vmem:[#allocation5_spill] sm:$0xff] %v4951_v14  ;;  %v880_v16 = vmax.f32 %v815_v8, %v4947_v13  ;;  %597 = vst.msk [vmem:[#allocation2 + $0xe8] sm:$0xff] %vm171_vm0, %v4951_v14  ;;  %v817_v20 = vmax.f32 %v752_v15, %v4947_v13  ;;  %v754_v27 = vmax.f32 %v690_v19, %v4947_v13 }
  0xfe   : > { %913 = vst.msk [vmem:[#allocation2 + $0x70] sm:$0xff] %vm171_vm0, %v881_v12  ;;  %v693_v29 = vmax.f32 %v628_v61, %v630_v9  ;;  %v692_v33 = vmax.f32 %v627_v1, %v4947_v13  ;;  %v5010_v12 = vld [vmem:[%s6285_s2 + $0xc] sm:$0xf] }
  0xff   : > { %912 = vst.msk [vmem:[#allocation2 + $0x68] sm:$0xff] %vm171_vm0, %v880_v16  ;;  %v4959_v21 = vld [vmem:[#allocation2 + $0xd0] sm:$0xff]  ;;  %v4961_v22 = vpop.f32.mrb[12].mxu0 }
 0x100   : > { %6297 = vst [vmem:[#allocation6_spill] sm:$0xff] %v4961_v22  ;;  %v883_v24 = vmax.f32 %v818_v18, %v4959_v21  ;;  %v4964_v25 = vld [vmem:[#allocation2 + $0xc8] sm:$0xff]  ;;  %600 = vst.msk [vmem:[#allocation2 + $0x110] sm:$0xff] %vm171_vm0, %v4961_v22  ;;  %v4968_v26 = vpop.f32.mrb[13].mxu0  ;;  %v820_v30 = vmax.f32 %v755_v23, %v4959_v21  ;;  %v757_v53 = vmax.f32 %v693_v29, %v4959_v21 }
 0x101   : > { %6298 = vst [vmem:[#allocation7_spill] sm:$0xff] %v4968_v26  ;;  %v882_v28 = vmax.f32 %v817_v20, %v4964_v25  ;;  %599 = vst.msk [vmem:[#allocation2 + $0x108] sm:$0xff] %vm171_vm0, %v4968_v26  ;;  %v819_v35 = vmax.f32 %v754_v27, %v4964_v25  ;;  %v695_v58 = vmax.f32 %v630_v9, %v4959_v21 }
 0x102   : > { %915 = vst.msk [vmem:[#allocation2 + $0x90] sm:$0xff] %vm171_vm0, %v883_v24  ;;  %v942_v31 = vld [vmem:[#allocation2 + $0x46] sm:$0xff]  ;;  %v943_v48 = vld [vmem:[#allocation2 + $0x4e] sm:$0xff]  ;;  %v756_v59 = vmax.f32 %v692_v33, %v4964_v25  ;;  %v694_v5 = vmax.f32 %v4947_v13, %v4964_v25 }
 0x103   : > { %v974_v32 = vld [vmem:[#allocation2 + $0x47] sm:$0xff]  ;;  %914 = vst.msk [vmem:[#allocation2 + $0x88] sm:$0xff] %vm171_vm0, %v882_v28  ;;  %v4979_v41 = vld [vmem:[#allocation2 + $0xf0] sm:$0xff]  ;;  %v4981_v43 = vpop.f32.mrb[14].mxu0 }
 0x104   : > { %6299 = vst [vmem:[#allocation8_spill] sm:$0xff] %v4981_v43  ;;  %v975_v50 = vld [vmem:[#allocation2 + $0x4f] sm:$0xff]  ;;  %v1006_v51 = vmax.f32 %v942_v31, %v974_v32  ;;  %v885_v54 = vmax.f32 %v820_v30, %v4979_v41  ;;  %602 = vst.msk [vmem:[#allocation2 + $0x130] sm:$0xff] %vm171_vm0, %v4981_v43  ;;  %v4989_v57 = vpop.f32.mrb[15].mxu0  ;;  %v822_v63 = vmax.f32 %v757_v53, %v4979_v41 }
 0x105   : > { %v4985_v56 = vld [vmem:[#allocation2 + $0xe8] sm:$0xff]  ;;  %6300 = vst [vmem:[#allocation9_spill] sm:$0xff] %v4989_v57  ;;  %601 = vst.msk [vmem:[#allocation2 + $0x128] sm:$0xff] %vm171_vm0, %v4989_v57  ;;  %v1007_v1 = vmax.f32 %v943_v48, %v975_v50  ;;  %v759_v6 = vmax.f32 %v695_v58, %v4979_v41  ;;  %v697_v15 = vmax.f32 %v4959_v21, %v4979_v41  ;;  %v1039_v28 = vld [vmem:[#allocation2 + $0x50] sm:$0xff] }
 0x106   : > { %v884_v60 = vmax.f32 %v819_v35, %v4985_v56  ;;  %v1038_v61 = vld [vmem:[#allocation2 + $0x48] sm:$0xff]  ;;  %917 = vst.msk [vmem:[#allocation2 + $0xb0] sm:$0xff] %vm171_vm0, %v885_v54  ;;  %v821_v7 = vmax.f32 %v756_v59, %v4985_v56  ;;  %v696_v13 = vmax.f32 %v4964_v25, %v4985_v56  ;;  %v758_v23 = vmax.f32 %v694_v5, %v4985_v56  ;;  %v1103_v58 = vld [vmem:[#allocation2 + $0x51] sm:$0xff] }
 0x107   : > { %v4998_v0 = vmax.f32 %v1006_v51, %v1038_v61  ;;  %v944_v3 = vld [vmem:[#allocation2 + $0x66] sm:$0xff]  ;;  %v5005_v8 = vld [vmem:[#allocation2 + $0x110] sm:$0xff]  ;;  %v4337_v9 = vpop.f32.mrb[16].mxu0  ;;  %v5030_v31 = vmax.f32 %v1007_v1, %v1039_v28 }
 0x108   : > { %v976_v4 = vld [vmem:[#allocation2 + $0x67] sm:$0xff]  ;;  %916 = vst.msk [vmem:[#allocation2 + $0xa8] sm:$0xff] %vm171_vm0, %v884_v60  ;;  %v887_v16 = vmax.f32 %v822_v63, %v5005_v8  ;;  %604 = vst.msk [vmem:[#allocation2 + $0x150] sm:$0xff] %vm171_vm0, %v4337_v9  ;;  %v506_v18 = vpop.f32.mrb[17].mxu0  ;;  %v977_v20 = vld [vmem:[#allocation2 + $0x6f] sm:$0xff]  ;;  %v699_v24 = vmax.f32 %v4979_v41, %v5005_v8  ;;  %v824_v27 = vmax.f32 %v759_v6, %v5005_v8 }
 0x109   : > { %v1008_v11 = vmax.f32 %v944_v3, %v976_v4  ;;  %v5017_v17 = vld [vmem:[#allocation2 + $0x108] sm:$0xff]  ;;  %603 = vst.msk [vmem:[#allocation2 + $0x148] sm:$0xff] %vm171_vm0, %v506_v18  ;;  %4435 = vmatprep.mubr.msk.f32.mxu1 %vm171_vm0, %v506_v18  ;;  %v761_v48 = vmax.f32 %v697_v15, %v5005_v8  ;;  %v1135_v15 = vmax.f32 %v5030_v31, %v1103_v58 }
 0x10a   : > { %v945_v19 = vld [vmem:[#allocation2 + $0x6e] sm:$0xff]  ;;  %v886_v21 = vmax.f32 %v821_v7, %v5017_v17  ;;  %919 = vst.msk [vmem:[#allocation2 + $0xd0] sm:$0xff] %vm171_vm0, %v887_v16  ;;  %4436 = vmatmul.mubr.msk.f32.vlgmr.msra.gmra.mrb[0].mxu1 %vm171_vm0, %v4337_v9  ;;  %v946_v35 = vld [vmem:[#allocation2 + $0x86] sm:$0xff]  ;;  %v698_v50 = vmax.f32 %v4985_v56, %v5017_v17  ;;  %v823_v51 = vmax.f32 %v758_v23, %v5017_v17 }
 0x10b   : > { %v1102_v25 = vld [vmem:[#allocation2 + $0x49] sm:$0xff]  ;;  %v1009_v33 = vmax.f32 %v945_v19, %v977_v20  ;;  %v4340_v54 = vpop.f32.mrb[18].mxu0  ;;  %4460 = vmatpush3.msk.msra.mxu1 %vm1328_vm3, %v4885_v36  ;;  %v760_v60 = vmax.f32 %v696_v13, %v5017_v17 }
 0x10c   : > { %v1040_v29 = vld [vmem:[#allocation2 + $0x68] sm:$0xff]  ;;  %v1134_v30 = vmax.f32 %v4998_v0, %v1102_v25  ;;  %918 = vst.msk [vmem:[#allocation2 + $0xc8] sm:$0xff] %vm171_vm0, %v886_v21  ;;  %v5039_v53 = vld [vmem:[#allocation2 + $0x130] sm:$0xff]  ;;  %606 = vst.msk [vmem:[#allocation2 + $0x170] sm:$0xff] %vm171_vm0, %v4340_v54  ;;  %v516_v0 = vpop.f32.mrb[19].mxu0  ;;  %4509 = vmatprep.subr.msk.mxu1 %vm1328_vm3, %v5010_v12 }
 0x10d   : > { %v5032_v32 = vmax.f32 %v1008_v11, %v1040_v29  ;;  %v978_v41 = vld [vmem:[#allocation2 + $0x87] sm:$0xff]  ;;  %v701_v61 = vmax.f32 %v5005_v8, %v5039_v53  ;;  %v889_v63 = vmax.f32 %v824_v27, %v5039_v53  ;;  %v979_v3 = vld [vmem:[#allocation2 + $0x8f] sm:$0xff]  ;;  %v5055_v36 = vmax.f32 %v699_v24, %v5039_v53  ;;  %605 = vst.msk [vmem:[#allocation2 + $0x168] sm:$0xff] %vm171_vm0, %v516_v0 }
 0x10e   : > { %v1010_v59 = vmax.f32 %v946_v35, %v978_v41  ;;  %v5047_v56 = vld [vmem:[#allocation2 + $0x128] sm:$0xff]  ;;  %v826_v4 = vmax.f32 %v761_v48, %v5039_v53  ;;  %4438 = vmatprep.mubr.msk.f32.mxu1 %vm171_vm0, %v516_v0  ;;  %v1041_v9 = vld [vmem:[#allocation2 + $0x70] sm:$0xff] }
 0x10f   : > { %v5050_v1 = vld [vmem:[#allocation2 + $0x8e] sm:$0xff]  ;;  %v5059_v5 = vmax.f32 %v698_v50, %v5047_v56  ;;  %v888_v6 = vmax.f32 %v823_v51, %v5047_v56  ;;  %921 = vst.msk [vmem:[#allocation2 + $0xf0] sm:$0xff] %vm171_vm0, %v889_v63  ;;  %4439 = vmatmul.mubr.msk.f32.gmra.mrb[2].mxu1 %vm171_vm0, %v4340_v54  ;;  %v5068_v16 = vmax.f32 %v1009_v33, %v1041_v9  ;;  %v948_v19 = vld [vmem:[#allocation2 + $0xa6] sm:$0xff]  ;;  %v4343_v21 = vpop.f32.mrb[20].mxu0 }
 0x110   : > { %v1166_v7 = vld [vmem:[#allocation2 + $0x4a] sm:$0xff]  ;;  %v825_v23 = vmax.f32 %v760_v60, %v5047_v56  ;;  %v1167_v27 = vld [vmem:[#allocation2 + $0x52] sm:$0xff]  ;;  %v1011_v29 = vmax.f32 %v5050_v1, %v979_v3  ;;  %v700_v31 = vmax.f32 %v5017_v17, %v5047_v56  ;;  %608 = vst.msk [vmem:[#allocation2 + $0x190] sm:$0xff] %vm171_vm0, %v4343_v21  ;;  %v526_v41 = vpop.f32.mrb[21].mxu0 }
 0x111   : > { %v1104_v8 = vld [vmem:[#allocation2 + $0x69] sm:$0xff]  ;;  %v1198_v11 = vmax.f32 %v1134_v30, %v1166_v7  ;;  %920 = vst.msk [vmem:[#allocation2 + $0xe8] sm:$0xff] %vm171_vm0, %v888_v6  ;;  %v5074_v25 = vld [vmem:[#allocation2 + $0x71] sm:$0xff]  ;;  %607 = vst.msk [vmem:[#allocation2 + $0x188] sm:$0xff] %vm171_vm0, %v526_v41  ;;  %4441 = vmatprep.mubr.msk.f32.mxu1 %vm171_vm0, %v526_v41  ;;  %v1199_v63 = vmax.f32 %v1135_v15, %v1167_v27 }
 0x112   : > { %v1136_v13 = vmax.f32 %v5032_v32, %v1104_v8  ;;  %v1042_v18 = vld [vmem:[#allocation2 + $0x88] sm:$0xff]  ;;  %v5072_v24 = vld [vmem:[#allocation2 + $0x150] sm:$0xff]  ;;  %v1137_v0 = vmax.f32 %v5068_v16, %v5074_v25 }
 0x113   : > { %v980_v20 = vld [vmem:[#allocation2 + $0xa7] sm:$0xff]  ;;  %v5076_v28 = vmax.f32 %v1010_v59, %v1042_v18  ;;  %v703_v32 = vmax.f32 %v5039_v53, %v5072_v24  ;;  %v891_v33 = vmax.f32 %v826_v4, %v5072_v24  ;;  %4361 = vmatprep.mubr.msk.f32.mxu0 %vm171_vm0, %v1198_v11  ;;  %1881 = vst.msk [vmem:[#allocation2 + $0x48] sm:$0xff] %vm171_vm0, %v1198_v11  ;;  %v5091_v50 = vld [vmem:[#allocation2 + $0xaf] sm:$0xff]  ;;  %v4346_v7 = vpop.f32.mrb[22].mxu0  ;;  %1882 = vst.msk [vmem:[#allocation2 + $0x50] sm:$0xff] %vm171_vm0, %v1199_v63 }
 0x114   : > { %v1012_v30 = vmax.f32 %v948_v19, %v980_v20  ;;  %v5084_v35 = vld [vmem:[#allocation2 + $0x148] sm:$0xff]  ;;  %v5094_v17 = vmax.f32 %v701_v61, %v5072_v24  ;;  %v828_v51 = vmax.f32 %v5055_v36, %v5072_v24  ;;  %v1043_v60 = vld [vmem:[#allocation2 + $0x90] sm:$0xff]  ;;  %4442 = vmatmul.mubr.msk.f32.gmra.mrb[4].mxu1 %vm171_vm0, %v4343_v21  ;;  %4362 = vmatmul.mubr.msk.f32.vlgmr.msra.gmra.mrb[32].mxu0 %vm171_vm0, %v1199_v63 }
 0x115   : > { %v5089_v48 = vld [vmem:[#allocation2 + $0xae] sm:$0xff]  ;;  %v827_v53 = vmax.f32 %v5059_v5, %v5084_v35  ;;  %v890_v54 = vmax.f32 %v825_v23, %v5084_v35  ;;  %923 = vst.msk [vmem:[#allocation2 + $0x110] sm:$0xff] %vm171_vm0, %v891_v33  ;;  %v950_v36 = vld [vmem:[#allocation2 + $0xc6] sm:$0xff]  ;;  %v5111_v8 = vmax.f32 %v1011_v29, %v1043_v60  ;;  %v702_v16 = vmax.f32 %v5047_v56, %v5084_v35  ;;  %v536_v23 = vpop.f32.mrb[23].mxu0 }
 0x116   : > { %v1168_v58 = vld [vmem:[#allocation2 + $0x6a] sm:$0xff]  ;;  %v1169_v6 = vld [vmem:[#allocation2 + $0x72] sm:$0xff]  ;;  %v1013_v15 = vmax.f32 %v5089_v48, %v5091_v50  ;;  %v764_v18 = vmax.f32 %v700_v31, %v5084_v35  ;;  %610 = vst.msk [vmem:[#allocation2 + $0x1b0] sm:$0xff] %vm171_vm0, %v4346_v7  ;;  %609 = vst.msk [vmem:[#allocation2 + $0x1a8] sm:$0xff] %vm171_vm0, %v536_v23  ;;  %4444 = vmatprep.mubr.msk.f32.mxu1 %vm171_vm0, %v536_v23  ;;  %4410 = vmatpush3.msk.msra.mxu0 %vm1328_vm3, %v4869_v34 }
 0x117   : > { %v1106_v59 = vld [vmem:[#allocation2 + $0x89] sm:$0xff]  ;;  %v1200_v61 = vmax.f32 %v1136_v13, %v1168_v58  ;;  %922 = vst.msk [vmem:[#allocation2 + $0x108] sm:$0xff] %vm171_vm0, %v890_v54  ;;  %v5113_v9 = vld [vmem:[#allocation2 + $0x91] sm:$0xff]  ;;  %v1201_v41 = vmax.f32 %v1137_v0, %v1169_v6  ;;  %v4349_v58 = vpop.f32.mrb[24].mxu0 }
 0x118   : > { %v1138_v1 = vmax.f32 %v5076_v28, %v1106_v59  ;;  %v1044_v3 = vld [vmem:[#allocation2 + $0xa8] sm:$0xff]  ;;  %v5109_v5 = vld [vmem:[#allocation2 + $0x170] sm:$0xff]  ;;  %4445 = vmatmul.mubr.msk.f32.gmra.mrb[6].mxu1 %vm171_vm0, %v4346_v7  ;;  %612 = vst.msk [vmem:[#allocation2 + $0x1d0] sm:$0xff] %vm171_vm0, %v4349_v58  ;;  %v546_v6 = vpop.f32.mrb[25].mxu0 }
 0x119   : > { %v982_v4 = vld [vmem:[#allocation2 + $0xc7] sm:$0xff]  ;;  %v5115_v11 = vmax.f32 %v1012_v30, %v1044_v3  ;;  %v893_v19 = vmax.f32 %v828_v51, %v5109_v5  ;;  %1883 = vst.msk [vmem:[#allocation2 + $0x68] sm:$0xff] %vm171_vm0, %v1200_v61  ;;  %v5131_v21 = vld [vmem:[#allocation2 + $0xcf] sm:$0xff]  ;;  %v705_v56 = vmax.f32 %v5072_v24, %v5109_v5  ;;  %v5136_v25 = vmax.f32 %v703_v32, %v5109_v5 }
 0x11a   : > { %v1014_v13 = vmax.f32 %v950_v36, %v982_v4  ;;  %v5123_v20 = vld [vmem:[#allocation2 + $0x168] sm:$0xff]  ;;  %v830_v28 = vmax.f32 %v5094_v17, %v5109_v5  ;;  %4364 = vmatprep.mubr.msk.f32.mxu0 %vm171_vm0, %v1200_v61  ;;  %v1045_v33 = vld [vmem:[#allocation2 + $0xb0] sm:$0xff]  ;;  %v1139_v24 = vmax.f32 %v5111_v8, %v5113_v9  ;;  %1884 = vst.msk [vmem:[#allocation2 + $0x70] sm:$0xff] %vm171_vm0, %v1201_v41  ;;  %611 = vst.msk [vmem:[#allocation2 + $0x1c8] sm:$0xff] %vm171_vm0, %v546_v6 }
 0x11b   : > { %v5129_v27 = vld [vmem:[#allocation2 + $0xce] sm:$0xff]  ;;  %v892_v29 = vmax.f32 %v827_v53, %v5123_v20  ;;  %925 = vst.msk [vmem:[#allocation2 + $0x130] sm:$0xff] %vm171_vm0, %v893_v19  ;;  %v952_v17 = vld [vmem:[#allocation2 + $0xe6] sm:$0xff]  ;;  %v5154_v59 = vmax.f32 %v1013_v15, %v1045_v33  ;;  %v766_v3 = vmax.f32 %v702_v16, %v5123_v20  ;;  %v829_v36 = vmax.f32 %v764_v18, %v5123_v20 }
 0x11c   : > { %v1170_v30 = vld [vmem:[#allocation2 + $0x8a] sm:$0xff]  ;;  %v1015_v63 = vmax.f32 %v5129_v27, %v5131_v21  ;;  %4365 = vmatmul.mubr.msk.f32.gmra.mrb[34].mxu0 %vm171_vm0, %v1201_v41  ;;  %4447 = vmatprep.mubr.msk.f32.mxu1 %vm171_vm0, %v546_v6 }
 0x11d   : > { %v1108_v31 = vld [vmem:[#allocation2 + $0xa9] sm:$0xff]  ;;  %v1202_v48 = vmax.f32 %v1138_v1, %v1170_v30  ;;  %924 = vst.msk [vmem:[#allocation2 + $0x128] sm:$0xff] %vm171_vm0, %v892_v29  ;;  %v704_v1 = vmax.f32 %v5084_v35, %v5123_v20  ;;  %4448 = vmatmul.mubr.msk.f32.gmra.mrb[8].mxu1 %vm171_vm0, %v4349_v58 }
 0x11e   : > { %v1140_v32 = vmax.f32 %v5115_v11, %v1108_v31  ;;  %v1046_v50 = vld [vmem:[#allocation2 + $0xc8] sm:$0xff]  ;;  %v5151_v54 = vld [vmem:[#allocation2 + $0x190] sm:$0xff] }
 0x11f   : > { %v984_v51 = vld [vmem:[#allocation2 + $0xe7] sm:$0xff]  ;;  %v5156_v60 = vmax.f32 %v1014_v13, %v1046_v50  ;;  %1885 = vst.msk [vmem:[#allocation2 + $0x88] sm:$0xff] %vm171_vm0, %v1202_v48  ;;  %v707_v35 = vmax.f32 %v5109_v5, %v5151_v54  ;;  %v5177_v8 = vmax.f32 %v705_v56, %v5151_v54  ;;  %v895_v9 = vmax.f32 %v830_v28, %v5151_v54  ;;  %v1171_v11 = vld [vmem:[#allocation2 + $0x92] sm:$0xff] }
 0x120   : > { %v5148_v53 = vld [vmem:[#allocation2 + $0x48] sm:$0xff]  ;;  %v1016_v61 = vmax.f32 %v952_v17, %v984_v51  ;;  %4367 = vmatprep.mubr.msk.f32.mxu0 %vm171_vm0, %v1202_v48  ;;  %v1109_v13 = vld [vmem:[#allocation2 + $0xb1] sm:$0xff]  ;;  %v832_v16 = vmax.f32 %v5136_v25, %v5151_v54  ;;  %v1203_v19 = vmax.f32 %v1139_v24, %v1171_v11  ;;  %v4352_v25 = vpop.f32.mrb[26].mxu0 }
 0x121   : > { %v5166_v4 = vld [vmem:[#allocation2 + $0x188] sm:$0xff]  ;;  %v2041_v7 = vmax.f32 %v4919_v49, %v5148_v53  ;;  %v1047_v27 = vld [vmem:[#allocation2 + $0xd0] sm:$0xff]  ;;  %927 = vst.msk [vmem:[#allocation2 + $0x150] sm:$0xff] %vm171_vm0, %v895_v9  ;;  %v1141_v30 = vmax.f32 %v5154_v59, %v1109_v13  ;;  %614 = vst.msk [vmem:[#allocation2 + $0x1f0] sm:$0xff] %vm171_vm0, %v4352_v25 }
 0x122   : > { %v1172_v15 = vld [vmem:[#allocation2 + $0xaa] sm:$0xff]  ;;  %v894_v18 = vmax.f32 %v829_v36, %v5166_v4  ;;  %v5196_v33 = vmax.f32 %v1015_v63, %v1047_v27  ;;  %v706_v48 = vmax.f32 %v5123_v20, %v5166_v4  ;;  %v768_v24 = vmax.f32 %v704_v1, %v5166_v4  ;;  %4368 = vmatmul.mubr.msk.f32.gmra.mrb[36].mxu0 %vm171_vm0, %v1203_v19  ;;  %v556_v20 = vpop.f32.mrb[27].mxu0 }
 0x123   : > { %v1204_v23 = vmax.f32 %v1140_v32, %v1172_v15  ;;  %v1110_v5 = vld [vmem:[#allocation2 + $0xc9] sm:$0xff]  ;;  %v831_v32 = vmax.f32 %v766_v3, %v5166_v4  ;;  %1886 = vst.msk [vmem:[#allocation2 + $0x90] sm:$0xff] %vm171_vm0, %v1203_v19  ;;  %613 = vst.msk [vmem:[#allocation2 + $0x1e8] sm:$0xff] %vm171_vm0, %v556_v20  ;;  %v1111_v9 = vld [vmem:[#allocation2 + $0xd1] sm:$0xff]  ;;  %4450 = vmatprep.mubr.msk.f32.mxu1 %vm171_vm0, %v556_v20 }
 0x124   : > { %v1048_v21 = vld [vmem:[#allocation2 + $0xe8] sm:$0xff]  ;;  %v5187_v56 = vld [vmem:[#allocation2 + $0x50] sm:$0xff]  ;;  %v1142_v31 = vmax.f32 %v5156_v60, %v1110_v5  ;;  %926 = vst.msk [vmem:[#allocation2 + $0x148] sm:$0xff] %vm171_vm0, %v894_v18  ;;  %4451 = vmatmul.mubr.msk.f32.gmra.mrb[10].mxu1 %vm171_vm0, %v4352_v25 }
 0x125   : > { %v5189_v28 = vld [vmem:[#allocation2 + $0x68] sm:$0xff]  ;;  %v5191_v29 = vld [vmem:[#allocation2 + $0x1b0] sm:$0xff]  ;;  %v5198_v41 = vmax.f32 %v1016_v61, %v1048_v21  ;;  %v1980_v50 = vmax.f32 %v4903_v42, %v5187_v56  ;;  %1887 = vst.msk [vmem:[#allocation2 + $0xa8] sm:$0xff] %vm171_vm0, %v1204_v23  ;;  %v2042_v59 = vmax.f32 %v4912_v46, %v5187_v56  ;;  %4370 = vmatprep.mubr.msk.f32.mxu0 %vm171_vm0, %v1204_v23 }
 0x126   : > { %v5207_v17 = vld [vmem:[#allocation2 + $0x1a8] sm:$0xff]  ;;  %v2105_v60 = vmax.f32 %v2041_v7, %v5189_v28  ;;  %v709_v42 = vmax.f32 %v5151_v54, %v5191_v29  ;;  %v897_v63 = vmax.f32 %v832_v16, %v5191_v29  ;;  %v1173_v61 = vld [vmem:[#allocation2 + $0xb2] sm:$0xff]  ;;  %v5222_v1 = vmax.f32 %v707_v35, %v5191_v29 }
 0x127   : > { %v953_v51 = vld [vmem:[#allocation2 + $0xee] sm:$0xff]  ;;  %v834_v3 = vmax.f32 %v5177_v8, %v5191_v29  ;;  %v896_v36 = vmax.f32 %v831_v32, %v5207_v17  ;;  %v1205_v6 = vmax.f32 %v1141_v30, %v1173_v61  ;;  %v1143_v16 = vmax.f32 %v5196_v33, %v1111_v9  ;;  %v4355_v8 = vpop.f32.mrb[28].mxu0 }
 0x128   : > { %v985_v58 = vld [vmem:[#allocation2 + $0xef] sm:$0xff]  ;;  %929 = vst.msk [vmem:[#allocation2 + $0x170] sm:$0xff] %vm171_vm0, %v897_v63  ;;  %v708_v23 = vmax.f32 %v5166_v4, %v5207_v17  ;;  %v770_v5 = vmax.f32 %v706_v48, %v5207_v17  ;;  %v833_v27 = vmax.f32 %v768_v24, %v5207_v17  ;;  %616 = vst.msk [vmem:[#allocation2 + $0x210] sm:$0xff] %vm171_vm0, %v4355_v8  ;;  %v566_v25 = vpop.f32.mrb[29].mxu0  ;;  %v986_v33 = vld [vmem:[#allocation2 + $0x107] sm:$0xff] }
 0x129   : > { %v1174_v7 = vld [vmem:[#allocation2 + $0xca] sm:$0xff]  ;;  %v1017_v19 = vmax.f32 %v953_v51, %v985_v58  ;;  %928 = vst.msk [vmem:[#allocation2 + $0x168] sm:$0xff] %vm171_vm0, %v896_v36  ;;  %4371 = vmatmul.mubr.msk.f32.gmra.mrb[38].mxu0 %vm171_vm0, %v1205_v6  ;;  %1888 = vst.msk [vmem:[#allocation2 + $0xb0] sm:$0xff] %vm171_vm0, %v1205_v6  ;;  %v1175_v32 = vld [vmem:[#allocation2 + $0xd2] sm:$0xff]  ;;  %4453 = vmatprep.mubr.msk.f32.mxu1 %vm171_vm0, %v566_v25  ;;  %v4358_v6 = vpop.f32.mrb[30].mxu0 }
 0x12a   : > { %v1112_v54 = vld [vmem:[#allocation2 + $0xe9] sm:$0xff]  ;;  %v1206_v35 = vmax.f32 %v1142_v31, %v1174_v7  ;;  %615 = vst.msk [vmem:[#allocation2 + $0x208] sm:$0xff] %vm171_vm0, %v566_v25  ;;  %v1207_v58 = vmax.f32 %v1143_v16, %v1175_v32  ;;  %4454 = vmatmul.mubr.msk.f32.gmra.mrb[12].mxu1 %vm171_vm0, %v4355_v8  ;;  %618 = vst.msk [vmem:[#allocation2 + $0x230] sm:$0xff] %vm171_vm0, %v4358_v6  ;;  %v576_v16 = vpop.f32.mrb[31].mxu0 }
 0x12b   : > { %v5228_v11 = vld [vmem:[#allocation2 + $0x70] sm:$0xff]  ;;  %v5231_v15 = vld [vmem:[#allocation2 + $0x88] sm:$0xff]  ;;  %v1144_v18 = vmax.f32 %v5198_v41, %v1112_v54  ;;  %617 = vst.msk [vmem:[#allocation2 + $0x228] sm:$0xff] %vm171_vm0, %v576_v16  ;;  %4456 = vmatprep.mubr.msk.f32.mxu1 %vm171_vm0, %v576_v16 }
 0x12c   : > { %v5233_v13 = vld [vmem:[#allocation2 + $0x1d0] sm:$0xff]  ;;  %v2169_v21 = vmax.f32 %v2105_v60, %v5231_v15  ;;  %v5244_v30 = vld [vmem:[#allocation2 + $0x1c8] sm:$0xff]  ;;  %v1982_v4 = vmax.f32 %v5187_v56, %v5228_v11  ;;  %v2044_v41 = vmax.f32 %v1980_v50, %v5228_v11  ;;  %v2106_v48 = vmax.f32 %v2042_v59, %v5228_v11  ;;  %4373 = vmatprep.mubr.msk.f32.mxu0 %vm171_vm0, %v1206_v35 }
 0x12d   : > { %v954_v31 = vld [vmem:[#allocation2 + $0x106] sm:$0xff]  ;;  %v899_v24 = vmax.f32 %v834_v3, %v5233_v13  ;;  %1889 = vst.msk [vmem:[#allocation2 + $0xc8] sm:$0xff] %vm171_vm0, %v1206_v35  ;;  %v773_v51 = vmax.f32 %v709_v42, %v5233_v13  ;;  %v898_v56 = vmax.f32 %v833_v27, %v5244_v30  ;;  %v1049_v60 = vld [vmem:[#allocation2 + $0xf0] sm:$0xff]  ;;  %v836_v63 = vmax.f32 %v5222_v1, %v5233_v13 }
 0x12e   : > { %v1176_v20 = vld [vmem:[#allocation2 + $0xea] sm:$0xff]  ;;  %2201 = vst.msk [vmem:[#allocation2 + $0x48] sm:$0xff] %vm171_vm0, %v2169_v21  ;;  %v772_v61 = vmax.f32 %v708_v23, %v5244_v30  ;;  %v1081_v42 = vmax.f32 %v1017_v19, %v1049_v60  ;;  %v1018_v7 = vmax.f32 %v954_v31, %v986_v33  ;;  %v835_v54 = vmax.f32 %v770_v5, %v5244_v30 }
 0x12f   : > { %v1208_v50 = vmax.f32 %v1144_v18, %v1176_v20  ;;  %v5261_v59 = vld [vmem:[#allocation2 + $0x90] sm:$0xff]  ;;  %931 = vst.msk [vmem:[#allocation2 + $0x190] sm:$0xff] %vm171_vm0, %v899_v24  ;;  %v5267_v3 = vld [vmem:[#allocation2 + $0xa8] sm:$0xff]  ;;  %930 = vst.msk [vmem:[#allocation2 + $0x188] sm:$0xff] %vm171_vm0, %v898_v56  ;;  %4374 = vmatmul.mubr.msk.f32.gmra.mrb[40].mxu0 %vm171_vm0, %v1207_v58  ;;  %v711_v35 = vmax.f32 %v5191_v29, %v5233_v13  ;;  %v710_v8 = vmax.f32 %v5207_v17, %v5244_v30 }
 0x130   : > { %v5269_v36 = vld [vmem:[#allocation2 + $0x1f0] sm:$0xff]  ;;  %v2170_v9 = vmax.f32 %v2106_v48, %v5261_v59  ;;  %v5275_v1 = vld [vmem:[#allocation2 + $0x1e8] sm:$0xff]  ;;  %1890 = vst.msk [vmem:[#allocation2 + $0xd0] sm:$0xff] %vm171_vm0, %v1207_v58  ;;  %v1984_v18 = vmax.f32 %v5228_v11, %v5261_v59  ;;  %v2046_v19 = vmax.f32 %v1982_v4, %v5261_v59  ;;  %v2108_v23 = vmax.f32 %v2044_v41, %v5261_v59 }
 0x131   : > { %1891 = vst.msk [vmem:[#allocation2 + $0xe8] sm:$0xff] %vm171_vm0, %v1208_v50  ;;  %v901_v5 = vmax.f32 %v836_v63, %v5269_v36  ;;  %4376 = vmatprep.mubr.msk.f32.mxu0 %vm171_vm0, %v1208_v50  ;;  %v1113_v27 = vld [vmem:[#allocation2 + $0xf1] sm:$0xff]  ;;  %v1985_v17 = vmax.f32 %v5231_v15, %v5267_v3  ;;  %v838_v11 = vmax.f32 %v773_v51, %v5269_v36  ;;  %v1050_v33 = vld [vmem:[#allocation2 + $0x108] sm:$0xff] }
 0x132   : > { %v5292_v21 = vld [vmem:[#allocation2 + $0x10e] sm:$0xff]  ;;  %2202 = vst.msk [vmem:[#allocation2 + $0x50] sm:$0xff] %vm171_vm0, %v2170_v9  ;;  %v900_v25 = vmax.f32 %v835_v54, %v5275_v1  ;;  %v1145_v31 = vmax.f32 %v1081_v42, %v1113_v27  ;;  %v837_v41 = vmax.f32 %v772_v61, %v5275_v1  ;;  %v713_v24 = vmax.f32 %v5233_v13, %v5269_v36 }
 0x133   : > { %v5294_v29 = vld [vmem:[#allocation2 + $0x10f] sm:$0xff]  ;;  %v775_v32 = vmax.f32 %v711_v35, %v5269_v36  ;;  %933 = vst.msk [vmem:[#allocation2 + $0x1b0] sm:$0xff] %vm171_vm0, %v901_v5  ;;  %v1082_v20 = vmax.f32 %v1018_v7, %v1050_v33  ;;  %4457 = vmatmul.mubr.msk.f32.gmra.mrb[14].mxu1 %vm171_vm0, %v4358_v6  ;;  %v712_v50 = vmax.f32 %v5244_v30, %v5275_v1 }
 0x134   : > { %v5302_v4 = vld [vmem:[#allocation2 + $0xb0] sm:$0xff]  ;;  %v5311_v56 = vld [vmem:[#allocation2 + $0xc8] sm:$0xff]  ;;  %v774_v60 = vmax.f32 %v710_v8, %v5275_v1  ;;  %932 = vst.msk [vmem:[#allocation2 + $0x1a8] sm:$0xff] %vm171_vm0, %v900_v25  ;;  %v1019_v13 = vmax.f32 %v5292_v21, %v5294_v29 }
 0x135   : > { %v871_v48 = vld [vmem:[#allocation2 + $0x210] sm:$0xff]  ;;  %v2172_v51 = vmax.f32 %v2108_v23, %v5302_v4  ;;  %v870_v58 = vld [vmem:[#allocation2 + $0x208] sm:$0xff]  ;;  %v1986_v63 = vmax.f32 %v5261_v59, %v5302_v4  ;;  %v5324_v61 = vmax.f32 %v1984_v18, %v5302_v4  ;;  %v2110_v30 = vmax.f32 %v2046_v19, %v5302_v4 }
 0x136   : > { %v903_v42 = vmax.f32 %v838_v11, %v871_v48  ;;  %v902_v6 = vmax.f32 %v837_v41, %v870_v58  ;;  %v1177_v7 = vld [vmem:[#allocation2 + $0xf2] sm:$0xff]  ;;  %v5331_v54 = vmax.f32 %v1985_v17, %v5311_v56  ;;  %v1114_v16 = vld [vmem:[#allocation2 + $0x109] sm:$0xff]  ;;  %v715_v8 = vmax.f32 %v5269_v36, %v871_v48 }
 0x137   : > { %2204 = vst.msk [vmem:[#allocation2 + $0x70] sm:$0xff] %vm171_vm0, %v2172_v51  ;;  %v1209_v34 = vmax.f32 %v1145_v31, %v1177_v7  ;;  %v812_v35 = vld [vmem:[#allocation2 + $0x250] sm:$0xff]  ;;  %v777_v23 = vmax.f32 %v713_v24, %v871_v48  ;;  %v840_v5 = vmax.f32 %v775_v32, %v871_v48  ;;  %v1146_v19 = vmax.f32 %v1082_v20, %v1114_v16  ;;  %v811_v27 = vld [vmem:[#allocation2 + $0x248] sm:$0xff] }
 0x138   : > { %v5333_v59 = vld [vmem:[#allocation2 + $0xd0] sm:$0xff]  ;;  %935 = vst.msk [vmem:[#allocation2 + $0x1d0] sm:$0xff] %vm171_vm0, %v903_v42  ;;  %934 = vst.msk [vmem:[#allocation2 + $0x1c8] sm:$0xff] %vm171_vm0, %v902_v6  ;;  %v714_v11 = vmax.f32 %v5275_v1, %v870_v58  ;;  %v746_v36 = vld [vmem:[#allocation2 + $0x228] sm:$0xff]  ;;  %v776_v25 = vmax.f32 %v712_v50, %v870_v58  ;;  %v839_v31 = vmax.f32 %v774_v60, %v870_v58 }
 0x139   : > { %v747_v18 = vld [vmem:[#allocation2 + $0x230] sm:$0xff]  ;;  %v2174_v21 = vmax.f32 %v2110_v30, %v5333_v59  ;;  %4377 = vmatmul.mubr.msk.f32.gmra.mrb[42].mxu0 %vm171_vm0, %v1209_v34  ;;  %1892 = vst.msk [vmem:[#allocation2 + $0xf0] sm:$0xff] %vm171_vm0, %v1209_v34  ;;  %v956_v41 = vld [vmem:[#allocation2 + $0x126] sm:$0xff]  ;;  %v5345_v24 = vmax.f32 %v1986_v63, %v5333_v59  ;;  %v2112_v32 = vmax.f32 %v5324_v61, %v5333_v59 }
 0x13a   : > { %v877_v29 = vld [vmem:[#allocation2 + $0x270] sm:$0xff]  ;;  %v779_v20 = vmax.f32 %v715_v8, %v747_v18  ;;  %v876_v51 = vld [vmem:[#allocation2 + $0x268] sm:$0xff]  ;;  %v842_v1 = vmax.f32 %v777_v23, %v747_v18  ;;  %v905_v58 = vmax.f32 %v840_v5, %v747_v18  ;;  %v778_v60 = vmax.f32 %v714_v11, %v746_v36 }
 0x13b   : > { %v1178_v17 = vld [vmem:[#allocation2 + $0x10a] sm:$0xff]  ;;  %2206 = vst.msk [vmem:[#allocation2 + $0x90] sm:$0xff] %vm171_vm0, %v2174_v21  ;;  %v841_v63 = vmax.f32 %v776_v25, %v746_v36  ;;  %v904_v48 = vmax.f32 %v839_v31, %v746_v36  ;;  %v1179_v23 = vld [vmem:[#allocation2 + $0x112] sm:$0xff] }
 0x13c   : > { %v1051_v33 = vld [vmem:[#allocation2 + $0x110] sm:$0xff]  ;;  %v988_v42 = vld [vmem:[#allocation2 + $0x127] sm:$0xff]  ;;  %v1210_v50 = vmax.f32 %v1146_v19, %v1178_v17  ;;  %v844_v0 = vmax.f32 %v779_v20, %v812_v35  ;;  %v907_v57 = vmax.f32 %v842_v1, %v812_v35  ;;  %937 = vst.msk [vmem:[#allocation2 + $0x1f0] sm:$0xff] %vm171_vm0, %v905_v58  ;;  %v843_v21 = vmax.f32 %v778_v60, %v811_v27 }
 0x13d   : > { %v957_v6 = vld [vmem:[#allocation2 + $0x12e] sm:$0xff]  ;;  %v958_v34 = vld [vmem:[#allocation2 + $0x146] sm:$0xff]  ;;  %v1083_v9 = vmax.f32 %v1019_v13, %v1051_v33  ;;  %v1020_v18 = vmax.f32 %v956_v41, %v988_v42  ;;  %v906_v36 = vmax.f32 %v841_v63, %v811_v27  ;;  %936 = vst.msk [vmem:[#allocation2 + $0x1e8] sm:$0xff] %vm171_vm0, %v904_v48 }
 0x13e   : > { %v989_v7 = vld [vmem:[#allocation2 + $0x12f] sm:$0xff]  ;;  %v990_v16 = vld [vmem:[#allocation2 + $0x147] sm:$0xff]  ;;  %4379 = vmatprep.mubr.msk.f32.mxu0 %vm171_vm0, %v1210_v50  ;;  %1893 = vst.msk [vmem:[#allocation2 + $0x108] sm:$0xff] %vm171_vm0, %v1210_v50  ;;  %v909_v13 = vmax.f32 %v844_v0, %v877_v29  ;;  %939 = vst.msk [vmem:[#allocation2 + $0x210] sm:$0xff] %vm171_vm0, %v907_v57  ;;  %v908_v1 = vmax.f32 %v843_v21, %v876_v51 }
 0x13f   : > { %v1115_v30 = vld [vmem:[#allocation2 + $0x111] sm:$0xff]  ;;  %v2233_v8 = vld [vmem:[#allocation2 + $0x46] sm:$0xff]  ;;  %v1021_v5 = vmax.f32 %v957_v6, %v989_v7  ;;  %v1022_v20 = vmax.f32 %v958_v34, %v990_v16  ;;  %938 = vst.msk [vmem:[#allocation2 + $0x208] sm:$0xff] %vm171_vm0, %v906_v36 }
 0x140   : > { %v959_v43 = vld [vmem:[#allocation2 + $0x14e] sm:$0xff]  ;;  %v1147_v35 = vmax.f32 %v1083_v9, %v1115_v30  ;;  %v960_v7 = vld [vmem:[#allocation2 + $0x166] sm:$0xff]  ;;  %941 = vst.msk [vmem:[#allocation2 + $0x230] sm:$0xff] %vm171_vm0, %v909_v13  ;;  %940 = vst.msk [vmem:[#allocation2 + $0x228] sm:$0xff] %vm171_vm0, %v908_v1 }
 0x141   : > { %v991_v61 = vld [vmem:[#allocation2 + $0x14f] sm:$0xff]  ;;  %v2265_v17 = vld [vmem:[#allocation2 + $0x47] sm:$0xff] }
 0x142   : > { %v2234_v19 = vld [vmem:[#allocation2 + $0x4e] sm:$0xff]  ;;  %v1023_v6 = vmax.f32 %v959_v43, %v991_v61  ;;  %v1211_v0 = vmax.f32 %v1147_v35, %v1179_v23  ;;  %v2297_v27 = vmax.f32 %v2233_v8, %v2265_v17  ;;  %v6301_v43 = vmax.f32 %v5267_v3, %v5311_v56 }
 0x143   : > { %v2266_v11 = vld [vmem:[#allocation2 + $0x4f] sm:$0xff]  ;;  %v992_v60 = vld [vmem:[#allocation2 + $0x167] sm:$0xff] }
 0x144   : > { %v5353_v25 = vld [vmem:[#allocation2 + $0xe8] sm:$0xff]  ;;  %v1053_v33 = vld [vmem:[#allocation2 + $0x130] sm:$0xff]  ;;  %v2298_v29 = vmax.f32 %v2234_v19, %v2266_v11  ;;  %4380 = vmatmul.mubr.msk.f32.gmra.mrb[44].mxu0 %vm171_vm0, %v1211_v0  ;;  %1894 = vst.msk [vmem:[#allocation2 + $0x110] sm:$0xff] %vm171_vm0, %v1211_v0  ;;  %v6302_v0 = vmax.f32 %v5302_v4, %v5333_v59 }
 0x145   : > { %v1052_v31 = vld [vmem:[#allocation2 + $0x128] sm:$0xff]  ;;  %v1085_v41 = vmax.f32 %v1021_v5, %v1053_v33  ;;  %v5357_v22 = vld [vmem:[#allocation2 + $0xf0] sm:$0xff]  ;;  %v1989_v51 = vmax.f32 %v5311_v56, %v5353_v25  ;;  %v5367_v30 = vmax.f32 %v6301_v43, %v5353_v25  ;;  %v2113_v34 = vmax.f32 %v5331_v54, %v5353_v25 }
 0x146   : > { %v1084_v58 = vmax.f32 %v1020_v18, %v1052_v31  ;;  %v1116_v50 = vld [vmem:[#allocation2 + $0x129] sm:$0xff]  ;;  %v2176_v16 = vmax.f32 %v2112_v32, %v5357_v22  ;;  %v1117_v63 = vld [vmem:[#allocation2 + $0x131] sm:$0xff]  ;;  %v1024_v31 = vmax.f32 %v960_v7, %v992_v60  ;;  %v2114_v7 = vmax.f32 %v5345_v24, %v5357_v22 }
 0x147   : > { %v1054_v42 = vld [vmem:[#allocation2 + $0x148] sm:$0xff]  ;;  %v1055_v8 = vld [vmem:[#allocation2 + $0x150] sm:$0xff]  ;;  %v1149_v18 = vmax.f32 %v1085_v41, %v1117_v63 }
 0x148   : > { %v1086_v9 = vmax.f32 %v1022_v20, %v1054_v42  ;;  %v961_v48 = vld [vmem:[#allocation2 + $0x16e] sm:$0xff]  ;;  %v1148_v21 = vmax.f32 %v1084_v58, %v1116_v50  ;;  %v1087_v19 = vmax.f32 %v1023_v6, %v1055_v8  ;;  %2208 = vst.msk [vmem:[#allocation2 + $0xb0] sm:$0xff] %vm171_vm0, %v2176_v16  ;;  %v1990_v6 = vmax.f32 %v5333_v59, %v5357_v22  ;;  %v962_v63 = vld [vmem:[#allocation2 + $0x186] sm:$0xff] }
 0x149   : > { %v993_v57 = vld [vmem:[#allocation2 + $0x16f] sm:$0xff]  ;;  %v994_v24 = vld [vmem:[#allocation2 + $0x187] sm:$0xff] }
 0x14a   : > { %v1118_v61 = vld [vmem:[#allocation2 + $0x149] sm:$0xff]  ;;  %v1181_v54 = vld [vmem:[#allocation2 + $0x132] sm:$0xff]  ;;  %v1025_v33 = vmax.f32 %v961_v48, %v993_v57 }
 0x14b   : > { %v1180_v23 = vld [vmem:[#allocation2 + $0x12a] sm:$0xff]  ;;  %v1150_v5 = vmax.f32 %v1086_v9, %v1118_v61  ;;  %v1213_v42 = vmax.f32 %v1149_v18, %v1181_v54  ;;  %v1183_v41 = vld [vmem:[#allocation2 + $0x152] sm:$0xff]  ;;  %v5384_v9 = vmax.f32 %v6302_v0, %v5357_v22  ;;  %v1981_v18 = vmax.f32 %v5148_v53, %v5189_v28 }
 0x14c   : > { %v2329_v17 = vld [vmem:[#allocation2 + $0x48] sm:$0xff]  ;;  %v2330_v11 = vld [vmem:[#allocation2 + $0x50] sm:$0xff]  ;;  %v1212_v1 = vmax.f32 %v1148_v21, %v1180_v23 }
 0x14d   : > { %v1182_v32 = vld [vmem:[#allocation2 + $0x14a] sm:$0xff]  ;;  %v2361_v36 = vmax.f32 %v2297_v27, %v2329_v17  ;;  %v2362_v35 = vmax.f32 %v2298_v29, %v2330_v11  ;;  %1896 = vst.msk [vmem:[#allocation2 + $0x130] sm:$0xff] %vm171_vm0, %v1213_v42  ;;  %v2458_v8 = vld [vmem:[#allocation2 + $0x52] sm:$0xff] }
 0x14e   : > { %v1119_v13 = vld [vmem:[#allocation2 + $0x151] sm:$0xff]  ;;  %v5376_v20 = vld [vmem:[#allocation2 + $0x108] sm:$0xff]  ;;  %v1214_v58 = vmax.f32 %v1150_v5, %v1182_v32  ;;  %4382 = vmatprep.mubr.msk.f32.mxu0 %vm171_vm0, %v1212_v1  ;;  %1895 = vst.msk [vmem:[#allocation2 + $0x128] sm:$0xff] %vm171_vm0, %v1212_v1  ;;  %v1983_v5 = vmax.f32 %v5189_v28, %v5231_v15 }
 0x14f   : > { %v1151_v50 = vmax.f32 %v1087_v19, %v1119_v13  ;;  %v2177_v60 = vmax.f32 %v2113_v34, %v5376_v20  ;;  %v2393_v27 = vld [vmem:[#allocation2 + $0x49] sm:$0xff]  ;;  %v2394_v29 = vld [vmem:[#allocation2 + $0x51] sm:$0xff]  ;;  %v1991_v34 = vmax.f32 %v5353_v25, %v5376_v20  ;;  %4383 = vmatmul.mubr.msk.f32.gmra.mrb[46].mxu0 %vm171_vm0, %v1213_v42  ;;  %v2045_v42 = vmax.f32 %v1981_v18, %v5231_v15 }
 0x150   : > { %v1056_v48 = vld [vmem:[#allocation2 + $0x168] sm:$0xff]  ;;  %1897 = vst.msk [vmem:[#allocation2 + $0x148] sm:$0xff] %vm171_vm0, %v1214_v58  ;;  %v2425_v4 = vmax.f32 %v2361_v36, %v2393_v27  ;;  %v2426_v59 = vmax.f32 %v2362_v35, %v2394_v29  ;;  %v1057_v16 = vld [vmem:[#allocation2 + $0x170] sm:$0xff]  ;;  %4385 = vmatprep.mubr.msk.f32.mxu0 %vm171_vm0, %v1214_v58  ;;  %v6303_v36 = vmax.f32 %v4907_v44, %v5148_v53 }
 0x151   : > { %v1215_v57 = vmax.f32 %v1151_v50, %v1183_v41  ;;  %v1088_v43 = vmax.f32 %v1024_v31, %v1056_v48  ;;  %2209 = vst.msk [vmem:[#allocation2 + $0xc8] sm:$0xff] %vm171_vm0, %v2177_v60  ;;  %v2457_v61 = vld [vmem:[#allocation2 + $0x4a] sm:$0xff]  ;;  %v1089_v23 = vmax.f32 %v1025_v33, %v1057_v16  ;;  %v1185_v13 = vld [vmem:[#allocation2 + $0x172] sm:$0xff]  ;;  %v5413_v33 = vmax.f32 %v1989_v51, %v5376_v20 }
 0x152   : > { %v1120_v21 = vld [vmem:[#allocation2 + $0x169] sm:$0xff]  ;;  %v2489_v19 = vmax.f32 %v2425_v4, %v2457_v61  ;;  %v2490_v17 = vmax.f32 %v2426_v59, %v2458_v8  ;;  %v1121_v32 = vld [vmem:[#allocation2 + $0x171] sm:$0xff]  ;;  %v2043_v35 = vmax.f32 %v6303_v36, %v5189_v28  ;;  %v1026_v58 = vmax.f32 %v962_v63, %v994_v24 }
 0x153   : > { %1898 = vst.msk [vmem:[#allocation2 + $0x150] sm:$0xff] %vm171_vm0, %v1215_v57  ;;  %v1152_v11 = vmax.f32 %v1088_v43, %v1120_v21  ;;  %v1184_v54 = vld [vmem:[#allocation2 + $0x16a] sm:$0xff]  ;;  %v1153_v1 = vmax.f32 %v1089_v23, %v1121_v32  ;;  %v2115_v44 = vmax.f32 %v5367_v30, %v5376_v20  ;;  %v2047_v28 = vmax.f32 %v1983_v5, %v5267_v3  ;;  %v2460_v10 = vld [vmem:[#allocation2 + $0x72] sm:$0xff] }
 0x154   : > { %v5407_v31 = vld [vmem:[#allocation2 + $0x110] sm:$0xff]  ;;  %4461 = vmatprep.mubr.msk.f32.mxu1 %vm171_vm0, %v2489_v19  ;;  %2879 = vst.msk [vmem:[#allocation2 + $0x48] sm:$0xff] %vm171_vm0, %v2489_v19  ;;  %2880 = vst.msk [vmem:[#allocation2 + $0x50] sm:$0xff] %vm171_vm0, %v2490_v17  ;;  %v2107_v51 = vmax.f32 %v2043_v35, %v5231_v15  ;;  %v5428_v0 = vld [vmem:[#allocation2 + $0x1a6] sm:$0xff]  ;;  %4386 = vmatmul.mubr.msk.f32.gmra.mrb[48].mxu0 %vm171_vm0, %v1215_v57  ;;  %v2109_v29 = vmax.f32 %v2045_v42, %v5267_v3 }
 0x155   : > { %v5416_v50 = vld [vmem:[#allocation2 + $0x18e] sm:$0xff]  ;;  %v2178_v53 = vmax.f32 %v2114_v7, %v5407_v31  ;;  %4462 = vmatmul.mubr.msk.f32.vlgmr.msra.gmra.mrb[16].mxu1 %vm171_vm0, %v2490_v17  ;;  %v1216_v30 = vmax.f32 %v1152_v11, %v1184_v54  ;;  %v1217_v7 = vmax.f32 %v1153_v1, %v1185_v13  ;;  %v5439_v4 = vld [vmem:[#allocation2 + $0x1c6] sm:$0xff]  ;;  %v1992_v15 = vmax.f32 %v5357_v22, %v5407_v31 }
 0x156   : > { %v5418_v41 = vld [vmem:[#allocation2 + $0x18f] sm:$0xff]  ;;  %v5430_v60 = vld [vmem:[#allocation2 + $0x1a7] sm:$0xff]  ;;  %v2054_v43 = vmax.f32 %v1990_v6, %v5407_v31  ;;  %v2116_v57 = vmax.f32 %v5384_v9, %v5407_v31  ;;  %4510 = vmatpush3.msk.msra.mxu1 %vm1328_vm3, %v5010_v12  ;;  %v2171_v16 = vmax.f32 %v2107_v51, %v5267_v3  ;;  %v2111_v22 = vmax.f32 %v2047_v28, %v5311_v56 }
 0x157   : > { %v5432_v27 = vld [vmem:[#allocation2 + $0x1ae] sm:$0xff]  ;;  %2210 = vst.msk [vmem:[#allocation2 + $0xd0] sm:$0xff] %vm171_vm0, %v2178_v53  ;;  %4388 = vmatprep.mubr.msk.f32.mxu0 %vm171_vm0, %v1216_v30  ;;  %1899 = vst.msk [vmem:[#allocation2 + $0x168] sm:$0xff] %vm171_vm0, %v1216_v30  ;;  %v2173_v6 = vmax.f32 %v2109_v29, %v5311_v56  ;;  %v1027_v3 = vmax.f32 %v5416_v50, %v5418_v41  ;;  %v1028_v21 = vmax.f32 %v5428_v0, %v5430_v60 }
 0x158   : > { %v5437_v48 = vld [vmem:[#allocation2 + $0x1af] sm:$0xff]  ;;  %v5441_v59 = vld [vmem:[#allocation2 + $0x1c7] sm:$0xff]  ;;  %1900 = vst.msk [vmem:[#allocation2 + $0x170] sm:$0xff] %vm171_vm0, %v1217_v7  ;;  %2203 = vst.msk [vmem:[#allocation2 + $0x68] sm:$0xff] %vm171_vm0, %v2171_v16  ;;  %4389 = vmatmul.mubr.msk.f32.gmra.mrb[50].mxu0 %vm171_vm0, %v1217_v7  ;;  %v2175_v28 = vmax.f32 %v2111_v22, %v5353_v25 }
 0x159   : > { %v1058_v63 = vld [vmem:[#allocation2 + $0x188] sm:$0xff]  ;;  %v5454_v61 = vld [vmem:[#allocation2 + $0x130] sm:$0xff]  ;;  %v1029_v23 = vmax.f32 %v5432_v27, %v5437_v48  ;;  %v1030_v18 = vmax.f32 %v5439_v4, %v5441_v59  ;;  %2205 = vst.msk [vmem:[#allocation2 + $0x88] sm:$0xff] %vm171_vm0, %v2173_v6 }
 0x15a   : > { %v5452_v24 = vld [vmem:[#allocation2 + $0x128] sm:$0xff]  ;;  %v5463_v12 = vmax.f32 %v1026_v58, %v1058_v63  ;;  %v2118_v5 = vmax.f32 %v2054_v43, %v5454_v61  ;;  %v2180_v17 = vmax.f32 %v2116_v57, %v5454_v61  ;;  %v5481_v11 = vld [vmem:[#allocation2 + $0x150] sm:$0xff]  ;;  %v1994_v54 = vmax.f32 %v5407_v31, %v5454_v61  ;;  %2207 = vst.msk [vmem:[#allocation2 + $0xa8] sm:$0xff] %vm171_vm0, %v2175_v28 }
 0x15b   : > { %v5456_v8 = vld [vmem:[#allocation2 + $0x148] sm:$0xff]  ;;  %v1993_v9 = vmax.f32 %v5376_v20, %v5452_v24  ;;  %v2117_v56 = vmax.f32 %v5413_v33, %v5452_v24  ;;  %v2179_v19 = vmax.f32 %v2115_v44, %v5452_v24  ;;  %v2055_v32 = vmax.f32 %v1991_v34, %v5452_v24  ;;  %v1059_v33 = vld [vmem:[#allocation2 + $0x190] sm:$0xff] }
 0x15c   : > { %v2056_v13 = vmax.f32 %v1992_v15, %v5454_v61  ;;  %v1122_v35 = vld [vmem:[#allocation2 + $0x189] sm:$0xff]  ;;  %2212 = vst.msk [vmem:[#allocation2 + $0xf0] sm:$0xff] %vm171_vm0, %v2180_v17  ;;  %v2182_v34 = vmax.f32 %v2118_v5, %v5481_v11  ;;  %v5510_v41 = vmax.f32 %v1994_v54, %v5481_v11  ;;  %v1091_v29 = vmax.f32 %v1027_v3, %v1059_v33  ;;  %v1123_v16 = vld [vmem:[#allocation2 + $0x191] sm:$0xff] }
 0x15d   : > { %2211 = vst.msk [vmem:[#allocation2 + $0xe8] sm:$0xff] %vm171_vm0, %v2179_v19  ;;  %v5499_v31 = vmax.f32 %v1993_v9, %v5456_v8  ;;  %v2181_v20 = vmax.f32 %v2117_v56, %v5456_v8  ;;  %v5503_v42 = vld [vmem:[#allocation2 + $0x48] sm:$0xff]  ;;  %v2119_v44 = vmax.f32 %v2055_v32, %v5456_v8  ;;  %v5515_v51 = vld [vmem:[#allocation2 + $0x50] sm:$0xff]  ;;  %v1154_v25 = vmax.f32 %v5463_v12, %v1122_v35 }
 0x15e   : > { %v5505_v58 = vld [vmem:[#allocation2 + $0x1ce] sm:$0xff]  ;;  %v2120_v53 = vmax.f32 %v2056_v13, %v5481_v11  ;;  %v5517_v0 = vld [vmem:[#allocation2 + $0xc6] sm:$0xff]  ;;  %2214 = vst.msk [vmem:[#allocation2 + $0x110] sm:$0xff] %vm171_vm0, %v2182_v34 }
 0x15f   : > { %v5507_v50 = vld [vmem:[#allocation2 + $0x1cf] sm:$0xff]  ;;  %v5519_v60 = vld [vmem:[#allocation2 + $0xc7] sm:$0xff]  ;;  %2213 = vst.msk [vmem:[#allocation2 + $0x108] sm:$0xff] %vm171_vm0, %v2181_v20 }
 0x160   : > { %v5523_v27 = vld [vmem:[#allocation2 + $0x28] sm:$0xff]  ;;  %v1061_v4 = vld [vmem:[#allocation2 + $0x1b0] sm:$0xff]  ;;  %v1031_v9 = vmax.f32 %v5505_v58, %v5507_v50 }
 0x161   : > { %v1060_v48 = vld [vmem:[#allocation2 + $0x1a8] sm:$0xff]  ;;  %v5532_v43 = vld [vmem:[#allocation2 + $0x170] sm:$0xff]  ;;  %v1093_v22 = vmax.f32 %v1029_v23, %v1061_v4 }
 0x162   : > { %v1062_v59 = vld [vmem:[#allocation2 + $0x1c8] sm:$0xff]  ;;  %v1092_v63 = vmax.f32 %v1028_v21, %v1060_v48  ;;  %v5539_v19 = vld [vmem:[#allocation2 + $0x30] sm:$0xff]  ;;  %v2184_v35 = vmax.f32 %v2120_v53, %v5532_v43 }
 0x163   : > { %v5530_v15 = vld [vmem:[#allocation2 + $0x168] sm:$0xff]  ;;  %v1094_v6 = vmax.f32 %v1030_v18, %v1062_v59  ;;  %v2332_v20 = vld [vmem:[#allocation2 + $0x70] sm:$0xff]  ;;  %v1155_v59 = vmax.f32 %v1091_v29, %v1123_v16 }
 0x164   : > { %v1186_v57 = vld [vmem:[#allocation2 + $0x18a] sm:$0xff]  ;;  %v2183_v13 = vmax.f32 %v2119_v44, %v5530_v15  ;;  %v1187_v34 = vld [vmem:[#allocation2 + $0x192] sm:$0xff]  ;;  %2216 = vst.msk [vmem:[#allocation2 + $0x130] sm:$0xff] %vm171_vm0, %v2184_v35 }
 0x165   : > { %v2235_v3 = vld [vmem:[#allocation2 + $0x66] sm:$0xff]  ;;  %v2236_v56 = vld [vmem:[#allocation2 + $0x6e] sm:$0xff]  ;;  %v1218_v4 = vmax.f32 %v1154_v25, %v1186_v57  ;;  %v1219_v57 = vmax.f32 %v1155_v59, %v1187_v34 }
 0x166   : > { %v2267_v5 = vld [vmem:[#allocation2 + $0x67] sm:$0xff]  ;;  %v2268_v33 = vld [vmem:[#allocation2 + $0x6f] sm:$0xff]  ;;  %2215 = vst.msk [vmem:[#allocation2 + $0x128] sm:$0xff] %vm171_vm0, %v2183_v13 }
 0x167   : > { %v1124_v21 = vld [vmem:[#allocation2 + $0x1a9] sm:$0xff]  ;;  %v1125_v58 = vld [vmem:[#allocation2 + $0x1b1] sm:$0xff]  ;;  %v2299_v28 = vmax.f32 %v2235_v3, %v2267_v5  ;;  %v2300_v48 = vmax.f32 %v2236_v56, %v2268_v33  ;;  %4391 = vmatprep.mubr.msk.f32.mxu0 %vm171_vm0, %v1218_v4  ;;  %1901 = vst.msk [vmem:[#allocation2 + $0x188] sm:$0xff] %vm171_vm0, %v1218_v4  ;;  %1902 = vst.msk [vmem:[#allocation2 + $0x190] sm:$0xff] %vm171_vm0, %v1219_v57 }
 0x168   : > { %v1126_v50 = vld [vmem:[#allocation2 + $0x1c9] sm:$0xff]  ;;  %v1189_v7 = vld [vmem:[#allocation2 + $0x1b2] sm:$0xff]  ;;  %v1156_v36 = vmax.f32 %v1092_v63, %v1124_v21  ;;  %v1157_v23 = vmax.f32 %v1093_v22, %v1125_v58  ;;  %4392 = vmatmul.mubr.msk.f32.gmra.mrb[52].mxu0 %vm171_vm0, %v1219_v57 }
 0x169   : > { %v2237_v17 = vld [vmem:[#allocation2 + $0x86] sm:$0xff]  ;;  %v2238_v54 = vld [vmem:[#allocation2 + $0x8e] sm:$0xff]  ;;  %v1158_v3 = vmax.f32 %v1094_v6, %v1126_v50  ;;  %v2364_v29 = vmax.f32 %v2300_v48, %v2332_v20 }
 0x16a   : > { %v1188_v30 = vld [vmem:[#allocation2 + $0x1aa] sm:$0xff]  ;;  %v1221_v22 = vmax.f32 %v1157_v23, %v1189_v7  ;;  %v1191_v59 = vld [vmem:[#allocation2 + $0x1d2] sm:$0xff] }
 0x16b   : > { %v1190_v18 = vld [vmem:[#allocation2 + $0x1ca] sm:$0xff]  ;;  %v1220_v63 = vmax.f32 %v1156_v36, %v1188_v30 }
 0x16c   : > { %v1063_v12 = vld [vmem:[#allocation2 + $0x1d0] sm:$0xff]  ;;  %v2331_v44 = vld [vmem:[#allocation2 + $0x68] sm:$0xff]  ;;  %v1222_v6 = vmax.f32 %v1158_v3, %v1190_v18  ;;  %1904 = vst.msk [vmem:[#allocation2 + $0x1b0] sm:$0xff] %vm171_vm0, %v1221_v22 }
 0x16d   : > { %v2396_v53 = vld [vmem:[#allocation2 + $0x71] sm:$0xff]  ;;  %v2269_v32 = vld [vmem:[#allocation2 + $0x87] sm:$0xff]  ;;  %v1095_v56 = vmax.f32 %v1031_v9, %v1063_v12  ;;  %v2363_v25 = vmax.f32 %v2299_v28, %v2331_v44  ;;  %4394 = vmatprep.mubr.msk.f32.mxu0 %vm171_vm0, %v1220_v63  ;;  %1903 = vst.msk [vmem:[#allocation2 + $0x1a8] sm:$0xff] %vm171_vm0, %v1220_v63 }
 0x16e   : > { %v2270_v1 = vld [vmem:[#allocation2 + $0x8f] sm:$0xff]  ;;  %v2301_v16 = vmax.f32 %v2237_v17, %v2269_v32  ;;  %v2428_v21 = vmax.f32 %v2364_v29, %v2396_v53  ;;  %v2239_v32 = vld [vmem:[#allocation2 + $0xa6] sm:$0xff]  ;;  %1905 = vst.msk [vmem:[#allocation2 + $0x1c8] sm:$0xff] %vm171_vm0, %v1222_v6  ;;  %4395 = vmatmul.mubr.msk.f32.gmra.mrb[54].mxu0 %vm171_vm0, %v1221_v22  ;;  %v6305_v22 = vmax.f32 %v5452_v24, %v5456_v8 }
 0x16f   : > { %v2334_v5 = vld [vmem:[#allocation2 + $0x90] sm:$0xff]  ;;  %v2333_v14 = vld [vmem:[#allocation2 + $0x88] sm:$0xff]  ;;  %v2302_v62 = vmax.f32 %v2238_v54, %v2270_v1  ;;  %4397 = vmatprep.mubr.msk.f32.mxu0 %vm171_vm0, %v1222_v6  ;;  %v6307_v6 = vmax.f32 %v5499_v31, %v5530_v15 }
 0x170   : > { %v1127_v13 = vld [vmem:[#allocation2 + $0x1d1] sm:$0xff]  ;;  %v2395_v26 = vld [vmem:[#allocation2 + $0x69] sm:$0xff]  ;;  %v2365_v20 = vmax.f32 %v2301_v16, %v2333_v14  ;;  %v6304_v14 = vmax.f32 %v5517_v0, %v5519_v60  ;;  %v2492_v54 = vmax.f32 %v2428_v21, %v2460_v10 }
 0x171   : > { %v2242_v33 = vld [vmem:[#allocation2 + $0xce] sm:$0xff]  ;;  %v2427_v12 = vmax.f32 %v2363_v25, %v2395_v26  ;;  %v1159_v50 = vmax.f32 %v1095_v56, %v1127_v13  ;;  %v2366_v4 = vmax.f32 %v2302_v62, %v2334_v5 }
 0x172   : > { %v2274_v35 = vld [vmem:[#allocation2 + $0xcf] sm:$0xff]  ;;  %v2271_v58 = vld [vmem:[#allocation2 + $0xa7] sm:$0xff] }
 0x173   : > { %v2337_v9 = vld [vmem:[#allocation2 + $0xc8] sm:$0xff]  ;;  %v2398_v17 = vld [vmem:[#allocation2 + $0x91] sm:$0xff]  ;;  %v2303_v36 = vmax.f32 %v2239_v32, %v2271_v58  ;;  %v2306_v30 = vmax.f32 %v2242_v33, %v2274_v35  ;;  %v1223_v29 = vmax.f32 %v1159_v50, %v1191_v59 }
 0x174   : > { %v2240_v34 = vld [vmem:[#allocation2 + $0xae] sm:$0xff]  ;;  %v2369_v1 = vmax.f32 %v6304_v14, %v2337_v9  ;;  %v2430_v3 = vmax.f32 %v2366_v4, %v2398_v17  ;;  %v6306_v17 = vmax.f32 %v5454_v61, %v5481_v11  ;;  %v6308_v4 = vmax.f32 %v5456_v8, %v5530_v15 }
 0x175   : > { %v2459_v28 = vld [vmem:[#allocation2 + $0x6a] sm:$0xff]  ;;  %v2462_v10 = vld [vmem:[#allocation2 + $0x92] sm:$0xff]  ;;  %1906 = vst.msk [vmem:[#allocation2 + $0x1d0] sm:$0xff] %vm171_vm0, %v1223_v29  ;;  %4398 = vmatmul.mubr.msk.f32.gmra.mrb[56].mxu0 %vm171_vm0, %v1223_v29 }
 0x176   : > { %v2397_v48 = vld [vmem:[#allocation2 + $0x89] sm:$0xff]  ;;  %v2491_v7 = vmax.f32 %v2427_v12, %v2459_v28  ;;  %2882 = vst.msk [vmem:[#allocation2 + $0x70] sm:$0xff] %vm171_vm0, %v2492_v54  ;;  %v2494_v63 = vmax.f32 %v2430_v3, %v2462_v10  ;;  %v2400_v12 = vld [vmem:[#allocation2 + $0xb1] sm:$0xff]  ;;  %v2060_v32 = vmax.f32 %v6306_v17, %v5532_v43 }
 0x177   : > { %v2272_v26 = vld [vmem:[#allocation2 + $0xaf] sm:$0xff]  ;;  %v2429_v23 = vmax.f32 %v2365_v20, %v2397_v48  ;;  %v2059_v20 = vmax.f32 %v6305_v22, %v5530_v15  ;;  %v5592_v28 = vld [vmem:[#allocation2 + $0x1e6] sm:$0xff] }
 0x178   : > { %v2335_v18 = vld [vmem:[#allocation2 + $0xa8] sm:$0xff]  ;;  %v2304_v62 = vmax.f32 %v2240_v34, %v2272_v26  ;;  %v2336_v25 = vld [vmem:[#allocation2 + $0xb0] sm:$0xff]  ;;  %4464 = vmatprep.mubr.msk.f32.mxu1 %vm171_vm0, %v2491_v7  ;;  %2881 = vst.msk [vmem:[#allocation2 + $0x68] sm:$0xff] %vm171_vm0, %v2491_v7  ;;  %v2122_v34 = vmax.f32 %v5510_v41, %v5532_v43 }
 0x179   : > { %v2401_v44 = vld [vmem:[#allocation2 + $0xc9] sm:$0xff]  ;;  %v2367_v56 = vmax.f32 %v2303_v36, %v2335_v18  ;;  %4465 = vmatmul.mubr.msk.f32.gmra.mrb[18].mxu1 %vm171_vm0, %v2492_v54  ;;  %v5605_v36 = vld [vmem:[#allocation2 + $0xd1] sm:$0xff] }
 0x17a   : > { %v2461_v53 = vld [vmem:[#allocation2 + $0x8a] sm:$0xff]  ;;  %v2433_v57 = vmax.f32 %v2369_v1, %v2401_v44  ;;  %v2368_v5 = vmax.f32 %v2304_v62, %v2336_v25 }
 0x17b   : > { %v2338_v16 = vld [vmem:[#allocation2 + $0xd0] sm:$0xff]  ;;  %v2493_v0 = vmax.f32 %v2429_v23, %v2461_v53  ;;  %v1937_v35 = vld [vmem:[#allocation2 + $0x188] sm:$0xff]  ;;  %2884 = vst.msk [vmem:[#allocation2 + $0x90] sm:$0xff] %vm171_vm0, %v2494_v63  ;;  %v6309_v23 = vmax.f32 %v5481_v11, %v5532_v43 }
 0x17c   : > { %v2399_v60 = vld [vmem:[#allocation2 + $0xa9] sm:$0xff]  ;;  %v5570_v33 = vmax.f32 %v2306_v30, %v2338_v16  ;;  %v2185_v58 = vmax.f32 %v6307_v6, %v1937_v35  ;;  %v1999_v61 = vmax.f32 %v5530_v15, %v1937_v35  ;;  %v5600_v41 = vmax.f32 %v6308_v4, %v1937_v35 }
 0x17d   : > { %v2465_v13 = vld [vmem:[#allocation2 + $0xca] sm:$0xff]  ;;  %v2431_v9 = vmax.f32 %v2367_v56, %v2399_v60  ;;  %4467 = vmatprep.mubr.msk.f32.mxu1 %vm171_vm0, %v2493_v0  ;;  %2883 = vst.msk [vmem:[#allocation2 + $0x88] sm:$0xff] %vm171_vm0, %v2493_v0  ;;  %v2432_v26 = vmax.f32 %v2368_v5, %v2400_v12  ;;  %v2123_v14 = vmax.f32 %v2059_v20, %v1937_v35  ;;  %v2464_v56 = vld [vmem:[#allocation2 + $0xb2] sm:$0xff] }
 0x17e   : > { %v5575_v21 = vmax.f32 %v2433_v57, %v2465_v13  ;;  %v2463_v50 = vld [vmem:[#allocation2 + $0xaa] sm:$0xff]  ;;  %2217 = vst.msk [vmem:[#allocation2 + $0x148] sm:$0xff] %vm171_vm0, %v2185_v58  ;;  %v2434_v8 = vmax.f32 %v5570_v33, %v5605_v36  ;;  %4468 = vmatmul.mubr.msk.f32.gmra.mrb[20].mxu1 %vm171_vm0, %v2494_v63  ;;  %v6310_v60 = vmax.f32 %v4919_v49, %v5503_v42 }
 0x17f   : > { %v5594_v24 = vld [vmem:[#allocation2 + $0x1e7] sm:$0xff]  ;;  %v1938_v48 = vld [vmem:[#allocation2 + $0x190] sm:$0xff]  ;;  %v2495_v31 = vmax.f32 %v2431_v9, %v2463_v50  ;;  %v2496_v10 = vmax.f32 %v2432_v26, %v2464_v56  ;;  %v6311_v49 = vmax.f32 %v5523_v27, %v5503_v42  ;;  %v6312_v20 = vmax.f32 %v4912_v46, %v5515_v51 }
 0x180   : > { %2887 = vst.msk [vmem:[#allocation2 + $0xc8] sm:$0xff] %vm171_vm0, %v5575_v21  ;;  %v2124_v1 = vmax.f32 %v2060_v32, %v1938_v48  ;;  %v2186_v30 = vmax.f32 %v2122_v34, %v1938_v48  ;;  %v5608_v7 = vld [vmem:[#allocation2 + $0x1a8] sm:$0xff]  ;;  %v5610_v54 = vld [vmem:[#allocation2 + $0x1b0] sm:$0xff]  ;;  %v2000_v15 = vmax.f32 %v5532_v43, %v1938_v48  ;;  %v2062_v18 = vmax.f32 %v6309_v23, %v1938_v48 }
 0x181   : > { %v2001_v62 = vmax.f32 %v1937_v35, %v5608_v7  ;;  %2885 = vst.msk [vmem:[#allocation2 + $0xa8] sm:$0xff] %vm171_vm0, %v2495_v31  ;;  %v5622_v59 = vld [vmem:[#allocation2 + $0x1c8] sm:$0xff]  ;;  %v1032_v44 = vmax.f32 %v5592_v28, %v5594_v24  ;;  %v2002_v53 = vmax.f32 %v1938_v48, %v5610_v54  ;;  %v5629_v3 = vmax.f32 %v1999_v61, %v5608_v7  ;;  %v5636_v29 = vld [vmem:[#allocation2 + $0x70] sm:$0xff] }
 0x182   : > { %2218 = vst.msk [vmem:[#allocation2 + $0x150] sm:$0xff] %vm171_vm0, %v2186_v30  ;;  %v2187_v11 = vmax.f32 %v2123_v14, %v5608_v7  ;;  %v2188_v43 = vmax.f32 %v2124_v1, %v5610_v54  ;;  %4470 = vmatprep.mubr.msk.f32.mxu1 %vm171_vm0, %v2495_v31  ;;  %v5634_v25 = vld [vmem:[#allocation2 + $0x68] sm:$0xff]  ;;  %v5639_v57 = vmax.f32 %v2000_v15, %v5610_v54  ;;  %v5650_v13 = vld [vmem:[#allocation2 + $0x1d0] sm:$0xff]  ;;  %2886 = vst.msk [vmem:[#allocation2 + $0xb0] sm:$0xff] %vm171_vm0, %v2496_v10 }
 0x183   : > { %v2125_v16 = vmax.f32 %v5600_v41, %v5608_v7  ;;  %v2126_v0 = vmax.f32 %v2062_v18, %v5610_v54  ;;  %v3103_v5 = vmax.f32 %v6310_v60, %v5634_v25  ;;  %v2003_v33 = vmax.f32 %v5608_v7, %v5622_v59  ;;  %4471 = vmatmul.mubr.msk.f32.gmra.mrb[22].mxu1 %vm171_vm0, %v2496_v10  ;;  %v969_v34 = vld [vmem:[#allocation2 + $0x1ee] sm:$0xff]  ;;  %v970_v61 = vld [vmem:[#allocation2 + $0x206] sm:$0xff] }
 0x184   : > { %2219 = vst.msk [vmem:[#allocation2 + $0x168] sm:$0xff] %vm171_vm0, %v2187_v11  ;;  %2220 = vst.msk [vmem:[#allocation2 + $0x170] sm:$0xff] %vm171_vm0, %v2188_v43  ;;  %v5655_v35 = vmax.f32 %v2001_v62, %v5622_v59  ;;  %v2127_v63 = vmax.f32 %v5629_v3, %v5622_v59  ;;  %v2979_v9 = vmax.f32 %v5503_v42, %v5634_v25  ;;  %v5671_v32 = vld [vmem:[#allocation2 + $0x88] sm:$0xff]  ;;  %v5682_v58 = vld [vmem:[#allocation2 + $0x90] sm:$0xff]  ;;  %4473 = vmatprep.mubr.msk.f32.mxu1 %vm171_vm0, %v5575_v21 }
 0x185   : > { %v3041_v12 = vmax.f32 %v6311_v49, %v5634_v25  ;;  %v2980_v22 = vmax.f32 %v5515_v51, %v5636_v29  ;;  %v3104_v17 = vmax.f32 %v6312_v20, %v5636_v29  ;;  %v6313_v42 = vmax.f32 %v5539_v19, %v5515_v51  ;;  %v1001_v48 = vld [vmem:[#allocation2 + $0x1ef] sm:$0xff]  ;;  %v1002_v36 = vld [vmem:[#allocation2 + $0x207] sm:$0xff] }
 0x186   : > { %v3167_v6 = vmax.f32 %v3103_v5, %v5671_v32  ;;  %v5687_v50 = vmax.f32 %v2002_v53, %v5650_v13  ;;  %v2981_v51 = vmax.f32 %v5634_v25, %v5671_v32  ;;  %v3043_v19 = vmax.f32 %v2979_v9, %v5671_v32  ;;  %v2466_v31 = vld [vmem:[#allocation2 + $0xd2] sm:$0xff]  ;;  %v1064_v26 = vld [vmem:[#allocation2 + $0x1e8] sm:$0xff] }
 0x187   : > { %v5679_v27 = vmax.f32 %v6313_v42, %v5636_v29  ;;  %v3105_v4 = vmax.f32 %v3041_v12, %v5671_v32  ;;  %v3168_v41 = vmax.f32 %v3104_v17, %v5682_v58  ;;  %v2243_v14 = vld [vmem:[#allocation2 + $0xe6] sm:$0xff]  ;;  %v2982_v21 = vmax.f32 %v5636_v29, %v5682_v58  ;;  %v2276_v10 = vld [vmem:[#allocation2 + $0xef] sm:$0xff] }
 0x188   : > { %3199 = vst.msk [vmem:[#allocation2 + $0x48] sm:$0xff] %vm171_vm0, %v3167_v6  ;;  %v5699_v1 = vld [vmem:[#allocation2 + $0xa8] sm:$0xff]  ;;  %v2189_v30 = vmax.f32 %v2125_v16, %v5622_v59  ;;  %v2190_v15 = vmax.f32 %v2126_v0, %v5650_v13  ;;  %v2498_v18 = vmax.f32 %v2434_v8, %v2466_v31  ;;  %v5706_v53 = vmax.f32 %v2980_v22, %v5682_v58  ;;  %v1065_v5 = vld [vmem:[#allocation2 + $0x1f0] sm:$0xff] }
 0x189   : > { %v5703_v23 = vld [vmem:[#allocation2 + $0xc8] sm:$0xff]  ;;  %v3106_v11 = vmax.f32 %v5679_v27, %v5682_v58  ;;  %3200 = vst.msk [vmem:[#allocation2 + $0x50] sm:$0xff] %vm171_vm0, %v3168_v41  ;;  %v3107_v43 = vmax.f32 %v3043_v19, %v5699_v1  ;;  %v3169_v56 = vmax.f32 %v3105_v4, %v5699_v1  ;;  %v2128_v0 = vmax.f32 %v5639_v57, %v5650_v13  ;;  %v1129_v27 = vld [vmem:[#allocation2 + $0x1f1] sm:$0xff] }
 0x18a   : > { %v2275_v62 = vld [vmem:[#allocation2 + $0xe7] sm:$0xff]  ;;  %2221 = vst.msk [vmem:[#allocation2 + $0x188] sm:$0xff] %vm171_vm0, %v2189_v30  ;;  %2222 = vst.msk [vmem:[#allocation2 + $0x190] sm:$0xff] %vm171_vm0, %v2190_v15  ;;  %4474 = vmatmul.mubr.msk.f32.gmra.mrb[24].mxu1 %vm171_vm0, %v2498_v18  ;;  %v1096_v8 = vmax.f32 %v1032_v44, %v1064_v26  ;;  %v1033_v60 = vmax.f32 %v969_v34, %v1001_v48  ;;  %v1034_v9 = vmax.f32 %v970_v61, %v1002_v36  ;;  %v1003_v24 = vld [vmem:[#allocation2 + $0x20f] sm:$0xff] }
 0x18b   : > { %v1128_v25 = vld [vmem:[#allocation2 + $0x1e9] sm:$0xff]  ;;  %2888 = vst.msk [vmem:[#allocation2 + $0xd0] sm:$0xff] %vm171_vm0, %v2498_v18  ;;  %v2983_v22 = vmax.f32 %v5671_v32, %v5699_v1  ;;  %v5725_v20 = vmax.f32 %v2981_v51, %v5699_v1  ;;  %3201 = vst.msk [vmem:[#allocation2 + $0x68] sm:$0xff] %vm171_vm0, %v3169_v56  ;;  %v3171_v17 = vmax.f32 %v3107_v43, %v5703_v23  ;;  %v1193_v30 = vld [vmem:[#allocation2 + $0x1f2] sm:$0xff] }
 0x18c   : > { %v2244_v16 = vld [vmem:[#allocation2 + $0xee] sm:$0xff]  ;;  %v2307_v28 = vmax.f32 %v2243_v14, %v2275_v62  ;;  %v972_v44 = vld [vmem:[#allocation2 + $0x226] sm:$0xff]  ;;  %v1160_v61 = vmax.f32 %v1096_v8, %v1128_v25  ;;  %v1097_v19 = vmax.f32 %v1033_v60, %v1065_v5 }
 0x18d   : > { %v1066_v49 = vld [vmem:[#allocation2 + $0x208] sm:$0xff]  ;;  %v5729_v48 = vld [vmem:[#allocation2 + $0xb0] sm:$0xff]  ;;  %v2308_v32 = vmax.f32 %v2244_v16, %v2276_v10  ;;  %v5737_v14 = vmax.f32 %v2983_v22, %v5703_v23  ;;  %3203 = vst.msk [vmem:[#allocation2 + $0x88] sm:$0xff] %vm171_vm0, %v3171_v17 }
 0x18e   : > { %v971_v12 = vld [vmem:[#allocation2 + $0x20e] sm:$0xff]  ;;  %v1098_v4 = vmax.f32 %v1034_v9, %v1066_v49  ;;  %v2245_v41 = vld [vmem:[#allocation2 + $0x106] sm:$0xff]  ;;  %v3108_v31 = vmax.f32 %v5706_v53, %v5729_v48  ;;  %v3170_v26 = vmax.f32 %v3106_v11, %v5729_v48  ;;  %v1161_v25 = vmax.f32 %v1097_v19, %v1129_v27 }
 0x18f   : > { %v1192_v42 = vld [vmem:[#allocation2 + $0x1ea] sm:$0xff]  ;;  %v1035_v5 = vmax.f32 %v971_v12, %v1003_v24 }
 0x190   : > { %v1130_v6 = vld [vmem:[#allocation2 + $0x209] sm:$0xff]  ;;  %v1224_v56 = vmax.f32 %v1160_v61, %v1192_v42  ;;  %v2404_v11 = vld [vmem:[#allocation2 + $0xf1] sm:$0xff]  ;;  %3202 = vst.msk [vmem:[#allocation2 + $0x70] sm:$0xff] %vm171_vm0, %v3170_v26  ;;  %v1225_v46 = vmax.f32 %v1161_v25, %v1193_v30 }
 0x191   : > { %v1004_v34 = vld [vmem:[#allocation2 + $0x227] sm:$0xff]  ;;  %v2278_v43 = vld [vmem:[#allocation2 + $0x10f] sm:$0xff]  ;;  %v1162_v16 = vmax.f32 %v1098_v4, %v1130_v6 }
 0x192   : > { %v2277_v51 = vld [vmem:[#allocation2 + $0x107] sm:$0xff]  ;;  %v2340_v8 = vld [vmem:[#allocation2 + $0xf0] sm:$0xff]  ;;  %v1036_v49 = vmax.f32 %v972_v44, %v1004_v34  ;;  %4400 = vmatprep.mubr.msk.f32.mxu0 %vm171_vm0, %v1224_v56  ;;  %1907 = vst.msk [vmem:[#allocation2 + $0x1e8] sm:$0xff] %vm171_vm0, %v1224_v56  ;;  %v5751_v56 = vmax.f32 %v2982_v21, %v5729_v48  ;;  %1908 = vst.msk [vmem:[#allocation2 + $0x1f0] sm:$0xff] %vm171_vm0, %v1225_v46 }
 0x193   : > { %v1194_v15 = vld [vmem:[#allocation2 + $0x20a] sm:$0xff]  ;;  %v2372_v60 = vmax.f32 %v2308_v32, %v2340_v8  ;;  %v2309_v17 = vmax.f32 %v2245_v41, %v2277_v51  ;;  %4401 = vmatmul.mubr.msk.f32.gmra.mrb[58].mxu0 %vm171_vm0, %v1225_v46 }
 0x194   : > { %v2339_v18 = vld [vmem:[#allocation2 + $0xe8] sm:$0xff]  ;;  %v1067_v9 = vld [vmem:[#allocation2 + $0x210] sm:$0xff]  ;;  %v1226_v42 = vmax.f32 %v1162_v16, %v1194_v15  ;;  %v2984_v15 = vmax.f32 %v5682_v58, %v5729_v48 }
 0x195   : > { %v2246_v62 = vld [vmem:[#allocation2 + $0x10e] sm:$0xff]  ;;  %v2371_v10 = vmax.f32 %v2307_v28, %v2339_v18  ;;  %v2247_v12 = vld [vmem:[#allocation2 + $0x126] sm:$0xff]  ;;  %v2436_v44 = vmax.f32 %v2372_v60, %v2404_v11  ;;  %v1099_v34 = vmax.f32 %v1035_v5, %v1067_v9 }
 0x196   : > { %v2403_v53 = vld [vmem:[#allocation2 + $0xe9] sm:$0xff]  ;;  %v2468_v28 = vld [vmem:[#allocation2 + $0xf2] sm:$0xff]  ;;  %v2310_v4 = vmax.f32 %v2246_v62, %v2278_v43  ;;  %1909 = vst.msk [vmem:[#allocation2 + $0x208] sm:$0xff] %vm171_vm0, %v1226_v42  ;;  %4403 = vmatprep.mubr.msk.f32.mxu0 %vm171_vm0, %v1226_v42 }
 0x197   : > { %v1068_v22 = vld [vmem:[#allocation2 + $0x228] sm:$0xff]  ;;  %v2435_v27 = vmax.f32 %v2371_v10, %v2403_v53  ;;  %v1131_v61 = vld [vmem:[#allocation2 + $0x211] sm:$0xff]  ;;  %v2500_v21 = vmax.f32 %v2436_v44, %v2468_v28 }
 0x198   : > { %v2341_v36 = vld [vmem:[#allocation2 + $0x108] sm:$0xff]  ;;  %v5743_v24 = vld [vmem:[#allocation2 + $0xd0] sm:$0xff]  ;;  %v1100_v41 = vmax.f32 %v1036_v49, %v1068_v22  ;;  %v1163_v53 = vmax.f32 %v1099_v34, %v1131_v61 }
 0x199   : > { %v2467_v6 = vld [vmem:[#allocation2 + $0xea] sm:$0xff]  ;;  %v2373_v51 = vmax.f32 %v2309_v17, %v2341_v36  ;;  %v3172_v43 = vmax.f32 %v3108_v31, %v5743_v24  ;;  %v1195_v36 = vld [vmem:[#allocation2 + $0x212] sm:$0xff]  ;;  %v3110_v3 = vmax.f32 %v5751_v56, %v5743_v24 }
 0x19a   : > { %v1132_v19 = vld [vmem:[#allocation2 + $0x229] sm:$0xff]  ;;  %v2499_v29 = vmax.f32 %v2435_v27, %v2467_v6  ;;  %2890 = vst.msk [vmem:[#allocation2 + $0xf0] sm:$0xff] %vm171_vm0, %v2500_v21  ;;  %v1227_v42 = vmax.f32 %v1163_v53, %v1195_v36  ;;  %v2406_v6 = vld [vmem:[#allocation2 + $0x111] sm:$0xff] }
 0x19b   : > { %v973_v26 = vld [vmem:[#allocation2 + $0x22e] sm:$0xff]  ;;  %v2249_v16 = vld [vmem:[#allocation2 + $0x146] sm:$0xff]  ;;  %v1164_v8 = vmax.f32 %v1100_v41, %v1132_v19  ;;  %3204 = vst.msk [vmem:[#allocation2 + $0x90] sm:$0xff] %vm171_vm0, %v3172_v43 }
 0x19c   : > { %v1005_v32 = vld [vmem:[#allocation2 + $0x22f] sm:$0xff]  ;;  %v2279_v30 = vld [vmem:[#allocation2 + $0x127] sm:$0xff]  ;;  %4476 = vmatprep.mubr.msk.f32.mxu1 %vm171_vm0, %v2499_v29  ;;  %2889 = vst.msk [vmem:[#allocation2 + $0xe8] sm:$0xff] %vm171_vm0, %v2499_v29  ;;  %4404 = vmatmul.mubr.msk.f32.gmra.mrb[60].mxu0 %vm171_vm0, %v1227_v42  ;;  %1910 = vst.msk [vmem:[#allocation2 + $0x210] sm:$0xff] %vm171_vm0, %v1227_v42  ;;  %v6314_v42 = vmax.f32 %v5610_v54, %v5650_v13 }
 0x19d   : > { %v2248_v18 = vld [vmem:[#allocation2 + $0x12e] sm:$0xff]  ;;  %v1037_v49 = vmax.f32 %v973_v26, %v1005_v32  ;;  %v2311_v22 = vmax.f32 %v2247_v12, %v2279_v30  ;;  %4477 = vmatmul.mubr.msk.f32.gmra.mrb[26].mxu1 %vm171_vm0, %v2500_v21  ;;  %v2986_v30 = vmax.f32 %v5729_v48, %v5743_v24 }
 0x19e   : > { %v2280_v25 = vld [vmem:[#allocation2 + $0x12f] sm:$0xff]  ;;  %v2281_v10 = vld [vmem:[#allocation2 + $0x147] sm:$0xff] }
 0x19f   : > { %v1196_v11 = vld [vmem:[#allocation2 + $0x22a] sm:$0xff]  ;;  %v2312_v19 = vmax.f32 %v2248_v18, %v2280_v25  ;;  %v2313_v44 = vmax.f32 %v2249_v16, %v2281_v10  ;;  %v2470_v32 = vld [vmem:[#allocation2 + $0x112] sm:$0xff] }
 0x1a0   : > { %v2405_v60 = vld [vmem:[#allocation2 + $0x109] sm:$0xff]  ;;  %v1228_v27 = vmax.f32 %v1164_v8, %v1196_v11  ;;  %v1133_v8 = vld [vmem:[#allocation2 + $0x231] sm:$0xff] }
 0x1a1   : > { %v2342_v5 = vld [vmem:[#allocation2 + $0x110] sm:$0xff]  ;;  %v2437_v31 = vmax.f32 %v2373_v51, %v2405_v60  ;;  %v2343_v61 = vld [vmem:[#allocation2 + $0x128] sm:$0xff] }
 0x1a2   : > { %v2469_v9 = vld [vmem:[#allocation2 + $0x10a] sm:$0xff]  ;;  %v2374_v46 = vmax.f32 %v2310_v4, %v2342_v5  ;;  %v2375_v34 = vmax.f32 %v2311_v22, %v2343_v61  ;;  %1911 = vst.msk [vmem:[#allocation2 + $0x228] sm:$0xff] %vm171_vm0, %v1228_v27  ;;  %4406 = vmatprep.mubr.msk.f32.mxu0 %vm171_vm0, %v1228_v27  ;;  %v2472_v56 = vld [vmem:[#allocation2 + $0x132] sm:$0xff] }
 0x1a3   : > { %v5761_v17 = vld [vmem:[#allocation2 + $0x14e] sm:$0xff]  ;;  %v2501_v4 = vmax.f32 %v2437_v31, %v2469_v9  ;;  %v5780_v16 = vld [vmem:[#allocation2 + $0x166] sm:$0xff] }
 0x1a4   : > { %v5763_v62 = vld [vmem:[#allocation2 + $0x14f] sm:$0xff]  ;;  %v2438_v26 = vmax.f32 %v2374_v46, %v2406_v6  ;;  %v5782_v10 = vld [vmem:[#allocation2 + $0x167] sm:$0xff] }
 0x1a5   : > { %v1069_v28 = vld [vmem:[#allocation2 + $0x230] sm:$0xff]  ;;  %v2345_v51 = vld [vmem:[#allocation2 + $0x148] sm:$0xff]  ;;  %v2314_v25 = vmax.f32 %v5761_v17, %v5763_v62  ;;  %2891 = vst.msk [vmem:[#allocation2 + $0x108] sm:$0xff] %vm171_vm0, %v2501_v4  ;;  %4479 = vmatprep.mubr.msk.f32.mxu1 %vm171_vm0, %v2501_v4  ;;  %v6315_v4 = vmax.f32 %v5725_v20, %v5703_v23  ;;  %v6316_v20 = vmax.f32 %v5699_v1, %v5703_v23 }
 0x1a6   : > { %v1101_v12 = vmax.f32 %v1037_v49, %v1069_v28  ;;  %v2344_v41 = vld [vmem:[#allocation2 + $0x130] sm:$0xff]  ;;  %v5771_v43 = vld [vmem:[#allocation2 + $0x1e8] sm:$0xff]  ;;  %v5776_v36 = vmax.f32 %v2313_v44, %v2345_v51  ;;  %v2315_v49 = vmax.f32 %v5780_v16, %v5782_v10 }
 0x1a7   : > { %v2376_v18 = vmax.f32 %v2312_v19, %v2344_v41  ;;  %v2005_v29 = vmax.f32 %v5622_v59, %v5771_v43  ;;  %v5790_v21 = vmax.f32 %v2003_v33, %v5771_v43  ;;  %v2129_v53 = vmax.f32 %v5655_v35, %v5771_v43  ;;  %v2407_v11 = vld [vmem:[#allocation2 + $0x129] sm:$0xff]  ;;  %v2408_v60 = vld [vmem:[#allocation2 + $0x131] sm:$0xff] }
 0x1a8   : > { %v2191_v62 = vmax.f32 %v2127_v63, %v5771_v43  ;;  %v5800_v5 = vld [vmem:[#allocation2 + $0x1f0] sm:$0xff]  ;;  %v5802_v7 = vld [vmem:[#allocation2 + $0x208] sm:$0xff]  ;;  %v2502_v33 = vmax.f32 %v2438_v26, %v2470_v32  ;;  %v1165_v35 = vmax.f32 %v1101_v12, %v1133_v8  ;;  %v2439_v31 = vmax.f32 %v2375_v34, %v2407_v11 }
 0x1a9   : > { %v2440_v9 = vmax.f32 %v2376_v18, %v2408_v60  ;;  %v5809_v59 = vmax.f32 %v2984_v15, %v5743_v24  ;;  %v2192_v63 = vmax.f32 %v2128_v0, %v5800_v5  ;;  %v1197_v46 = vld [vmem:[#allocation2 + $0x232] sm:$0xff]  ;;  %v2006_v22 = vmax.f32 %v5650_v13, %v5800_v5  ;;  %v2471_v0 = vld [vmem:[#allocation2 + $0x12a] sm:$0xff] }
 0x1aa   : > { %2223 = vst.msk [vmem:[#allocation2 + $0x1a8] sm:$0xff] %vm171_vm0, %v2191_v62  ;;  %v2130_v58 = vmax.f32 %v5687_v50, %v5800_v5  ;;  %v2193_v15 = vmax.f32 %v2129_v53, %v5802_v7  ;;  %4480 = vmatmul.mubr.msk.f32.gmra.mrb[28].mxu1 %vm171_vm0, %v2502_v33  ;;  %2892 = vst.msk [vmem:[#allocation2 + $0x110] sm:$0xff] %vm171_vm0, %v2502_v33  ;;  %v1229_v57 = vmax.f32 %v1165_v35, %v1197_v46  ;;  %v2409_v17 = vld [vmem:[#allocation2 + $0x149] sm:$0xff] }
 0x1ab   : > { %v5831_v27 = vmax.f32 %v6314_v42, %v5800_v5  ;;  %2224 = vst.msk [vmem:[#allocation2 + $0x1b0] sm:$0xff] %vm171_vm0, %v2192_v63  ;;  %v5834_v6 = vld [vmem:[#allocation2 + $0xe8] sm:$0xff]  ;;  %v5836_v50 = vld [vmem:[#allocation2 + $0xf0] sm:$0xff]  ;;  %v5839_v28 = vmax.f32 %v2005_v29, %v5802_v7  ;;  %v2503_v61 = vmax.f32 %v2439_v31, %v2471_v0  ;;  %v2504_v19 = vmax.f32 %v2440_v9, %v2472_v56 }
 0x1ac   : > { %v2346_v44 = vld [vmem:[#allocation2 + $0x150] sm:$0xff]  ;;  %v3173_v26 = vmax.f32 %v6315_v4, %v5834_v6  ;;  %v2131_v54 = vmax.f32 %v5790_v21, %v5802_v7  ;;  %2225 = vst.msk [vmem:[#allocation2 + $0x1c8] sm:$0xff] %vm171_vm0, %v2193_v15  ;;  %4407 = vmatmul.mubr.msk.f32.gmra.mrb[62].mxu0 %vm171_vm0, %v1229_v57  ;;  %1912 = vst.msk [vmem:[#allocation2 + $0x230] sm:$0xff] %vm171_vm0, %v1229_v57  ;;  %v2441_v13 = vmax.f32 %v5776_v36, %v2409_v17  ;;  %v5862_v21 = vld [vmem:[#allocation2 + $0x228] sm:$0xff] }
 0x1ad   : > { %v2378_v32 = vmax.f32 %v2314_v25, %v2346_v44  ;;  %v2252_v12 = vld [vmem:[#allocation2 + $0x16e] sm:$0xff]  ;;  %v2987_v34 = vmax.f32 %v5703_v23, %v5834_v6  ;;  %v5857_v41 = vmax.f32 %v6316_v20, %v5834_v6  ;;  %v3111_v51 = vmax.f32 %v5737_v14, %v5834_v6  ;;  %4411 = vmatprep.mubr.msk.f32.mxu0 %vm171_vm0, %v4893_v38  ;;  %v2253_v62 = vld [vmem:[#allocation2 + $0x186] sm:$0xff] }
 0x1ae   : > { %v3174_v18 = vmax.f32 %v3110_v3, %v5836_v50  ;;  %v1976_v29 = vld [vmem:[#allocation2 + $0x210] sm:$0xff]  ;;  %2893 = vst.msk [vmem:[#allocation2 + $0x128] sm:$0xff] %vm171_vm0, %v2503_v61  ;;  %2894 = vst.msk [vmem:[#allocation2 + $0x130] sm:$0xff] %vm171_vm0, %v2504_v19  ;;  %v2988_v1 = vmax.f32 %v5743_v24, %v5836_v50  ;;  %v5875_v23 = vmax.f32 %v2986_v30, %v5836_v50  ;;  %v5879_v53 = vld [vmem:[#allocation2 + $0x108] sm:$0xff]  ;;  %4482 = vmatprep.mubr.msk.f32.mxu1 %vm171_vm0, %v2503_v61 }
 0x1af   : > { %v2473_v36 = vld [vmem:[#allocation2 + $0x14a] sm:$0xff]  ;;  %3205 = vst.msk [vmem:[#allocation2 + $0xa8] sm:$0xff] %vm171_vm0, %v3173_v26  ;;  %v3112_v38 = vmax.f32 %v5809_v59, %v5836_v50  ;;  %v2194_v14 = vmax.f32 %v2130_v58, %v1976_v29  ;;  %v2008_v11 = vmax.f32 %v5800_v5, %v1976_v29  ;;  %v2070_v60 = vmax.f32 %v2006_v22, %v1976_v29 }
 0x1b0   : > { %v2284_v25 = vld [vmem:[#allocation2 + $0x16f] sm:$0xff]  ;;  %v2285_v8 = vld [vmem:[#allocation2 + $0x187] sm:$0xff]  ;;  %3206 = vst.msk [vmem:[#allocation2 + $0xb0] sm:$0xff] %vm171_vm0, %v3174_v18  ;;  %v2132_v33 = vmax.f32 %v5831_v27, %v1976_v29  ;;  %v3175_v48 = vmax.f32 %v3111_v51, %v5879_v53  ;;  %4483 = vmatmul.mubr.msk.f32.gmra.mrb[30].mxu1 %vm171_vm0, %v2504_v19  ;;  %v2133_v31 = vmax.f32 %v5839_v28, %v5862_v21 }
 0x1b1   : > { %v2410_v24 = vld [vmem:[#allocation2 + $0x151] sm:$0xff]  ;;  %2226 = vst.msk [vmem:[#allocation2 + $0x1d0] sm:$0xff] %vm171_vm0, %v2194_v14  ;;  %v2195_v9 = vmax.f32 %v2131_v54, %v5862_v21  ;;  %4412 = vmatmul.mubr.msk.f32.vlgmr.msra.gmra.mrb[32].mxu0 %vm171_vm0, %v4889_v37  ;;  %v2505_v5 = vmax.f32 %v2441_v13, %v2473_v36  ;;  %v2347_v3 = vld [vmem:[#allocation2 + $0x168] sm:$0xff]  ;;  %v2989_v63 = vmax.f32 %v5834_v6, %v5879_v53 }
 0x1b2   : > { %v5887_v30 = vld [vmem:[#allocation2 + $0x18e] sm:$0xff]  ;;  %v2442_v59 = vmax.f32 %v2378_v32, %v2410_v24  ;;  %3207 = vst.msk [vmem:[#allocation2 + $0xc8] sm:$0xff] %vm171_vm0, %v3175_v48  ;;  %4414 = vmatprep.mubr.msk.f32.mxu0 %vm171_vm0, %v4901_v40  ;;  %v2379_v58 = vmax.f32 %v2315_v49, %v2347_v3  ;;  %v2316_v15 = vmax.f32 %v2252_v12, %v2284_v25  ;;  %v2255_v36 = vld [vmem:[#allocation2 + $0x1a6] sm:$0xff] }
 0x1b3   : > { %v5889_v35 = vld [vmem:[#allocation2 + $0x18f] sm:$0xff]  ;;  %v2317_v37 = vmax.f32 %v2253_v62, %v2285_v8  ;;  %v5908_v57 = vmax.f32 %v2987_v34, %v5879_v53  ;;  %v3113_v0 = vmax.f32 %v5857_v41, %v5879_v53  ;;  %2227 = vst.msk [vmem:[#allocation2 + $0x1e8] sm:$0xff] %vm171_vm0, %v2195_v9  ;;  %4485 = vmatprep.mubr.msk.f32.mxu1 %vm171_vm0, %v2505_v5  ;;  %2895 = vst.msk [vmem:[#allocation2 + $0x148] sm:$0xff] %vm171_vm0, %v2505_v5  ;;  %v2287_v25 = vld [vmem:[#allocation2 + $0x1a7] sm:$0xff] }
 0x1b4   : > { %v5900_v46 = vld [vmem:[#allocation2 + $0x110] sm:$0xff]  ;;  %v2318_v10 = vmax.f32 %v5887_v30, %v5889_v35  ;;  %v5918_v27 = vld [vmem:[#allocation2 + $0x248] sm:$0xff] }
 0x1b5   : > { %v2104_v22 = vld [vmem:[#allocation2 + $0x250] sm:$0xff]  ;;  %v3176_v56 = vmax.f32 %v3112_v38, %v5900_v46  ;;  %v2197_v6 = vmax.f32 %v2133_v31, %v5918_v27  ;;  %v2349_v44 = vld [vmem:[#allocation2 + $0x188] sm:$0xff]  ;;  %4415 = vmatmul.mubr.msk.f32.gmra.mrb[34].mxu0 %vm171_vm0, %v4897_v39  ;;  %v2990_v41 = vmax.f32 %v5836_v50, %v5900_v46  ;;  %v5931_v51 = vmax.f32 %v2988_v1, %v5900_v46 }
 0x1b6   : > { %v2474_v40 = vld [vmem:[#allocation2 + $0x152] sm:$0xff]  ;;  %v2411_v17 = vld [vmem:[#allocation2 + $0x169] sm:$0xff]  ;;  %v2381_v20 = vmax.f32 %v2317_v37, %v2349_v44  ;;  %v3114_v18 = vmax.f32 %v5875_v23, %v5900_v46  ;;  %4417 = vmatprep.mubr.msk.f32.mxu0 %vm171_vm0, %v4916_v47 }
 0x1b7   : > { %v2348_v16 = vld [vmem:[#allocation2 + $0x170] sm:$0xff]  ;;  %v2506_v28 = vmax.f32 %v2442_v59, %v2474_v40  ;;  %v2443_v61 = vmax.f32 %v2379_v58, %v2411_v17  ;;  %3208 = vst.msk [vmem:[#allocation2 + $0xd0] sm:$0xff] %vm171_vm0, %v3176_v56  ;;  %v5922_v13 = vld [vmem:[#allocation2 + $0x128] sm:$0xff]  ;;  %2229 = vst.msk [vmem:[#allocation2 + $0x208] sm:$0xff] %vm171_vm0, %v2197_v6  ;;  %v2319_v59 = vmax.f32 %v2255_v36, %v2287_v25 }
 0x1b8   : > { %v2040_v49 = vld [vmem:[#allocation2 + $0x230] sm:$0xff]  ;;  %v2380_v19 = vmax.f32 %v2316_v15, %v2348_v16  ;;  %v3177_v29 = vmax.f32 %v3113_v0, %v5922_v13  ;;  %v2991_v50 = vmax.f32 %v5879_v53, %v5922_v13  ;;  %v5943_v1 = vmax.f32 %v2989_v63, %v5922_v13  ;;  %v2257_v62 = vld [vmem:[#allocation2 + $0x1c6] sm:$0xff] }
 0x1b9   : > { %v2168_v42 = vld [vmem:[#allocation2 + $0x270] sm:$0xff]  ;;  %v2072_v4 = vmax.f32 %v2008_v11, %v2040_v49  ;;  %v2134_v26 = vmax.f32 %v2070_v60, %v2040_v49  ;;  %v2196_v54 = vmax.f32 %v2132_v33, %v2040_v49  ;;  %4486 = vmatmul.mubr.msk.f32.gmra.mrb[0].mxu1 %vm171_vm0, %v2506_v28  ;;  %2896 = vst.msk [vmem:[#allocation2 + $0x150] sm:$0xff] %vm171_vm0, %v2506_v28  ;;  %v2289_v8 = vld [vmem:[#allocation2 + $0x1c7] sm:$0xff] }
 0x1ba   : > { %v5924_v32 = vld [vmem:[#allocation2 + $0x130] sm:$0xff]  ;;  %v3115_v11 = vmax.f32 %v5908_v57, %v5922_v13  ;;  %3209 = vst.msk [vmem:[#allocation2 + $0xe8] sm:$0xff] %vm171_vm0, %v3177_v29  ;;  %4418 = vmatmul.mubr.msk.f32.gmra.mrb[36].mxu0 %vm171_vm0, %v4909_v45  ;;  %v5955_v63 = vld [vmem:[#allocation2 + $0x148] sm:$0xff]  ;;  %v2321_v15 = vmax.f32 %v2257_v62, %v2289_v8  ;;  %v2007_v36 = vmax.f32 %v5771_v43, %v5802_v7 }
 0x1bb   : > { %v2475_v12 = vld [vmem:[#allocation2 + $0x16a] sm:$0xff]  ;;  %v2136_v38 = vmax.f32 %v2072_v4, %v2104_v22  ;;  %v2198_v14 = vmax.f32 %v2134_v26, %v2104_v22  ;;  %2228 = vst.msk [vmem:[#allocation2 + $0x1f0] sm:$0xff] %vm171_vm0, %v2196_v54  ;;  %v3178_v60 = vmax.f32 %v3114_v18, %v5924_v32  ;;  %v2476_v24 = vld [vmem:[#allocation2 + $0x172] sm:$0xff]  ;;  %4420 = vmatprep.mubr.msk.f32.mxu0 %vm171_vm0, %v4928_v55 }
 0x1bc   : > { %v2412_v34 = vld [vmem:[#allocation2 + $0x171] sm:$0xff]  ;;  %v2507_v33 = vmax.f32 %v2443_v61, %v2475_v12  ;;  %v2413_v53 = vld [vmem:[#allocation2 + $0x189] sm:$0xff]  ;;  %v2992_v57 = vmax.f32 %v5900_v46, %v5924_v32  ;;  %v5965_v0 = vmax.f32 %v2990_v41, %v5924_v32  ;;  %v3116_v56 = vmax.f32 %v5931_v51, %v5924_v32 }
 0x1bd   : > { %v2256_v39 = vld [vmem:[#allocation2 + $0x1ae] sm:$0xff]  ;;  %v2444_v48 = vmax.f32 %v2380_v19, %v2412_v34  ;;  %v2200_v35 = vmax.f32 %v2136_v38, %v2168_v42  ;;  %2230 = vst.msk [vmem:[#allocation2 + $0x210] sm:$0xff] %vm171_vm0, %v2198_v14  ;;  %v2445_v47 = vmax.f32 %v2381_v20, %v2413_v53  ;;  %3210 = vst.msk [vmem:[#allocation2 + $0xf0] sm:$0xff] %vm171_vm0, %v3178_v60  ;;  %v2259_v37 = vld [vmem:[#allocation2 + $0x1e6] sm:$0xff] }
 0x1be   : > { %v2288_v23 = vld [vmem:[#allocation2 + $0x1af] sm:$0xff]  ;;  %4488 = vmatprep.mubr.msk.f32.mxu1 %vm171_vm0, %v2507_v33  ;;  %2897 = vst.msk [vmem:[#allocation2 + $0x168] sm:$0xff] %vm171_vm0, %v2507_v33  ;;  %v3179_v40 = vmax.f32 %v3115_v11, %v5955_v63  ;;  %v2291_v55 = vld [vmem:[#allocation2 + $0x1e7] sm:$0xff]  ;;  %v2993_v44 = vmax.f32 %v5922_v13, %v5955_v63  ;;  %4421 = vmatmul.mubr.msk.f32.gmra.mrb[38].mxu0 %vm171_vm0, %v4923_v52 }
 0x1bf   : > { %v2350_v30 = vld [vmem:[#allocation2 + $0x190] sm:$0xff]  ;;  %v2508_v22 = vmax.f32 %v2444_v48, %v2476_v24  ;;  %v2320_v58 = vmax.f32 %v2256_v39, %v2288_v23  ;;  %2232 = vst.msk [vmem:[#allocation2 + $0x230] sm:$0xff] %vm171_vm0, %v2200_v35  ;;  %v2351_v17 = vld [vmem:[#allocation2 + $0x1a8] sm:$0xff]  ;;  %v2323_v12 = vmax.f32 %v2259_v37, %v2291_v55  ;;  %v5980_v41 = vmax.f32 %v2991_v50, %v5955_v63  ;;  %v6317_v35 = vld [vmem:[#allocation3_spill] sm:$0xff] }
 0x1c0   : > { %v2477_v31 = vld [vmem:[#allocation2 + $0x18a] sm:$0xff]  ;;  %v2382_v9 = vmax.f32 %v2318_v10, %v2350_v30  ;;  %v2478_v42 = vld [vmem:[#allocation2 + $0x192] sm:$0xff]  ;;  %v2383_v6 = vmax.f32 %v2319_v59, %v2351_v17  ;;  %3211 = vst.msk [vmem:[#allocation2 + $0x108] sm:$0xff] %vm171_vm0, %v3179_v40  ;;  %v3117_v51 = vmax.f32 %v5943_v1, %v5955_v63  ;;  %4423 = vmatprep.mubr.msk.f32.mxu0 %vm171_vm0, %v4939_v2 }
 0x1c1   : > { %v2414_v5 = vld [vmem:[#allocation2 + $0x191] sm:$0xff]  ;;  %4489 = vmatmul.mubr.msk.f32.gmra.mrb[2].mxu1 %vm171_vm0, %v2508_v22  ;;  %2898 = vst.msk [vmem:[#allocation2 + $0x170] sm:$0xff] %vm171_vm0, %v2508_v22  ;;  %v2509_v10 = vmax.f32 %v2445_v47, %v2477_v31  ;;  %v2415_v46 = vld [vmem:[#allocation2 + $0x1a9] sm:$0xff] }
 0x1c2   : > { %v2258_v3 = vld [vmem:[#allocation2 + $0x1ce] sm:$0xff]  ;;  %v2446_v49 = vmax.f32 %v2382_v9, %v2414_v5  ;;  %v2261_v34 = vld [vmem:[#allocation2 + $0x206] sm:$0xff]  ;;  %v2447_v25 = vmax.f32 %v2383_v6, %v2415_v46  ;;  %4424 = vmatmul.mubr.msk.f32.gmra.mrb[40].mxu0 %vm171_vm0, %v6317_v35 }
 0x1c3   : > { %v2290_v45 = vld [vmem:[#allocation2 + $0x1cf] sm:$0xff]  ;;  %v2293_v20 = vld [vmem:[#allocation2 + $0x207] sm:$0xff]  ;;  %4491 = vmatprep.mubr.msk.f32.mxu1 %vm171_vm0, %v2509_v10  ;;  %2899 = vst.msk [vmem:[#allocation2 + $0x188] sm:$0xff] %vm171_vm0, %v2509_v10 }
 0x1c4   : > { %v2352_v16 = vld [vmem:[#allocation2 + $0x1b0] sm:$0xff]  ;;  %v2353_v19 = vld [vmem:[#allocation2 + $0x1c8] sm:$0xff]  ;;  %v2322_v54 = vmax.f32 %v2258_v3, %v2290_v45  ;;  %v2510_v39 = vmax.f32 %v2446_v49, %v2478_v42  ;;  %v2325_v48 = vmax.f32 %v2261_v34, %v2293_v20 }
 0x1c5   : > { %v2384_v28 = vmax.f32 %v2320_v58, %v2352_v16  ;;  %v2416_v61 = vld [vmem:[#allocation2 + $0x1b1] sm:$0xff]  ;;  %v2385_v26 = vmax.f32 %v2321_v15, %v2353_v19  ;;  %v2417_v18 = vld [vmem:[#allocation2 + $0x1c9] sm:$0xff] }
 0x1c6   : > { %v5975_v4 = vld [vmem:[#allocation2 + $0x150] sm:$0xff]  ;;  %v2355_v1 = vld [vmem:[#allocation2 + $0x1e8] sm:$0xff]  ;;  %4492 = vmatmul.mubr.msk.f32.gmra.mrb[4].mxu1 %vm171_vm0, %v2510_v39  ;;  %2900 = vst.msk [vmem:[#allocation2 + $0x190] sm:$0xff] %vm171_vm0, %v2510_v39 }
 0x1c7   : > { %v3180_v13 = vmax.f32 %v3116_v56, %v5975_v4  ;;  %v2260_v29 = vld [vmem:[#allocation2 + $0x1ee] sm:$0xff]  ;;  %v2448_v38 = vmax.f32 %v2384_v28, %v2416_v61  ;;  %v2449_v14 = vmax.f32 %v2385_v26, %v2417_v18  ;;  %v2387_v60 = vmax.f32 %v2323_v12, %v2355_v1 }
 0x1c8   : > { %v2292_v52 = vld [vmem:[#allocation2 + $0x1ef] sm:$0xff]  ;;  %v2994_v31 = vmax.f32 %v5924_v32, %v5975_v4  ;;  %v3056_v9 = vmax.f32 %v2992_v57, %v5975_v4  ;;  %v3118_v5 = vmax.f32 %v5965_v0, %v5975_v4  ;;  %v2071_v18 = vmax.f32 %v2007_v36, %v5862_v21 }
 0x1c9   : > { %v2354_v50 = vld [vmem:[#allocation2 + $0x1d0] sm:$0xff]  ;;  %3212 = vst.msk [vmem:[#allocation2 + $0x110] sm:$0xff] %vm171_vm0, %v3180_v13  ;;  %v2324_v33 = vmax.f32 %v2260_v29, %v2292_v52  ;;  %v5992_v24 = vld [vmem:[#allocation2 + $0x168] sm:$0xff] }
 0x1ca   : > { %v2479_v23 = vld [vmem:[#allocation2 + $0x1aa] sm:$0xff]  ;;  %v2480_v62 = vld [vmem:[#allocation2 + $0x1b2] sm:$0xff]  ;;  %v2386_v11 = vmax.f32 %v2322_v54, %v2354_v50  ;;  %v3181_v59 = vmax.f32 %v3117_v51, %v5992_v24  ;;  %v2995_v17 = vmax.f32 %v5955_v63, %v5992_v24  ;;  %v3057_v16 = vmax.f32 %v2993_v44, %v5992_v24 }
 0x1cb   : > { %v2481_v8 = vld [vmem:[#allocation2 + $0x1ca] sm:$0xff]  ;;  %v2511_v2 = vmax.f32 %v2447_v25, %v2479_v23  ;;  %v2512_v53 = vmax.f32 %v2448_v38, %v2480_v62  ;;  %v2482_v37 = vld [vmem:[#allocation2 + $0x1d2] sm:$0xff]  ;;  %v3119_v55 = vmax.f32 %v5980_v41, %v5992_v24  ;;  %v6320_v41 = vld [vmem:[#allocation7_spill] sm:$0xff] }
 0x1cc   : > { %v2513_v30 = vmax.f32 %v2449_v14, %v2481_v8  ;;  %v2418_v47 = vld [vmem:[#allocation2 + $0x1d1] sm:$0xff]  ;;  %v2419_v22 = vld [vmem:[#allocation2 + $0x1e9] sm:$0xff]  ;;  %3213 = vst.msk [vmem:[#allocation2 + $0x128] sm:$0xff] %vm171_vm0, %v3181_v59 }
 0x1cd   : > { %v6318_v3 = vld [vmem:[#allocation5_spill] sm:$0xff]  ;;  %v2357_v45 = vld [vmem:[#allocation2 + $0x208] sm:$0xff]  ;;  %4494 = vmatprep.mubr.msk.f32.mxu1 %vm171_vm0, %v2511_v2  ;;  %2901 = vst.msk [vmem:[#allocation2 + $0x1a8] sm:$0xff] %vm171_vm0, %v2511_v2  ;;  %2902 = vst.msk [vmem:[#allocation2 + $0x1b0] sm:$0xff] %vm171_vm0, %v2512_v53  ;;  %v2450_v32 = vmax.f32 %v2386_v11, %v2418_v47  ;;  %v2451_v57 = vmax.f32 %v2387_v60, %v2419_v22 }
 0x1ce   : > { %4426 = vmatprep.mubr.msk.f32.mxu0 %vm171_vm0, %v6318_v3  ;;  %v2356_v58 = vld [vmem:[#allocation2 + $0x1f0] sm:$0xff]  ;;  %2903 = vst.msk [vmem:[#allocation2 + $0x1c8] sm:$0xff] %vm171_vm0, %v2513_v30  ;;  %v2389_v40 = vmax.f32 %v2325_v48, %v2357_v45  ;;  %v2935_v46 = vld [vmem:[#allocation2 + $0x188] sm:$0xff]  ;;  %4495 = vmatmul.mubr.msk.f32.gmra.mrb[6].mxu1 %vm171_vm0, %v2512_v53  ;;  %v6321_v11 = vld [vmem:[#allocation6_spill] sm:$0xff] }
 0x1cf   : > { %v6006_v15 = vld [vmem:[#allocation2 + $0x170] sm:$0xff]  ;;  %v2388_v56 = vmax.f32 %v2324_v33, %v2356_v58  ;;  %v2514_v28 = vmax.f32 %v2450_v32, %v2482_v37  ;;  %v6319_v19 = vld [vmem:[#allocation4_spill] sm:$0xff]  ;;  %v3183_v12 = vmax.f32 %v3119_v55, %v2935_v46  ;;  %4497 = vmatprep.mubr.msk.f32.mxu1 %vm171_vm0, %v2513_v30  ;;  %v2997_v52 = vmax.f32 %v5992_v24, %v2935_v46 }
 0x1d0   : > { %v2483_v0 = vld [vmem:[#allocation2 + $0x1ea] sm:$0xff]  ;;  %v3182_v10 = vmax.f32 %v3118_v5, %v6006_v15  ;;  %4427 = vmatmul.mubr.msk.f32.gmra.mrb[42].mxu0 %vm171_vm0, %v6319_v19  ;;  %v2996_v44 = vmax.f32 %v5975_v4, %v6006_v15  ;;  %v3058_v26 = vmax.f32 %v2994_v31, %v6006_v15  ;;  %v3120_v54 = vmax.f32 %v3056_v9, %v6006_v15  ;;  %v2484_v34 = vld [vmem:[#allocation2 + $0x1f2] sm:$0xff] }
 0x1d1   : > { %v2420_v49 = vld [vmem:[#allocation2 + $0x1f1] sm:$0xff]  ;;  %v2515_v61 = vmax.f32 %v2451_v57, %v2483_v0  ;;  %v2421_v20 = vld [vmem:[#allocation2 + $0x209] sm:$0xff]  ;;  %2904 = vst.msk [vmem:[#allocation2 + $0x1d0] sm:$0xff] %vm171_vm0, %v2514_v28  ;;  %4429 = vmatprep.mubr.msk.f32.mxu0 %vm171_vm0, %v6320_v41  ;;  %v3059_v39 = vmax.f32 %v2995_v17, %v2935_v46  ;;  %v3121_v25 = vmax.f32 %v3057_v16, %v2935_v46  ;;  %3215 = vst.msk [vmem:[#allocation2 + $0x148] sm:$0xff] %vm171_vm0, %v3183_v12 }
 0x1d2   : > { %v2262_v42 = vld [vmem:[#allocation2 + $0x20e] sm:$0xff]  ;;  %v2452_v63 = vmax.f32 %v2388_v56, %v2420_v49  ;;  %3214 = vst.msk [vmem:[#allocation2 + $0x130] sm:$0xff] %vm171_vm0, %v3182_v10  ;;  %v2453_v4 = vmax.f32 %v2389_v40, %v2421_v20  ;;  %4498 = vmatmul.mubr.msk.f32.gmra.mrb[8].mxu1 %vm171_vm0, %v2514_v28 }
 0x1d3   : > { %v2294_v6 = vld [vmem:[#allocation2 + $0x20f] sm:$0xff]  ;;  %2905 = vst.msk [vmem:[#allocation2 + $0x1e8] sm:$0xff] %vm171_vm0, %v2515_v61  ;;  %4500 = vmatprep.mubr.msk.f32.mxu1 %vm171_vm0, %v2515_v61  ;;  %v3265_v12 = vld [vmem:[#allocation2 + $0x67] sm:$0xff] }
 0x1d4   : > { %v2516_v51 = vmax.f32 %v2452_v63, %v2484_v34  ;;  %v2326_v13 = vmax.f32 %v2262_v42, %v2294_v6  ;;  %v2103_v29 = vld [vmem:[#allocation2 + $0x248] sm:$0xff]  ;;  %v2936_v38 = vld [vmem:[#allocation2 + $0x190] sm:$0xff]  ;;  %4430 = vmatmul.mubr.msk.f32.gmra.mrb[44].mxu0 %vm171_vm0, %v6321_v11 }
 0x1d5   : > { %v2998_v14 = vmax.f32 %v6006_v15, %v2936_v38  ;;  %v3060_v50 = vmax.f32 %v2996_v44, %v2936_v38  ;;  %v3122_v1 = vmax.f32 %v3058_v26, %v2936_v38  ;;  %v3184_v23 = vmax.f32 %v3120_v54, %v2936_v38  ;;  %v2485_v62 = vld [vmem:[#allocation2 + $0x20a] sm:$0xff]  ;;  %v2486_v10 = vld [vmem:[#allocation2 + $0x212] sm:$0xff] }
 0x1d6   : > { %2906 = vst.msk [vmem:[#allocation2 + $0x1f0] sm:$0xff] %vm171_vm0, %v2516_v51  ;;  %v2358_v43 = vld [vmem:[#allocation2 + $0x210] sm:$0xff]  ;;  %v6041_v7 = vld [vmem:[#allocation2 + $0x1a8] sm:$0xff]  ;;  %v2517_v8 = vmax.f32 %v2453_v4, %v2485_v62  ;;  %v2135_v33 = vmax.f32 %v2071_v18, %v2103_v29  ;;  %4501 = vmatmul.mubr.msk.f32.gmra.mrb[10].mxu1 %vm171_vm0, %v2516_v51 }
 0x1d7   : > { %v6043_v21 = vld [vmem:[#allocation2 + $0x1b0] sm:$0xff]  ;;  %v6045_v36 = vld [vmem:[#allocation2 + $0x1c8] sm:$0xff]  ;;  %v2390_v60 = vmax.f32 %v2326_v13, %v2358_v43  ;;  %3216 = vst.msk [vmem:[#allocation2 + $0x150] sm:$0xff] %vm171_vm0, %v3184_v23  ;;  %v2999_v48 = vmax.f32 %v2935_v46, %v6041_v7  ;;  %v3061_v24 = vmax.f32 %v2997_v52, %v6041_v7  ;;  %v3123_v2 = vmax.f32 %v3059_v39, %v6041_v7 }
 0x1d8   : > { %v3185_v53 = vmax.f32 %v3121_v25, %v6041_v7  ;;  %v6322_v30 = vld [vmem:[#allocation9_spill] sm:$0xff]  ;;  %v2167_v35 = vld [vmem:[#allocation2 + $0x268] sm:$0xff]  ;;  %v3062_v47 = vmax.f32 %v2998_v14, %v6043_v21  ;;  %v3124_v31 = vmax.f32 %v3060_v50, %v6043_v21  ;;  %v3186_v9 = vmax.f32 %v3122_v1, %v6043_v21  ;;  %2907 = vst.msk [vmem:[#allocation2 + $0x208] sm:$0xff] %vm171_vm0, %v2517_v8 }
 0x1d9   : > { %4432 = vmatprep.mubr.msk.f32.mxu0 %vm171_vm0, %v6322_v30  ;;  %v3063_v5 = vmax.f32 %v2999_v48, %v6045_v36  ;;  %v3125_v59 = vmax.f32 %v3061_v24, %v6045_v36  ;;  %v3187_v3 = vmax.f32 %v3123_v2, %v6045_v36  ;;  %v2422_v22 = vld [vmem:[#allocation2 + $0x211] sm:$0xff]  ;;  %4503 = vmatprep.mubr.msk.f32.mxu1 %vm171_vm0, %v2517_v8  ;;  %v6323_v37 = vld [vmem:[#allocation8_spill] sm:$0xff] }
 0x1da   : > { %3217 = vst.msk [vmem:[#allocation2 + $0x168] sm:$0xff] %vm171_vm0, %v3185_v53  ;;  %3218 = vst.msk [vmem:[#allocation2 + $0x170] sm:$0xff] %vm171_vm0, %v3186_v9  ;;  %v6067_v58 = vld [vmem:[#allocation2 + $0x1d0] sm:$0xff]  ;;  %v6069_v45 = vld [vmem:[#allocation2 + $0x1e8] sm:$0xff]  ;;  %v2454_v15 = vmax.f32 %v2390_v60, %v2422_v22  ;;  %v2199_v32 = vmax.f32 %v2135_v33, %v2167_v35  ;;  %4433 = vmatmul.mubr.msk.f32.gmra.mrb[46].mxu0 %vm171_vm0, %v6323_v37  ;;  %v3000_v56 = vmax.f32 %v2936_v38, %v6043_v21 }
 0x1db   : > { %3219 = vst.msk [vmem:[#allocation2 + $0x188] sm:$0xff] %vm171_vm0, %v3187_v3  ;;  %v3126_v57 = vmax.f32 %v3062_v47, %v6067_v58  ;;  %v3188_v0 = vmax.f32 %v3124_v31, %v6067_v58  ;;  %v3127_v40 = vmax.f32 %v3063_v5, %v6069_v45  ;;  %v3189_v17 = vmax.f32 %v3125_v59, %v6069_v45  ;;  %v3231_v42 = vld [vmem:[#allocation2 + $0x46] sm:$0xff]  ;;  %v3232_v63 = vld [vmem:[#allocation2 + $0x4e] sm:$0xff] }
 0x1dc   : > { %2231 = vst.msk [vmem:[#allocation2 + $0x228] sm:$0xff] %vm171_vm0, %v2199_v32  ;;  %v2518_v49 = vmax.f32 %v2454_v15, %v2486_v10  ;;  %v3263_v6 = vld [vmem:[#allocation2 + $0x47] sm:$0xff]  ;;  %v3064_v28 = vmax.f32 %v3000_v56, %v6067_v58  ;;  %v3264_v44 = vld [vmem:[#allocation2 + $0x4f] sm:$0xff]  ;;  %v3001_v30 = vmax.f32 %v6041_v7, %v6045_v36  ;;  %v3002_v37 = vmax.f32 %v6043_v21, %v6067_v58 }
 0x1dd   : > { %v6080_v16 = vld [vmem:[#allocation2 + $0x1f0] sm:$0xff]  ;;  %3220 = vst.msk [vmem:[#allocation2 + $0x190] sm:$0xff] %vm171_vm0, %v3188_v0  ;;  %3221 = vst.msk [vmem:[#allocation2 + $0x1a8] sm:$0xff] %vm171_vm0, %v3189_v17  ;;  %v3295_v19 = vmax.f32 %v3231_v42, %v3263_v6  ;;  %v3327_v26 = vld [vmem:[#allocation2 + $0x48] sm:$0xff]  ;;  %v3296_v18 = vmax.f32 %v3232_v63, %v3264_v44  ;;  %v3003_v21 = vmax.f32 %v6045_v36, %v6069_v45 }
 0x1de   : > { %v3190_v55 = vmax.f32 %v3126_v57, %v6080_v16  ;;  %4504 = vmatmul.mubr.msk.f32.gmra.mrb[12].mxu1 %vm171_vm0, %v2518_v49  ;;  %2908 = vst.msk [vmem:[#allocation2 + $0x210] sm:$0xff] %vm171_vm0, %v2518_v49  ;;  %v3233_v54 = vld [vmem:[#allocation2 + $0x66] sm:$0xff]  ;;  %v3128_v51 = vmax.f32 %v3064_v28, %v6080_v16  ;;  %v3234_v29 = vld [vmem:[#allocation2 + $0x6e] sm:$0xff] }
 0x1df   : > { %v6087_v46 = vld [vmem:[#allocation2 + $0x208] sm:$0xff]  ;;  %v3359_v38 = vmax.f32 %v3295_v19, %v3327_v26  ;;  %v3328_v14 = vld [vmem:[#allocation2 + $0x50] sm:$0xff]  ;;  %v3297_v50 = vmax.f32 %v3233_v54, %v3265_v12  ;;  %v3065_v54 = vmax.f32 %v3001_v30, %v6069_v45 }
 0x1e0   : > { %3222 = vst.msk [vmem:[#allocation2 + $0x1b0] sm:$0xff] %vm171_vm0, %v3190_v55  ;;  %v3191_v61 = vmax.f32 %v3127_v40, %v6087_v46  ;;  %v3266_v52 = vld [vmem:[#allocation2 + $0x6f] sm:$0xff]  ;;  %v3235_v1 = vld [vmem:[#allocation2 + $0x86] sm:$0xff]  ;;  %v3360_v9 = vmax.f32 %v3296_v18, %v3328_v14 }
 0x1e1   : > { %v3267_v23 = vld [vmem:[#allocation2 + $0x87] sm:$0xff]  ;;  %v2360_v43 = vld [vmem:[#allocation2 + $0x230] sm:$0xff]  ;;  %v3298_v24 = vmax.f32 %v3234_v29, %v3266_v52 }
 0x1e2   : > { %3223 = vst.msk [vmem:[#allocation2 + $0x1c8] sm:$0xff] %vm171_vm0, %v3191_v61  ;;  %v3391_v8 = vld [vmem:[#allocation2 + $0x49] sm:$0xff]  ;;  %v2424_v31 = vld [vmem:[#allocation2 + $0x231] sm:$0xff]  ;;  %v3299_v59 = vmax.f32 %v3235_v1, %v3267_v23 }
 0x1e3   : > { %v2263_v34 = vld [vmem:[#allocation2 + $0x226] sm:$0xff]  ;;  %v2264_v20 = vld [vmem:[#allocation2 + $0x22e] sm:$0xff]  ;;  %v3423_v15 = vmax.f32 %v3359_v38, %v3391_v8 }
 0x1e4   : > { %v2295_v41 = vld [vmem:[#allocation2 + $0x227] sm:$0xff]  ;;  %v2296_v4 = vld [vmem:[#allocation2 + $0x22f] sm:$0xff] }
 0x1e5   : > { %v2327_v13 = vmax.f32 %v2263_v34, %v2295_v41  ;;  %v2359_v39 = vld [vmem:[#allocation2 + $0x228] sm:$0xff]  ;;  %v2328_v25 = vmax.f32 %v2264_v20, %v2296_v4  ;;  %v6095_v33 = vld [vmem:[#allocation2 + $0x210] sm:$0xff]  ;;  %v3004_v4 = vmax.f32 %v6067_v58, %v6080_v16 }
 0x1e6   : > { %v3236_v11 = vld [vmem:[#allocation2 + $0x8e] sm:$0xff]  ;;  %v3237_v2 = vld [vmem:[#allocation2 + $0xa6] sm:$0xff]  ;;  %v3192_v35 = vmax.f32 %v3128_v51, %v6095_v33 }
 0x1e7   : > { %v2391_v62 = vmax.f32 %v2327_v13, %v2359_v39  ;;  %v3268_v60 = vld [vmem:[#allocation2 + $0x8f] sm:$0xff]  ;;  %v2392_v48 = vmax.f32 %v2328_v25, %v2360_v43  ;;  %v3269_v53 = vld [vmem:[#allocation2 + $0xa7] sm:$0xff]  ;;  %v3066_v13 = vmax.f32 %v3002_v37, %v6080_v16 }
 0x1e8   : > { %v2423_v47 = vld [vmem:[#allocation2 + $0x229] sm:$0xff]  ;;  %3224 = vst.msk [vmem:[#allocation2 + $0x1d0] sm:$0xff] %vm171_vm0, %v3192_v35  ;;  %v2488_v0 = vld [vmem:[#allocation2 + $0x232] sm:$0xff]  ;;  %v3300_v40 = vmax.f32 %v3236_v11, %v3268_v60  ;;  %v3301_v17 = vmax.f32 %v3237_v2, %v3269_v53  ;;  %v3067_v11 = vmax.f32 %v3003_v21, %v6087_v46  ;;  %v3129_v60 = vmax.f32 %v3065_v54, %v6087_v46 }
 0x1e9   : > { %v3329_v5 = vld [vmem:[#allocation2 + $0x68] sm:$0xff]  ;;  %v2455_v3 = vmax.f32 %v2391_v62, %v2423_v47  ;;  %v2456_v22 = vmax.f32 %v2392_v48, %v2424_v31  ;;  %v3330_v7 = vld [vmem:[#allocation2 + $0x70] sm:$0xff]  ;;  %v3006_v48 = vmax.f32 %v6080_v16, %v6095_v33  ;;  %v3068_v35 = vmax.f32 %v3004_v4, %v6095_v33 }
 0x1ea   : > { %v3361_v32 = vmax.f32 %v3297_v50, %v3329_v5  ;;  %v2487_v57 = vld [vmem:[#allocation2 + $0x22a] sm:$0xff]  ;;  %v3362_v6 = vmax.f32 %v3298_v24, %v3330_v7  ;;  %v3456_v52 = vld [vmem:[#allocation2 + $0x52] sm:$0xff]  ;;  %v3005_v50 = vmax.f32 %v6069_v45, %v6087_v46  ;;  %v3130_v45 = vmax.f32 %v3066_v13, %v6095_v33 }
 0x1eb   : > { %v3455_v56 = vld [vmem:[#allocation2 + $0x4a] sm:$0xff]  ;;  %v2519_v55 = vmax.f32 %v2455_v3, %v2487_v57  ;;  %v2520_v10 = vmax.f32 %v2456_v22, %v2488_v0  ;;  %v3458_v47 = vld [vmem:[#allocation2 + $0x72] sm:$0xff] }
 0x1ec   : > { %v3392_v49 = vld [vmem:[#allocation2 + $0x51] sm:$0xff]  ;;  %v3393_v42 = vld [vmem:[#allocation2 + $0x69] sm:$0xff]  ;;  %v3487_v12 = vmax.f32 %v3423_v15, %v3455_v56 }
 0x1ed   : > { %v3331_v28 = vld [vmem:[#allocation2 + $0x88] sm:$0xff]  ;;  %v3424_v61 = vmax.f32 %v3360_v9, %v3392_v49  ;;  %v3332_v63 = vld [vmem:[#allocation2 + $0x90] sm:$0xff]  ;;  %4506 = vmatprep.mubr.msk.f32.mxu1 %vm171_vm0, %v2519_v55  ;;  %2909 = vst.msk [vmem:[#allocation2 + $0x228] sm:$0xff] %vm171_vm0, %v2519_v55  ;;  %2910 = vst.msk [vmem:[#allocation2 + $0x230] sm:$0xff] %vm171_vm0, %v2520_v10  ;;  %v3425_v34 = vmax.f32 %v3361_v32, %v3393_v42 }
 0x1ee   : > { %v3363_v19 = vmax.f32 %v3299_v59, %v3331_v28  ;;  %v3238_v44 = vld [vmem:[#allocation2 + $0xae] sm:$0xff]  ;;  %v3239_v41 = vld [vmem:[#allocation2 + $0xc6] sm:$0xff]  ;;  %4507 = vmatmul.mubr.msk.f32.gmra.mrb[14].mxu1 %vm171_vm0, %v2520_v10  ;;  %v3364_v18 = vmax.f32 %v3300_v40, %v3332_v63 }
 0x1ef   : > { %v3270_v26 = vld [vmem:[#allocation2 + $0xaf] sm:$0xff]  ;;  %v3271_v51 = vld [vmem:[#allocation2 + $0xc7] sm:$0xff]  ;;  %4511 = vmatprep.mubr.msk.f32.mxu1 %vm171_vm0, %v3487_v12  ;;  %v3488_v1 = vmax.f32 %v3424_v61, %v3456_v52 }
 0x1f0   : > { %v3333_v20 = vld [vmem:[#allocation2 + $0xa8] sm:$0xff]  ;;  %v3394_v36 = vld [vmem:[#allocation2 + $0x71] sm:$0xff]  ;;  %v3302_v14 = vmax.f32 %v3238_v44, %v3270_v26  ;;  %v3303_v43 = vmax.f32 %v3239_v41, %v3271_v51 }
 0x1f1   : > { %v3365_v29 = vmax.f32 %v3301_v17, %v3333_v20  ;;  %v3457_v39 = vld [vmem:[#allocation2 + $0x6a] sm:$0xff]  ;;  %v3426_v25 = vmax.f32 %v3362_v6, %v3394_v36  ;;  %v3460_v37 = vld [vmem:[#allocation2 + $0x92] sm:$0xff] }
 0x1f2   : > { %v3395_v38 = vld [vmem:[#allocation2 + $0x89] sm:$0xff]  ;;  %v3396_v58 = vld [vmem:[#allocation2 + $0x91] sm:$0xff]  ;;  %v3489_v24 = vmax.f32 %v3425_v34, %v3457_v39  ;;  %4512 = vmatmul.mubr.msk.f32.vlgmr.msra.gmra.mrb[16].mxu1 %vm171_vm0, %v3488_v1 }
 0x1f3   : > { %v3427_v23 = vmax.f32 %v3363_v19, %v3395_v38  ;;  %v3397_v62 = vld [vmem:[#allocation2 + $0xa9] sm:$0xff]  ;;  %v3428_v31 = vmax.f32 %v3364_v18, %v3396_v58  ;;  %v3490_v46 = vmax.f32 %v3426_v25, %v3458_v47  ;;  %v3398_v19 = vld [vmem:[#allocation2 + $0xb1] sm:$0xff] }
 0x1f4   : > { %v3240_v8 = vld [vmem:[#allocation2 + $0xce] sm:$0xff]  ;;  %v3241_v53 = vld [vmem:[#allocation2 + $0xe6] sm:$0xff]  ;;  %v3429_v9 = vmax.f32 %v3365_v29, %v3397_v62  ;;  %4514 = vmatprep.mubr.msk.f32.mxu1 %vm171_vm0, %v3489_v24 }
 0x1f5   : > { %v3272_v2 = vld [vmem:[#allocation2 + $0xcf] sm:$0xff]  ;;  %v3273_v30 = vld [vmem:[#allocation2 + $0xe7] sm:$0xff]  ;;  %v3492_v28 = vmax.f32 %v3428_v31, %v3460_v37 }
 0x1f6   : > { %v3334_v5 = vld [vmem:[#allocation2 + $0xb0] sm:$0xff]  ;;  %v3335_v16 = vld [vmem:[#allocation2 + $0xc8] sm:$0xff]  ;;  %v3304_v0 = vmax.f32 %v3240_v8, %v3272_v2  ;;  %v3305_v56 = vmax.f32 %v3241_v53, %v3273_v30  ;;  %4515 = vmatmul.mubr.msk.f32.gmra.mrb[18].mxu1 %vm171_vm0, %v3490_v46 }
 0x1f7   : > { %v3459_v59 = vld [vmem:[#allocation2 + $0x8a] sm:$0xff]  ;;  %v3366_v3 = vmax.f32 %v3302_v14, %v3334_v5  ;;  %v3367_v57 = vmax.f32 %v3303_v43, %v3335_v16  ;;  %v3462_v58 = vld [vmem:[#allocation2 + $0xb2] sm:$0xff] }
 0x1f8   : > { %v3037_v22 = vld [vmem:[#allocation2 + $0x228] sm:$0xff]  ;;  %v3038_v15 = vld [vmem:[#allocation2 + $0x230] sm:$0xff]  ;;  %v3491_v32 = vmax.f32 %v3427_v23, %v3459_v59 }
 0x1f9   : > { %v3069_v33 = vmax.f32 %v3005_v50, %v3037_v22  ;;  %v3131_v7 = vmax.f32 %v3067_v11, %v3037_v22  ;;  %v3193_v40 = vmax.f32 %v3129_v60, %v3037_v22  ;;  %v3070_v17 = vmax.f32 %v3006_v48, %v3038_v15  ;;  %v3461_v55 = vld [vmem:[#allocation2 + $0xaa] sm:$0xff]  ;;  %v3464_v59 = vld [vmem:[#allocation2 + $0xd2] sm:$0xff] }
 0x1fa   : > { %v3242_v10 = vld [vmem:[#allocation2 + $0xee] sm:$0xff]  ;;  %v3132_v42 = vmax.f32 %v3068_v35, %v3038_v15  ;;  %v3194_v6 = vmax.f32 %v3130_v45, %v3038_v15  ;;  %v3493_v61 = vmax.f32 %v3429_v9, %v3461_v55  ;;  %v3243_v63 = vld [vmem:[#allocation2 + $0x106] sm:$0xff]  ;;  %4517 = vmatprep.mubr.msk.f32.mxu1 %vm171_vm0, %v3491_v32  ;;  %v3430_v34 = vmax.f32 %v3366_v3, %v3398_v19 }
 0x1fb   : > { %v3274_v49 = vld [vmem:[#allocation2 + $0xef] sm:$0xff]  ;;  %v3275_v44 = vld [vmem:[#allocation2 + $0x107] sm:$0xff]  ;;  %v3133_v26 = vmax.f32 %v3069_v33, %v5918_v27  ;;  %v3195_v21 = vmax.f32 %v3131_v7, %v5918_v27  ;;  %3225 = vst.msk [vmem:[#allocation2 + $0x1e8] sm:$0xff] %vm171_vm0, %v3193_v40  ;;  %4518 = vmatmul.mubr.msk.f32.gmra.mrb[20].mxu1 %vm171_vm0, %v3492_v28 }
 0x1fc   : > { %v4669_v54 = vld [vmem:[#allocation2 + $0x250] sm:$0xff]  ;;  %3226 = vst.msk [vmem:[#allocation2 + $0x1f0] sm:$0xff] %vm171_vm0, %v3194_v6  ;;  %v3337_v36 = vld [vmem:[#allocation2 + $0xe8] sm:$0xff]  ;;  %v3306_v18 = vmax.f32 %v3242_v10, %v3274_v49  ;;  %v3307_v38 = vmax.f32 %v3243_v63, %v3275_v44  ;;  %4520 = vmatprep.mubr.msk.f32.mxu1 %vm171_vm0, %v3493_v61  ;;  %v3494_v8 = vmax.f32 %v3430_v34, %v3462_v58 }
 0x1fd   : > { %v3134_v12 = vmax.f32 %v3070_v17, %v4669_v54  ;;  %v3399_v20 = vld [vmem:[#allocation2 + $0xc9] sm:$0xff]  ;;  %v3196_v51 = vmax.f32 %v3132_v42, %v4669_v54  ;;  %3227 = vst.msk [vmem:[#allocation2 + $0x208] sm:$0xff] %vm171_vm0, %v3195_v21  ;;  %v3369_v25 = vmax.f32 %v3305_v56, %v3337_v36  ;;  %v3400_v62 = vld [vmem:[#allocation2 + $0xd1] sm:$0xff] }
 0x1fe   : > { %v3336_v41 = vld [vmem:[#allocation2 + $0xd0] sm:$0xff]  ;;  %v3431_v4 = vmax.f32 %v3367_v57, %v3399_v20  ;;  %v4670_v29 = vld [vmem:[#allocation2 + $0x268] sm:$0xff] }
 0x1ff   : > { %v3368_v13 = vmax.f32 %v3304_v0, %v3336_v41  ;;  %v3197_v52 = vmax.f32 %v3133_v26, %v4670_v29  ;;  %v4671_v27 = vld [vmem:[#allocation2 + $0x270] sm:$0xff]  ;;  %3228 = vst.msk [vmem:[#allocation2 + $0x210] sm:$0xff] %vm171_vm0, %v3196_v51  ;;  %v3245_v1 = vld [vmem:[#allocation2 + $0x126] sm:$0xff]  ;;  %4521 = vmatmul.mubr.msk.f32.gmra.mrb[22].mxu1 %vm171_vm0, %v3494_v8 }
 0x200   : > { %v3198_v39 = vmax.f32 %v3134_v12, %v4671_v27  ;;  %v3244_v14 = vld [vmem:[#allocation2 + $0x10e] sm:$0xff]  ;;  %v3247_v5 = vld [vmem:[#allocation2 + $0x146] sm:$0xff] }
 0x201   : > { %v3276_v50 = vld [vmem:[#allocation2 + $0x10f] sm:$0xff]  ;;  %v3277_v23 = vld [vmem:[#allocation2 + $0x127] sm:$0xff]  ;;  %3229 = vst.msk [vmem:[#allocation2 + $0x228] sm:$0xff] %vm171_vm0, %v3197_v52  ;;  %v3432_v60 = vmax.f32 %v3368_v13, %v3400_v62 }
 0x202   : > { %3230 = vst.msk [vmem:[#allocation2 + $0x230] sm:$0xff] %vm171_vm0, %v3198_v39  ;;  %v3338_v43 = vld [vmem:[#allocation2 + $0xf0] sm:$0xff]  ;;  %v3339_v2 = vld [vmem:[#allocation2 + $0x108] sm:$0xff]  ;;  %v3308_v53 = vmax.f32 %v3244_v14, %v3276_v50  ;;  %v3309_v47 = vmax.f32 %v3245_v1, %v3277_v23 }
 0x203   : > { %v3463_v11 = vld [vmem:[#allocation2 + $0xca] sm:$0xff]  ;;  %v3370_v24 = vmax.f32 %v3306_v18, %v3338_v43  ;;  %v3371_v45 = vmax.f32 %v3307_v38, %v3339_v2  ;;  %v3496_v22 = vmax.f32 %v3432_v60, %v3464_v59  ;;  %v3466_v6 = vld [vmem:[#allocation2 + $0xf2] sm:$0xff] }
 0x204   : > { %v3401_v48 = vld [vmem:[#allocation2 + $0xe9] sm:$0xff]  ;;  %v3495_v30 = vmax.f32 %v3431_v4, %v3463_v11  ;;  %v3402_v3 = vld [vmem:[#allocation2 + $0xf1] sm:$0xff] }
 0x205   : > { %v3433_v35 = vmax.f32 %v3369_v25, %v3401_v48  ;;  %v3246_v31 = vld [vmem:[#allocation2 + $0x12e] sm:$0xff]  ;;  %v3434_v32 = vmax.f32 %v3370_v24, %v3402_v3  ;;  %v3249_v49 = vld [vmem:[#allocation2 + $0x166] sm:$0xff] }
 0x206   : > { %v3278_v9 = vld [vmem:[#allocation2 + $0x12f] sm:$0xff]  ;;  %v3279_v46 = vld [vmem:[#allocation2 + $0x147] sm:$0xff]  ;;  %4523 = vmatprep.mubr.msk.f32.mxu1 %vm171_vm0, %v3495_v30 }
 0x207   : > { %v3340_v16 = vld [vmem:[#allocation2 + $0x110] sm:$0xff]  ;;  %v3341_v0 = vld [vmem:[#allocation2 + $0x128] sm:$0xff]  ;;  %v3310_v56 = vmax.f32 %v3246_v31, %v3278_v9  ;;  %v3311_v17 = vmax.f32 %v3247_v5, %v3279_v46  ;;  %4524 = vmatmul.mubr.msk.f32.gmra.mrb[24].mxu1 %vm171_vm0, %v3496_v22  ;;  %v3498_v19 = vmax.f32 %v3434_v32, %v3466_v6 }
 0x208   : > { %v3465_v15 = vld [vmem:[#allocation2 + $0xea] sm:$0xff]  ;;  %v3372_v57 = vmax.f32 %v3308_v53, %v3340_v16  ;;  %v3373_v40 = vmax.f32 %v3309_v47, %v3341_v0  ;;  %v3468_v29 = vld [vmem:[#allocation2 + $0x112] sm:$0xff] }
 0x209   : > { %v3403_v37 = vld [vmem:[#allocation2 + $0x109] sm:$0xff]  ;;  %v3497_v33 = vmax.f32 %v3433_v35, %v3465_v15  ;;  %v3404_v28 = vld [vmem:[#allocation2 + $0x111] sm:$0xff] }
 0x20a   : > { %v3435_v7 = vmax.f32 %v3371_v45, %v3403_v37  ;;  %v3248_v55 = vld [vmem:[#allocation2 + $0x14e] sm:$0xff]  ;;  %v3436_v44 = vmax.f32 %v3372_v57, %v3404_v28  ;;  %v3251_v36 = vld [vmem:[#allocation2 + $0x186] sm:$0xff] }
 0x20b   : > { %v3280_v10 = vld [vmem:[#allocation2 + $0x14f] sm:$0xff]  ;;  %v3281_v42 = vld [vmem:[#allocation2 + $0x167] sm:$0xff]  ;;  %4526 = vmatprep.mubr.msk.f32.mxu1 %vm171_vm0, %v3497_v33 }
 0x20c   : > { %v3342_v61 = vld [vmem:[#allocation2 + $0x130] sm:$0xff]  ;;  %v3343_v54 = vld [vmem:[#allocation2 + $0x148] sm:$0xff]  ;;  %v3312_v12 = vmax.f32 %v3248_v55, %v3280_v10  ;;  %v3313_v51 = vmax.f32 %v3249_v49, %v3281_v42  ;;  %4527 = vmatmul.mubr.msk.f32.gmra.mrb[26].mxu1 %vm171_vm0, %v3498_v19  ;;  %v3500_v39 = vmax.f32 %v3436_v44, %v3468_v29 }
 0x20d   : > { %v3467_v63 = vld [vmem:[#allocation2 + $0x10a] sm:$0xff]  ;;  %v3374_v21 = vmax.f32 %v3310_v56, %v3342_v61  ;;  %v3375_v41 = vmax.f32 %v3311_v17, %v3343_v54  ;;  %v3470_v2 = vld [vmem:[#allocation2 + $0x132] sm:$0xff] }
 0x20e   : > { %v3405_v26 = vld [vmem:[#allocation2 + $0x129] sm:$0xff]  ;;  %v3499_v34 = vmax.f32 %v3435_v7, %v3467_v63  ;;  %v3406_v52 = vld [vmem:[#allocation2 + $0x131] sm:$0xff] }
 0x20f   : > { %v3437_v20 = vmax.f32 %v3373_v40, %v3405_v26  ;;  %v3250_v4 = vld [vmem:[#allocation2 + $0x16e] sm:$0xff]  ;;  %v3438_v38 = vmax.f32 %v3374_v21, %v3406_v52  ;;  %v3253_v48 = vld [vmem:[#allocation2 + $0x1a6] sm:$0xff] }
 0x210   : > { %v3282_v13 = vld [vmem:[#allocation2 + $0x16f] sm:$0xff]  ;;  %v3283_v18 = vld [vmem:[#allocation2 + $0x187] sm:$0xff]  ;;  %4529 = vmatprep.mubr.msk.f32.mxu1 %vm171_vm0, %v3499_v34 }
 0x211   : > { %v3344_v27 = vld [vmem:[#allocation2 + $0x150] sm:$0xff]  ;;  %v3345_v1 = vld [vmem:[#allocation2 + $0x168] sm:$0xff]  ;;  %v3314_v23 = vmax.f32 %v3250_v4, %v3282_v13  ;;  %v3315_v8 = vmax.f32 %v3251_v36, %v3283_v18  ;;  %4530 = vmatmul.mubr.msk.f32.gmra.mrb[28].mxu1 %vm171_vm0, %v3500_v39  ;;  %v3502_v35 = vmax.f32 %v3438_v38, %v3470_v2 }
 0x212   : > { %v3469_v25 = vld [vmem:[#allocation2 + $0x12a] sm:$0xff]  ;;  %v3376_v50 = vmax.f32 %v3312_v12, %v3344_v27  ;;  %v3377_v43 = vmax.f32 %v3313_v51, %v3345_v1  ;;  %v3472_v0 = vld [vmem:[#allocation2 + $0x152] sm:$0xff] }
 0x213   : > { %v3407_v14 = vld [vmem:[#allocation2 + $0x149] sm:$0xff]  ;;  %v3501_v58 = vmax.f32 %v3437_v20, %v3469_v25  ;;  %v3408_v53 = vld [vmem:[#allocation2 + $0x151] sm:$0xff] }
 0x214   : > { %v3439_v62 = vmax.f32 %v3375_v41, %v3407_v14  ;;  %v3252_v11 = vld [vmem:[#allocation2 + $0x18e] sm:$0xff]  ;;  %v3440_v47 = vmax.f32 %v3376_v50, %v3408_v53  ;;  %v3255_v37 = vld [vmem:[#allocation2 + $0x1c6] sm:$0xff] }
 0x215   : > { %v3284_v60 = vld [vmem:[#allocation2 + $0x18f] sm:$0xff]  ;;  %v3285_v24 = vld [vmem:[#allocation2 + $0x1a7] sm:$0xff]  ;;  %4532 = vmatprep.mubr.msk.f32.mxu1 %vm171_vm0, %v3501_v58 }
 0x216   : > { %v3346_v30 = vld [vmem:[#allocation2 + $0x170] sm:$0xff]  ;;  %v3347_v5 = vld [vmem:[#allocation2 + $0x188] sm:$0xff]  ;;  %v3316_v46 = vmax.f32 %v3252_v11, %v3284_v60  ;;  %v3317_v22 = vmax.f32 %v3253_v48, %v3285_v24  ;;  %4533 = vmatmul.mubr.msk.f32.gmra.mrb[30].mxu1 %vm171_vm0, %v3502_v35  ;;  %v3504_v7 = vmax.f32 %v3440_v47, %v3472_v0 }
 0x217   : > { %v3471_v45 = vld [vmem:[#allocation2 + $0x14a] sm:$0xff]  ;;  %v3378_v9 = vmax.f32 %v3314_v23, %v3346_v30  ;;  %v3379_v16 = vmax.f32 %v3315_v8, %v3347_v5  ;;  %v3474_v54 = vld [vmem:[#allocation2 + $0x172] sm:$0xff] }
 0x218   : > { %v3409_v31 = vld [vmem:[#allocation2 + $0x169] sm:$0xff]  ;;  %v3503_v59 = vmax.f32 %v3439_v62, %v3471_v45  ;;  %v3410_v56 = vld [vmem:[#allocation2 + $0x171] sm:$0xff] }
 0x219   : > { %v3441_v3 = vmax.f32 %v3377_v43, %v3409_v31  ;;  %v3254_v15 = vld [vmem:[#allocation2 + $0x1ae] sm:$0xff]  ;;  %v3442_v17 = vmax.f32 %v3378_v9, %v3410_v56  ;;  %v3257_v26 = vld [vmem:[#allocation2 + $0x1e6] sm:$0xff] }
 0x21a   : > { %v3286_v32 = vld [vmem:[#allocation2 + $0x1af] sm:$0xff]  ;;  %v3287_v57 = vld [vmem:[#allocation2 + $0x1c7] sm:$0xff]  ;;  %4535 = vmatprep.mubr.msk.f32.mxu1 %vm171_vm0, %v3503_v59 }
 0x21b   : > { %v3348_v33 = vld [vmem:[#allocation2 + $0x190] sm:$0xff]  ;;  %v3349_v49 = vld [vmem:[#allocation2 + $0x1a8] sm:$0xff]  ;;  %v3318_v42 = vmax.f32 %v3254_v15, %v3286_v32  ;;  %v3319_v19 = vmax.f32 %v3255_v37, %v3287_v57  ;;  %4536 = vmatmul.mubr.msk.f32.gmra.mrb[0].mxu1 %vm171_vm0, %v3504_v7  ;;  %v3506_v20 = vmax.f32 %v3442_v17, %v3474_v54 }
 0x21c   : > { %v3473_v40 = vld [vmem:[#allocation2 + $0x16a] sm:$0xff]  ;;  %v3380_v10 = vmax.f32 %v3316_v46, %v3348_v33  ;;  %v3381_v61 = vmax.f32 %v3317_v22, %v3349_v49  ;;  %v3476_v1 = vld [vmem:[#allocation2 + $0x192] sm:$0xff] }
 0x21d   : > { %v3411_v55 = vld [vmem:[#allocation2 + $0x189] sm:$0xff]  ;;  %v3505_v6 = vmax.f32 %v3441_v3, %v3473_v40  ;;  %v3412_v12 = vld [vmem:[#allocation2 + $0x191] sm:$0xff] }
 0x21e   : > { %v3443_v28 = vmax.f32 %v3379_v16, %v3411_v55  ;;  %v3256_v63 = vld [vmem:[#allocation2 + $0x1ce] sm:$0xff]  ;;  %v3444_v51 = vmax.f32 %v3380_v10, %v3412_v12  ;;  %v3259_v14 = vld [vmem:[#allocation2 + $0x206] sm:$0xff] }
 0x21f   : > { %v3288_v44 = vld [vmem:[#allocation2 + $0x1cf] sm:$0xff]  ;;  %v3289_v21 = vld [vmem:[#allocation2 + $0x1e7] sm:$0xff]  ;;  %4538 = vmatprep.mubr.msk.f32.mxu1 %vm171_vm0, %v3505_v6 }
 0x220   : > { %v3350_v34 = vld [vmem:[#allocation2 + $0x1b0] sm:$0xff]  ;;  %v3351_v36 = vld [vmem:[#allocation2 + $0x1c8] sm:$0xff]  ;;  %v3320_v18 = vmax.f32 %v3256_v63, %v3288_v44  ;;  %v3321_v39 = vmax.f32 %v3257_v26, %v3289_v21  ;;  %4539 = vmatmul.mubr.msk.f32.gmra.mrb[2].mxu1 %vm171_vm0, %v3506_v20  ;;  %v3508_v62 = vmax.f32 %v3444_v51, %v3476_v1 }
 0x221   : > { %v3475_v41 = vld [vmem:[#allocation2 + $0x18a] sm:$0xff]  ;;  %v3382_v13 = vmax.f32 %v3318_v42, %v3350_v34  ;;  %v3383_v27 = vmax.f32 %v3319_v19, %v3351_v36  ;;  %v3478_v5 = vld [vmem:[#allocation2 + $0x1b2] sm:$0xff] }
 0x222   : > { %v3413_v4 = vld [vmem:[#allocation2 + $0x1a9] sm:$0xff]  ;;  %v3507_v29 = vmax.f32 %v3443_v28, %v3475_v41  ;;  %v3414_v23 = vld [vmem:[#allocation2 + $0x1b1] sm:$0xff] }
 0x223   : > { %v3445_v52 = vmax.f32 %v3381_v61, %v3413_v4  ;;  %v3258_v25 = vld [vmem:[#allocation2 + $0x1ee] sm:$0xff]  ;;  %v3446_v8 = vmax.f32 %v3382_v13, %v3414_v23  ;;  %v3261_v31 = vld [vmem:[#allocation2 + $0x226] sm:$0xff] }
 0x224   : > { %v3290_v38 = vld [vmem:[#allocation2 + $0x1ef] sm:$0xff]  ;;  %v3291_v50 = vld [vmem:[#allocation2 + $0x207] sm:$0xff]  ;;  %4541 = vmatprep.mubr.msk.f32.mxu1 %vm171_vm0, %v3507_v29 }
 0x225   : > { %v3352_v58 = vld [vmem:[#allocation2 + $0x1d0] sm:$0xff]  ;;  %v3353_v48 = vld [vmem:[#allocation2 + $0x1e8] sm:$0xff]  ;;  %v3322_v24 = vmax.f32 %v3258_v25, %v3290_v38  ;;  %v3323_v35 = vmax.f32 %v3259_v14, %v3291_v50  ;;  %4542 = vmatmul.mubr.msk.f32.gmra.mrb[4].mxu1 %vm171_vm0, %v3508_v62  ;;  %v3510_v3 = vmax.f32 %v3446_v8, %v3478_v5 }
 0x226   : > { %v3477_v43 = vld [vmem:[#allocation2 + $0x1aa] sm:$0xff]  ;;  %v3384_v60 = vmax.f32 %v3320_v18, %v3352_v58  ;;  %v3385_v30 = vmax.f32 %v3321_v39, %v3353_v48  ;;  %v3480_v55 = vld [vmem:[#allocation2 + $0x1d2] sm:$0xff] }
 0x227   : > { %v3415_v11 = vld [vmem:[#allocation2 + $0x1c9] sm:$0xff]  ;;  %v3509_v2 = vmax.f32 %v3445_v52, %v3477_v43  ;;  %v3416_v46 = vld [vmem:[#allocation2 + $0x1d1] sm:$0xff]  ;;  %v6161_v23 = vpop.f32.mrb[48].mxu0 }
 0x228   : > { %v3447_v53 = vmax.f32 %v3383_v27, %v3415_v11  ;;  %v3260_v45 = vld [vmem:[#allocation2 + $0x20e] sm:$0xff]  ;;  %v3448_v22 = vmax.f32 %v3384_v60, %v3416_v46  ;;  %v6163_v58 = vpop.f32.mrb[49].mxu0 }
 0x229   : > { %v3292_v47 = vld [vmem:[#allocation2 + $0x20f] sm:$0xff]  ;;  %v3293_v9 = vld [vmem:[#allocation2 + $0x227] sm:$0xff]  ;;  %4544 = vmatprep.mubr.msk.f32.mxu1 %vm171_vm0, %v3509_v2 }
 0x22a   : > { %v3354_v59 = vld [vmem:[#allocation2 + $0x1f0] sm:$0xff]  ;;  %v3355_v37 = vld [vmem:[#allocation2 + $0x208] sm:$0xff]  ;;  %v3324_v57 = vmax.f32 %v3260_v45, %v3292_v47  ;;  %v3325_v7 = vmax.f32 %v3261_v31, %v3293_v9  ;;  %4545 = vmatmul.mubr.msk.f32.gmra.mrb[6].mxu1 %vm171_vm0, %v3510_v3  ;;  %v3512_v42 = vmax.f32 %v3448_v22, %v3480_v55 }
 0x22b   : > { %v3479_v16 = vld [vmem:[#allocation2 + $0x1ca] sm:$0xff]  ;;  %v3386_v32 = vmax.f32 %v3322_v24, %v3354_v59  ;;  %v3387_v33 = vmax.f32 %v3323_v35, %v3355_v37  ;;  %v3482_v12 = vld [vmem:[#allocation2 + $0x1f2] sm:$0xff]  ;;  %v6165_v62 = vpop.f32.mrb[50].mxu0 }
 0x22c   : > { %v3417_v15 = vld [vmem:[#allocation2 + $0x1e9] sm:$0xff]  ;;  %v3511_v0 = vmax.f32 %v3447_v53, %v3479_v16  ;;  %v3418_v10 = vld [vmem:[#allocation2 + $0x1f1] sm:$0xff]  ;;  %v6167_v43 = vpop.f32.mrb[51].mxu0 }
 0x22d   : > { %v3449_v56 = vmax.f32 %v3385_v30, %v3417_v15  ;;  %v3262_v40 = vld [vmem:[#allocation2 + $0x22e] sm:$0xff]  ;;  %v3450_v28 = vmax.f32 %v3386_v32, %v3418_v10 }
 0x22e   : > { %v3294_v17 = vld [vmem:[#allocation2 + $0x22f] sm:$0xff]  ;;  %4547 = vmatprep.mubr.msk.f32.mxu1 %vm171_vm0, %v3511_v0 }
 0x22f   : > { %v3356_v49 = vld [vmem:[#allocation2 + $0x210] sm:$0xff]  ;;  %v3357_v63 = vld [vmem:[#allocation2 + $0x228] sm:$0xff]  ;;  %v3326_v44 = vmax.f32 %v3262_v40, %v3294_v17  ;;  %4548 = vmatmul.mubr.msk.f32.gmra.mrb[8].mxu1 %vm171_vm0, %v3512_v42  ;;  %v3514_v41 = vmax.f32 %v3450_v28, %v3482_v12 }
 0x230   : > { %v3481_v6 = vld [vmem:[#allocation2 + $0x1ea] sm:$0xff]  ;;  %v3388_v19 = vmax.f32 %v3324_v57, %v3356_v49  ;;  %v3389_v54 = vmax.f32 %v3325_v7, %v3357_v63  ;;  %v3484_v52 = vld [vmem:[#allocation2 + $0x212] sm:$0xff] }
 0x231   : > { %v3419_v61 = vld [vmem:[#allocation2 + $0x209] sm:$0xff]  ;;  %v3513_v26 = vmax.f32 %v3449_v56, %v3481_v6  ;;  %v3420_v34 = vld [vmem:[#allocation2 + $0x211] sm:$0xff] }
 0x232   : > { %v3451_v21 = vmax.f32 %v3387_v33, %v3419_v61  ;;  %v3358_v20 = vld [vmem:[#allocation2 + $0x230] sm:$0xff]  ;;  %v3452_v4 = vmax.f32 %v3388_v19, %v3420_v34 }
 0x233   : > { %4550 = vmatprep.mubr.msk.f32.mxu1 %vm171_vm0, %v3513_v26  ;;  %v3483_v51 = vld [vmem:[#allocation2 + $0x20a] sm:$0xff]  ;;  %v3390_v36 = vmax.f32 %v3326_v44, %v3358_v20  ;;  %v3486_v50 = vld [vmem:[#allocation2 + $0x232] sm:$0xff] }
 0x234   : > { %v3421_v13 = vld [vmem:[#allocation2 + $0x229] sm:$0xff]  ;;  %v3515_v18 = vmax.f32 %v3451_v21, %v3483_v51  ;;  %4551 = vmatmul.mubr.msk.f32.gmra.mrb[10].mxu1 %vm171_vm0, %v3514_v41  ;;  %v3422_v27 = vld [vmem:[#allocation2 + $0x231] sm:$0xff]  ;;  %v3516_v39 = vmax.f32 %v3452_v4, %v3484_v52 }
 0x235   : > { %v3453_v29 = vmax.f32 %v3389_v54, %v3421_v13  ;;  %v3485_v25 = vld [vmem:[#allocation2 + $0x22a] sm:$0xff]  ;;  %v3454_v38 = vmax.f32 %v3390_v36, %v3422_v27 }
 0x236   : > { %4553 = vmatprep.mubr.msk.f32.mxu1 %vm171_vm0, %v3515_v18 }
 0x237   : > { %v3517_v14 = vmax.f32 %v3453_v29, %v3485_v25  ;;  %v3518_v1 = vmax.f32 %v3454_v38, %v3486_v50 }
 0x238   : > { %4554 = vmatmul.mubr.msk.f32.gmra.mrb[12].mxu1 %vm171_vm0, %v3516_v39 }
 0x239   : > { %4556 = vmatprep.mubr.msk.f32.mxu1 %vm171_vm0, %v3517_v14 }
 0x23b   : > { %v6169_v8 = vpop.f32.mrb[52].mxu0 }
 0x23c   : > { %4557 = vmatmul.mubr.msk.f32.gmra.mrb[14].mxu1 %vm171_vm0, %v3518_v1  ;;  %v6171_v11 = vpop.f32.mrb[53].mxu0 }
 0x241   : > { %v6173_v60 = vpop.f32.mrb[54].mxu0 }
 0x242   : > { %v6175_v48 = vpop.f32.mrb[55].mxu0 }
 0x248   : > { %v6177_v24 = vpop.f32.mrb[56].mxu0 }
 0x249   : > { %v6179_v2 = vpop.f32.mrb[57].mxu0 }
 0x266   : > { %v6181_v53 = vpop.f32.mrb[58].mxu0 }
 0x267   : > { %v6183_v30 = vpop.f32.mrb[59].mxu0 }
 0x26f   : > { %v6185_v35 = vpop.f32.mrb[60].mxu0 }
 0x270   : > { %v6187_v45 = vpop.f32.mrb[61].mxu0 }
 0x27f   : > { %v6189_v47 = vpop.f32.mrb[62].mxu0 }
 0x280   : > { %v6191_v31 = vpop.f32.mrb[63].mxu0 }
 0x284   : > { %v4413_v9 = vpop.f32.mrb[32].mxu0 }
 0x285   : > { %v1722_v5 = vpop.f32.mrb[33].mxu0 }
 0x288   : > { %v4416_v46 = vpop.f32.mrb[34].mxu0 }
 0x289   : > { %v1732_v59 = vpop.f32.mrb[35].mxu0 }
 0x28d   : > { %v4419_v3 = vpop.f32.mrb[36].mxu0 }
 0x28e   : > { %v1742_v16 = vpop.f32.mrb[37].mxu0 }
 0x291   : > { %v4422_v22 = vpop.f32.mrb[38].mxu0 }
 0x292   : > { %v1752_v15 = vpop.f32.mrb[39].mxu0 }
 0x295   : > { %v4425_v32 = vpop.f32.mrb[40].mxu0 }
 0x296   : > { %v1762_v37 = vpop.f32.mrb[41].mxu0 }
 0x2a3   : > { %v4428_v57 = vpop.f32.mrb[42].mxu0 }
 0x2a4   : > { %v1772_v0 = vpop.f32.mrb[43].mxu0 }
 0x2a7   : > { %v4431_v56 = vpop.f32.mrb[44].mxu0 }
 0x2a8   : > { %v1782_v33 = vpop.f32.mrb[45].mxu0 }
 0x2ad   : > { %v4434_v7 = vpop.f32.mrb[46].mxu0 }
 0x2ae   : > { %v1792_v40 = vpop.f32.mrb[47].mxu0 }
 0x2c5   : > { %v4513_v17 = vpop.f32.mrb[16].mxu1 }
 0x2c6   : > { %v4561_v55 = vadd.f32 %v4513_v17, %v4413_v9  ;;  %v3686_v10 = vpop.f32.mrb[17].mxu1 }
 0x2c7   : > { %v4562_v49 = vadd.f32 %v3686_v10, %v1722_v5 }
 0x2c8   : > { %3878 = vst.msk [vmem:[%s6198_s30 + $0x8] sm:$0xff] %vm263_vm1, %v4561_v55 }
 0x2c9   : > { %3877 = vst.msk [vmem:[%s6198_s30] sm:$0xff] %vm263_vm1, %v4562_v49  ;;  %v4516_v42 = vpop.f32.mrb[18].mxu1 }
 0x2ca   : > { %v4563_v6 = vadd.f32 %v4516_v42, %v4416_v46  ;;  %v3696_v28 = vpop.f32.mrb[19].mxu1 }
 0x2cb   : > { %v4564_v61 = vadd.f32 %v3696_v28, %v1732_v59 }
 0x2cc   : > { %3880 = vst.msk [vmem:[%s6198_s30 + $0x18] sm:$0xff] %vm263_vm1, %v4563_v6 }
 0x2cd   : > { %3879 = vst.msk [vmem:[%s6198_s30 + $0x10] sm:$0xff] %vm263_vm1, %v4564_v61 }
 0x2ce   : > { %v4519_v19 = vpop.f32.mrb[20].mxu1 }
 0x2cf   : > { %v4565_v63 = vadd.f32 %v4519_v19, %v4419_v3  ;;  %v3706_v44 = vpop.f32.mrb[21].mxu1 }
 0x2d0   : > { %v4566_v26 = vadd.f32 %v3706_v44, %v1742_v16 }
 0x2d1   : > { %3882 = vst.msk [vmem:[%s6198_s30 + $0x28] sm:$0xff] %vm263_vm1, %v4565_v63 }
 0x2d2   : > { %3881 = vst.msk [vmem:[%s6198_s30 + $0x20] sm:$0xff] %vm263_vm1, %v4566_v26  ;;  %v4522_v21 = vpop.f32.mrb[22].mxu1 }
 0x2d3   : > { %v4567_v54 = vadd.f32 %v4522_v21, %v4422_v22  ;;  %v3716_v12 = vpop.f32.mrb[23].mxu1 }
 0x2d4   : > { %v4568_v34 = vadd.f32 %v3716_v12, %v1752_v15 }
 0x2d5   : > { %3884 = vst.msk [vmem:[%s6198_s30 + $0x38] sm:$0xff] %vm263_vm1, %v4567_v54 }
 0x2d6   : > { %3883 = vst.msk [vmem:[%s6198_s30 + $0x30] sm:$0xff] %vm263_vm1, %v4568_v34 }
 0x2da   : > { %v4525_v20 = vpop.f32.mrb[24].mxu1 }
 0x2db   : > { %v4569_v41 = vadd.f32 %v4525_v20, %v4425_v32  ;;  %v3726_v51 = vpop.f32.mrb[25].mxu1 }
 0x2dc   : > { %v4570_v4 = vadd.f32 %v3726_v51, %v1762_v37 }
 0x2dd   : > { %3886 = vst.msk [vmem:[%s6198_s30 + $0x48] sm:$0xff] %vm263_vm1, %v4569_v41 }
 0x2de   : > { %3885 = vst.msk [vmem:[%s6198_s30 + $0x40] sm:$0xff] %vm263_vm1, %v4570_v4 }
 0x2df   : > { %v4528_v13 = vpop.f32.mrb[26].mxu1 }
 0x2e0   : > { %v4571_v36 = vadd.f32 %v4528_v13, %v4428_v57  ;;  %v3736_v18 = vpop.f32.mrb[27].mxu1 }
 0x2e1   : > { %v4572_v29 = vadd.f32 %v3736_v18, %v1772_v0 }
 0x2e2   : > { %3888 = vst.msk [vmem:[%s6198_s30 + $0x58] sm:$0xff] %vm263_vm1, %v4571_v36 }
 0x2e3   : > { %3887 = vst.msk [vmem:[%s6198_s30 + $0x50] sm:$0xff] %vm263_vm1, %v4572_v29 }
 0x2e4   : > { %v4531_v52 = vpop.f32.mrb[28].mxu1 }
 0x2e5   : > { %v4573_v27 = vadd.f32 %v4531_v52, %v4431_v56  ;;  %v3746_v39 = vpop.f32.mrb[29].mxu1 }
 0x2e6   : > { %v4574_v25 = vadd.f32 %v3746_v39, %v1782_v33 }
 0x2e7   : > { %3890 = vst.msk [vmem:[%s6198_s30 + $0x68] sm:$0xff] %vm263_vm1, %v4573_v27 }
 0x2e8   : > { %3889 = vst.msk [vmem:[%s6198_s30 + $0x60] sm:$0xff] %vm263_vm1, %v4574_v25 }
 0x2e9   : > { %v4534_v38 = vpop.f32.mrb[30].mxu1 }
 0x2ea   : > { %v4575_v14 = vadd.f32 %v4534_v38, %v4434_v7  ;;  %v3756_v50 = vpop.f32.mrb[31].mxu1 }
 0x2eb   : > { %v4576_v1 = vadd.f32 %v3756_v50, %v1792_v40 }
 0x2ec   : > { %3892 = vst.msk [vmem:[%s6198_s30 + $0x78] sm:$0xff] %vm263_vm1, %v4575_v14 }
 0x2ed   : > { %3891 = vst.msk [vmem:[%s6198_s30 + $0x70] sm:$0xff] %vm263_vm1, %v4576_v1 }
 0x2ee   : > { %v4537_v9 = vpop.f32.mrb[0].mxu1 }
 0x2ef   : > { %v4577_v5 = vadd.f32 %v4537_v9, %v6161_v23  ;;  %v3766_v46 = vpop.f32.mrb[1].mxu1 }
 0x2f0   : > { %v4578_v59 = vadd.f32 %v3766_v46, %v6163_v58 }
 0x2f1   : > { %3894 = vst.msk [vmem:[%s6198_s30 + $0x88] sm:$0xff] %vm263_vm1, %v4577_v5 }
 0x2f2   : > { %3893 = vst.msk [vmem:[%s6198_s30 + $0x80] sm:$0xff] %vm263_vm1, %v4578_v59 }
 0x2f3   : > { %v4540_v3 = vpop.f32.mrb[2].mxu1 }
 0x2f4   : > { %v4579_v16 = vadd.f32 %v4540_v3, %v6165_v62  ;;  %v3776_v22 = vpop.f32.mrb[3].mxu1 }
 0x2f5   : > { %v4580_v15 = vadd.f32 %v3776_v22, %v6167_v43 }
 0x2f6   : > { %3896 = vst.msk [vmem:[%s6198_s30 + $0x98] sm:$0xff] %vm263_vm1, %v4579_v16 }
 0x2f7   : > { %3895 = vst.msk [vmem:[%s6198_s30 + $0x90] sm:$0xff] %vm263_vm1, %v4580_v15 }
 0x2f8   : > { %v4543_v23 = vpop.f32.mrb[4].mxu1 }
 0x2f9   : > { %v4581_v58 = vadd.f32 %v4543_v23, %v6169_v8  ;;  %v3786_v32 = vpop.f32.mrb[5].mxu1 }
 0x2fa   : > { %v4582_v37 = vadd.f32 %v3786_v32, %v6171_v11 }
 0x2fb   : > { %3898 = vst.msk [vmem:[%s6198_s30 + $0xa8] sm:$0xff] %vm263_vm1, %v4581_v58 }
 0x2fc   : > { %3897 = vst.msk [vmem:[%s6198_s30 + $0xa0] sm:$0xff] %vm263_vm1, %v4582_v37 }
 0x2fd   : > { %v4546_v62 = vpop.f32.mrb[6].mxu1 }
 0x2fe   : > { %v4583_v43 = vadd.f32 %v4546_v62, %v6173_v60  ;;  %v3796_v57 = vpop.f32.mrb[7].mxu1 }
 0x2ff   : > { %v4584_v0 = vadd.f32 %v3796_v57, %v6175_v48 }
 0x300   : > { %3900 = vst.msk [vmem:[%s6198_s30 + $0xb8] sm:$0xff] %vm263_vm1, %v4583_v43 }
 0x301   : > { %3899 = vst.msk [vmem:[%s6198_s30 + $0xb0] sm:$0xff] %vm263_vm1, %v4584_v0 }
 0x302   : > { %v4549_v8 = vpop.f32.mrb[8].mxu1 }
 0x303   : > { %v4585_v11 = vadd.f32 %v4549_v8, %v6177_v24  ;;  %v3806_v56 = vpop.f32.mrb[9].mxu1 }
 0x304   : > { %v4586_v33 = vadd.f32 %v3806_v56, %v6179_v2 }
 0x305   : > { %3902 = vst.msk [vmem:[%s6198_s30 + $0xc8] sm:$0xff] %vm263_vm1, %v4585_v11 }
 0x306   : > { %3901 = vst.msk [vmem:[%s6198_s30 + $0xc0] sm:$0xff] %vm263_vm1, %v4586_v33 }
 0x307   : > { %v4552_v60 = vpop.f32.mrb[10].mxu1 }
 0x308   : > { %v4587_v48 = vadd.f32 %v4552_v60, %v6181_v53  ;;  %v3816_v7 = vpop.f32.mrb[11].mxu1 }
 0x309   : > { %v4588_v40 = vadd.f32 %v3816_v7, %v6183_v30 }
 0x30a   : > { %3904 = vst.msk [vmem:[%s6198_s30 + $0xd8] sm:$0xff] %vm263_vm1, %v4587_v48 }
 0x30b   : > { %3903 = vst.msk [vmem:[%s6198_s30 + $0xd0] sm:$0xff] %vm263_vm1, %v4588_v40  ;;  %v4555_v24 = vpop.f32.mrb[12].mxu1 }
 0x30c   : > { %v4589_v17 = vadd.f32 %v4555_v24, %v6185_v35  ;;  %v3826_v2 = vpop.f32.mrb[13].mxu1 }
 0x30d   : > { %v4590_v55 = vadd.f32 %v3826_v2, %v6187_v45 }
 0x30e   : > { %3906 = vst.msk [vmem:[%s6198_s30 + $0xe8] sm:$0xff] %vm263_vm1, %v4589_v17 }
 0x30f   : > { %3905 = vst.msk [vmem:[%s6198_s30 + $0xe0] sm:$0xff] %vm263_vm1, %v4590_v55  ;;  %v4558_v10 = vpop.f32.mrb[14].mxu1 }
 0x310   : > { %v4591_v53 = vadd.f32 %v4558_v10, %v6189_v47  ;;  %v3836_v49 = vpop.f32.mrb[15].mxu1 }
 0x311   : > { %v4592_v30 = vadd.f32 %v3836_v49, %v6191_v31 }
 0x312   : > { %3908 = vst.msk [vmem:[%s6198_s30 + $0xf8] sm:$0xff] %vm263_vm1, %v4591_v53 }
 0x313   : > { %3907 = vst.msk [vmem:[%s6198_s30 + $0xf0] sm:$0xff] %vm263_vm1, %v4592_v30 }
 0x314 PF: > { %s13_s12 = sadd.s32 1, %s4678_s12  }
 0x315   : > { %p10_p4 = scmp.ge.s32.totalorder %s13_s12, 4  }
 0x317   :  { %12 = sbr.rel (!%p10_p4) target bundleno = 1 (0x1), region = 70 }

</bundles_post_ra>
